<compile_context>
chip_gen: v7x
topology: tpu7x:2x2x1
jax: 0.10.0
libtpu: 0.0.40
codegen_flags: <defaults>
</compile_context>

<pallas_src>
import functools

import jax
import jax.numpy as jnp
from jax import lax
from jax.experimental import pallas as pl
from jax.experimental.pallas import tpu as pltpu

BN_EPS = 1e-5
K1, S1 = 16, 3   # conv1 kernel / stride
K2, S2 = 6, 2    # conv2 kernel / stride (fully covers the 6x6 conv1 output)


def _round_up(x, m):
    return (x + m - 1) // m * m


# ----------------------------------------------------------------------------
# Fused Pallas kernel: conv1(matmul) + BN + ReLU + conv2(accum) + ReLU + fc
# ----------------------------------------------------------------------------
def _fused_kernel(p_ref, w1_ref, b1_ref, w2_ref, b2_ref, wfc_ref, bfc_ref,
                  o_ref, feat_ref):
    """
    p_ref  : (NPOS*B, KH*KW)      im2col patches, rows ordered (pos, batch)
    w1_ref : (KH*KW, C1P)         conv1 weight (flattened, transposed, padded)
    b1_ref : (1, C1P)
    w2_ref : (NPOS, C1P, C2P)     conv2 weight reordered (h,w,cin,cout), padded
    b2_ref : (1, C2P)
    wfc_ref: (1, C2P)             fc weight row (padded)
    bfc_ref: (1, 1)
    o_ref  : (B, 1)
    feat_ref: VMEM scratch (NPOS*B, C1P)  -- conv1 features stay on-chip
    """
    B = o_ref.shape[0]
    npos, _, c2p = w2_ref.shape

    # ---- Stage 1: conv1 as a single im2col matmul + BN (batch stats) + ReLU.
    x = jnp.dot(p_ref[...], w1_ref[...], preferred_element_type=jnp.float32)
    x = x + b1_ref[...]
    # BatchNorm2d, training mode, gamma=1 / beta=0 (per E._init_weights):
    # per-channel mean and biased variance over all (b, oh, ow) rows.
    mean = jnp.mean(x, axis=0, keepdims=True)
    d = x - mean
    var = jnp.mean(d * d, axis=0, keepdims=True)
    feat_ref[...] = jnp.maximum(d * lax.rsqrt(var + BN_EPS), 0.0)

    # ---- Stage 2: conv2 (kernel fully covers the feature map) as an
    # accumulation over the spatial positions -- avoids any sublane->lane
    # reshape of the feature slab. Padded cin/cout channels are zero.
    acc = jnp.zeros((B, c2p), jnp.float32)
    for p in range(npos):                                   # unrolled (36)
        acc = acc + jnp.dot(feat_ref[p * B:(p + 1) * B, :], w2_ref[p],
                            preferred_element_type=jnp.float32)
    h = jnp.maximum(acc + b2_ref[...], 0.0)                 # (B, C2P)

    # ---- fc (out_features=1): VPU multiply + lane reduce, then sigmoid+neg.
    e = jnp.sum(h * wfc_ref[...], axis=-1, keepdims=True) + bfc_ref[...]
    o_ref[...] = -1.0 / (1.0 + jnp.exp(-e))


# ----------------------------------------------------------------------------
# Glue
# ----------------------------------------------------------------------------
def _im2col_pos_major(x, kh, kw, stride, oh, ow):
    """x: (B, 1, H, W) -> (oh*ow*B, kh*kw); rows ordered (pos, batch),
    cols ordered (kh, kw) to match the flattened PyTorch conv1 weight."""
    pats = []
    for i in range(oh):
        for j in range(ow):
            pats.append(x[:, 0, i * stride:i * stride + kh,
                             j * stride:j * stride + kw])   # (B, kh, kw)
    p = jnp.stack(pats, axis=0)                             # (oh*ow, B, kh, kw)
    return p.reshape(oh * ow * x.shape[0], kh * kw)


def prepare_params(w1, b1, w2, b2, wfc, bfc):
    """One-time weight re-layout + zero padding (hoisted out of the fwd pass)."""
    c1, cin, kh1, kw1 = w1.shape
    assert cin == 1, "module spec has in_channels=1"
    c2, c1_chk, kh2, kw2 = w2.shape
    assert c1_chk == c1
    c1p = _round_up(c1, 128)   # 200 -> 256
    c2p = _round_up(c2, 128)   # 100 -> 128

    w1_mat = jnp.pad(w1.reshape(c1, cin * kh1 * kw1).T,
                     ((0, 0), (0, c1p - c1)))                       # (256, 256)
    b1_row = jnp.pad(b1.reshape(1, c1), ((0, 0), (0, c1p - c1)))    # (1, 256)
    # conv2 weight (cout, cin, h, w) -> (h, w, cin, cout) -> (36, C1P, C2P)
    w2_r = jnp.transpose(w2, (2, 3, 1, 0)).reshape(kh2 * kw2, c1, c2)
    w2_r = jnp.pad(w2_r, ((0, 0), (0, c1p - c1), (0, c2p - c2)))
    b2_row = jnp.pad(b2.reshape(1, c2), ((0, 0), (0, c2p - c2)))
    wfc_row = jnp.pad(wfc.reshape(1, c2), ((0, 0), (0, c2p - c2)))
    bfc_s = bfc.reshape(1, 1)
    return w1_mat, b1_row, w2_r, b2_row, wfc_row, bfc_s


@jax.jit
def e_forward(x, w1_mat, b1_row, w2_r, b2_row, wfc_row, bfc_s):
    """Fused Pallas forward of E. x: (B, 1, H, W) float32."""
    B, _, H, W = x.shape
    oh1 = (H - K1) // S1 + 1
    ow1 = (W - K1) // S1 + 1
    npos = oh1 * ow1
    assert npos == w2_r.shape[0], "conv2 kernel must cover conv1 output"
    c1p = w1_mat.shape[1]
    c2p = w2_r.shape[2]

    patches = _im2col_pos_major(x, K1, K1, S1, oh1, ow1)    # (npos*B, 256)

    flops = 2 * npos * B * w1_mat.shape[0] * c1p + 2 * npos * B * c1p * c2p
    bytes_accessed = 4 * (patches.size + w1_mat.size + b1_row.size
                          + w2_r.size + b2_row.size + wfc_row.size
                          + bfc_s.size + B)

    vmem_spec = pl.BlockSpec(memory_space=pltpu.MemorySpace.VMEM)
    out = pl.pallas_call(
        _fused_kernel,
        out_shape=jax.ShapeDtypeStruct((B, 1), jnp.float32),
        in_specs=[vmem_spec] * 7,
        out_specs=vmem_spec,
        scratch_shapes=[pltpu.VMEM((npos * B, c1p), jnp.float32)],
        cost_estimate=pl.CostEstimate(flops=int(flops),
                                      transcendentals=int(c1p + B),
                                      bytes_accessed=int(bytes_accessed)),
        compiler_params=pltpu.CompilerParams(
            vmem_limit_bytes=32 * 1024 * 1024),
    )(patches, w1_mat, b1_row, w2_r, b2_row, wfc_row, bfc_s)
    return out


# ----------------------------------------------------------------------------
# Pure-JAX reference (sanity check only)
# ----------------------------------------------------------------------------
def e_forward_ref(x, w1, b1, w2, b2, wfc, bfc):
    dn = ("NCHW", "OIHW", "NCHW")
    y = lax.conv_general_dilated(x, w1, (S1, S1), "VALID", dimension_numbers=dn)
    y = y + b1.reshape(1, -1, 1, 1)
    mean = jnp.mean(y, axis=(0, 2, 3), keepdims=True)
    var = jnp.mean((y - mean) ** 2, axis=(0, 2, 3), keepdims=True)
    y = (y - mean) * lax.rsqrt(var + BN_EPS)
    y = jnp.maximum(y, 0.0)
    y = lax.conv_general_dilated(y, w2, (S2, S2), "VALID", dimension_numbers=dn)
    y = jnp.maximum(y + b2.reshape(1, -1, 1, 1), 0.0)
    y = y.reshape(y.shape[0], -1)
    e = y @ wfc.T + bfc
    return -jax.nn.sigmoid(e)


# ----------------------------------------------------------------------------
if __name__ == "__main__":
    # img_size = 31 so the flattened conv feature has exactly 100 elements
    # (matching nn.Linear(in_features=100, ...)).
    B, IMG = 2, 31

    key = jax.random.PRNGKey(0)
    k_in, k_w1, k_w2, k_fc = jax.random.split(key, 4)

    x = jax.random.normal(k_in, (B, 1, IMG, IMG), dtype=jnp.float32)

    # Deterministic init mirroring E._init_weights (BN gamma=1, beta=0).
    w1 = 0.01 * jax.random.normal(k_w1, (200, 1, K1, K1), dtype=jnp.float32)
    b1 = jnp.zeros((200,), jnp.float32)
    w2 = 0.01 * jax.random.normal(k_w2, (100, 200, K2, K2), dtype=jnp.float32)
    b2 = jnp.zeros((100,), jnp.float32)
    wfc = 0.001 * jax.random.normal(k_fc, (1, 100), dtype=jnp.float32)
    bfc = jnp.zeros((1,), jnp.float32)

    # One-time weight layout / padding (hoisted out of the forward pass).
    params = prepare_params(w1, b1, w2, b2, wfc, bfc)

    out = e_forward(x, *params)
    out = jax.block_until_ready(out)

    ref = e_forward_ref(x, w1, b1, w2, b2, wfc, bfc)
    assert out.shape == (B, 1)
    assert jnp.allclose(out, ref, atol=1e-5, rtol=1e-5), (out, ref)

    print("KERNEL_OK")
</pallas_src>

<mosaic_0001>
module attributes {stable_mosaic.version = 11 : i64} {
  func.func @_fused_kernel(%arg0: memref<72x256xf32, #tpu.memory_space<vmem>>, %arg1: memref<256x256xf32, #tpu.memory_space<vmem>>, %arg2: memref<1x256xf32, #tpu.memory_space<vmem>>, %arg3: memref<36x256x128xf32, #tpu.memory_space<vmem>>, %arg4: memref<1x128xf32, #tpu.memory_space<vmem>>, %arg5: memref<1x128xf32, #tpu.memory_space<vmem>>, %arg6: memref<1x1xf32, #tpu.memory_space<vmem>>, %arg7: memref<2x1xf32, #tpu.memory_space<vmem>>, %arg8: memref<72x256xf32, #tpu.memory_space<vmem>>) attributes {dimension_semantics = [], scalar_prefetch = 0 : i64, scratch_operands = 1 : i64, tpu.core_type = #tpu.core_type<tc>} {
    %c0 = arith.constant 0 : index
    %c0_0 = arith.constant 0 : index
    %0 = vector.load %arg0[%c0, %c0_0] : memref<72x256xf32, #tpu.memory_space<vmem>>, vector<72x256xf32>
    %c0_1 = arith.constant 0 : index
    %c0_2 = arith.constant 0 : index
    %1 = vector.load %arg1[%c0_1, %c0_2] : memref<256x256xf32, #tpu.memory_space<vmem>>, vector<256x256xf32>
    %cst = arith.constant dense<0.000000e+00> : vector<72x256xf32>
    %2 = tpu.matmul %0, %1, %cst {dimension_numbers = #tpu.dot_dimension_numbers<[1], [0], [0], [1], [0, 0, 1, 1], [], []>} : vector<72x256xf32>, vector<256x256xf32>, vector<72x256xf32> -> vector<72x256xf32>
    %c0_3 = arith.constant 0 : index
    %c0_4 = arith.constant 0 : index
    %3 = vector.load %arg2[%c0_3, %c0_4] : memref<1x256xf32, #tpu.memory_space<vmem>>, vector<1x256xf32>
    %4 = vector.broadcast %3 : vector<1x256xf32> to vector<72x256xf32>
    %5 = arith.addf %2, %4 : vector<72x256xf32>
    %cst_5 = arith.constant dense<0.000000e+00> : vector<256xf32>
    %6 = vector.multi_reduction <add>, %5, %cst_5 [0] : vector<72x256xf32> to vector<256xf32>
    %7 = vector.shape_cast %6 : vector<256xf32> to vector<1x256xf32>
    %cst_6 = arith.constant 7.200000e+01 : f32
    %8 = vector.broadcast %cst_6 : f32 to vector<1x256xf32>
    %9 = arith.divf %7, %8 : vector<1x256xf32>
    %10 = vector.broadcast %9 : vector<1x256xf32> to vector<72x256xf32>
    %11 = arith.subf %5, %10 : vector<72x256xf32>
    %12 = arith.mulf %11, %11 : vector<72x256xf32>
    %cst_7 = arith.constant dense<0.000000e+00> : vector<256xf32>
    %13 = vector.multi_reduction <add>, %12, %cst_7 [0] : vector<72x256xf32> to vector<256xf32>
    %14 = vector.shape_cast %13 : vector<256xf32> to vector<1x256xf32>
    %cst_8 = arith.constant 7.200000e+01 : f32
    %15 = vector.broadcast %cst_8 : f32 to vector<1x256xf32>
    %16 = arith.divf %14, %15 : vector<1x256xf32>
    %cst_9 = arith.constant 9.99999974E-6 : f32
    %17 = vector.broadcast %cst_9 : f32 to vector<1x256xf32>
    %18 = arith.addf %16, %17 : vector<1x256xf32>
    %19 = math.rsqrt %18 : vector<1x256xf32>
    %20 = vector.broadcast %19 : vector<1x256xf32> to vector<72x256xf32>
    %21 = arith.mulf %11, %20 : vector<72x256xf32>
    %cst_10 = arith.constant 0.000000e+00 : f32
    %22 = vector.broadcast %cst_10 : f32 to vector<72x256xf32>
    %23 = arith.maximumf %21, %22 : vector<72x256xf32>
    %c0_11 = arith.constant 0 : index
    %c0_12 = arith.constant 0 : index
    %24 = vector.load %arg8[%c0_11, %c0_12] : memref<72x256xf32, #tpu.memory_space<vmem>>, vector<72x256xf32>
    tpu.vector_store %arg8[%c0_11, %c0_12], %23 {strides = array<i32>} : memref<72x256xf32, #tpu.memory_space<vmem>>, vector<72x256xf32>,
    %cst_13 = arith.constant 0.000000e+00 : f32
    %25 = vector.broadcast %cst_13 : f32 to vector<2x128xf32>
    %c0_14 = arith.constant 0 : index
    %c0_15 = arith.constant 0 : index
    %26 = vector.load %arg8[%c0_14, %c0_15] : memref<72x256xf32, #tpu.memory_space<vmem>>, vector<2x256xf32>
    %c0_16 = arith.constant 0 : index
    %c0_17 = arith.constant 0 : index
    %c0_18 = arith.constant 0 : index
    %27 = vector.load %arg3[%c0_16, %c0_17, %c0_18] : memref<36x256x128xf32, #tpu.memory_space<vmem>>, vector<1x256x128xf32>
    %28 = vector.shape_cast %27 : vector<1x256x128xf32> to vector<256x128xf32>
    %cst_19 = arith.constant dense<0.000000e+00> : vector<2x128xf32>
    %29 = tpu.matmul %26, %28, %cst_19 {dimension_numbers = #tpu.dot_dimension_numbers<[1], [0], [0], [1], [0, 0, 1, 1], [], []>} : vector<2x256xf32>, vector<256x128xf32>, vector<2x128xf32> -> vector<2x128xf32>
    %30 = arith.addf %25, %29 : vector<2x128xf32>
    %c2 = arith.constant 2 : index
    %c0_20 = arith.constant 0 : index
    %31 = vector.load %arg8[%c2, %c0_20] : memref<72x256xf32, #tpu.memory_space<vmem>>, vector<2x256xf32>
    %c1 = arith.constant 1 : index
    %c0_21 = arith.constant 0 : index
    %c0_22 = arith.constant 0 : index
    %32 = vector.load %arg3[%c1, %c0_21, %c0_22] : memref<36x256x128xf32, #tpu.memory_space<vmem>>, vector<1x256x128xf32>
    %33 = vector.shape_cast %32 : vector<1x256x128xf32> to vector<256x128xf32>
    %cst_23 = arith.constant dense<0.000000e+00> : vector<2x128xf32>
    %34 = tpu.matmul %31, %33, %cst_23 {dimension_numbers = #tpu.dot_dimension_numbers<[1], [0], [0], [1], [0, 0, 1, 1], [], []>} : vector<2x256xf32>, vector<256x128xf32>, vector<2x128xf32> -> vector<2x128xf32>
    %35 = arith.addf %30, %34 : vector<2x128xf32>
    %c4 = arith.constant 4 : index
    %c0_24 = arith.constant 0 : index
    %36 = vector.load %arg8[%c4, %c0_24] : memref<72x256xf32, #tpu.memory_space<vmem>>, vector<2x256xf32>
    %c2_25 = arith.constant 2 : index
    %c0_26 = arith.constant 0 : index
    %c0_27 = arith.constant 0 : index
    %37 = vector.load %arg3[%c2_25, %c0_26, %c0_27] : memref<36x256x128xf32, #tpu.memory_space<vmem>>, vector<1x256x128xf32>
    %38 = vector.shape_cast %37 : vector<1x256x128xf32> to vector<256x128xf32>
    %cst_28 = arith.constant dense<0.000000e+00> : vector<2x128xf32>
    %39 = tpu.matmul %36, %38, %cst_28 {dimension_numbers = #tpu.dot_dimension_numbers<[1], [0], [0], [1], [0, 0, 1, 1], [], []>} : vector<2x256xf32>, vector<256x128xf32>, vector<2x128xf32> -> vector<2x128xf32>
    %40 = arith.addf %35, %39 : vector<2x128xf32>
    %c6 = arith.constant 6 : index
    %c0_29 = arith.constant 0 : index
    %41 = vector.load %arg8[%c6, %c0_29] : memref<72x256xf32, #tpu.memory_space<vmem>>, vector<2x256xf32>
    %c3 = arith.constant 3 : index
    %c0_30 = arith.constant 0 : index
    %c0_31 = arith.constant 0 : index
    %42 = vector.load %arg3[%c3, %c0_30, %c0_31] : memref<36x256x128xf32, #tpu.memory_space<vmem>>, vector<1x256x128xf32>
    %43 = vector.shape_cast %42 : vector<1x256x128xf32> to vector<256x128xf32>
    %cst_32 = arith.constant dense<0.000000e+00> : vector<2x128xf32>
    %44 = tpu.matmul %41, %43, %cst_32 {dimension_numbers = #tpu.dot_dimension_numbers<[1], [0], [0], [1], [0, 0, 1, 1], [], []>} : vector<2x256xf32>, vector<256x128xf32>, vector<2x128xf32> -> vector<2x128xf32>
    %45 = arith.addf %40, %44 : vector<2x128xf32>
    %c8 = arith.constant 8 : index
    %c0_33 = arith.constant 0 : index
    %46 = vector.load %arg8[%c8, %c0_33] : memref<72x256xf32, #tpu.memory_space<vmem>>, vector<2x256xf32>
    %c4_34 = arith.constant 4 : index
    %c0_35 = arith.constant 0 : index
    %c0_36 = arith.constant 0 : index
    %47 = vector.load %arg3[%c4_34, %c0_35, %c0_36] : memref<36x256x128xf32, #tpu.memory_space<vmem>>, vector<1x256x128xf32>
    %48 = vector.shape_cast %47 : vector<1x256x128xf32> to vector<256x128xf32>
    %cst_37 = arith.constant dense<0.000000e+00> : vector<2x128xf32>
    %49 = tpu.matmul %46, %48, %cst_37 {dimension_numbers = #tpu.dot_dimension_numbers<[1], [0], [0], [1], [0, 0, 1, 1], [], []>} : vector<2x256xf32>, vector<256x128xf32>, vector<2x128xf32> -> vector<2x128xf32>
    %50 = arith.addf %45, %49 : vector<2x128xf32>
    %c10 = arith.constant 10 : index
    %c0_38 = arith.constant 0 : index
    %51 = vector.load %arg8[%c10, %c0_38] : memref<72x256xf32, #tpu.memory_space<vmem>>, vector<2x256xf32>
    %c5 = arith.constant 5 : index
    %c0_39 = arith.constant 0 : index
    %c0_40 = arith.constant 0 : index
    %52 = vector.load %arg3[%c5, %c0_39, %c0_40] : memref<36x256x128xf32, #tpu.memory_space<vmem>>, vector<1x256x128xf32>
    %53 = vector.shape_cast %52 : vector<1x256x128xf32> to vector<256x128xf32>
    %cst_41 = arith.constant dense<0.000000e+00> : vector<2x128xf32>
    %54 = tpu.matmul %51, %53, %cst_41 {dimension_numbers = #tpu.dot_dimension_numbers<[1], [0], [0], [1], [0, 0, 1, 1], [], []>} : vector<2x256xf32>, vector<256x128xf32>, vector<2x128xf32> -> vector<2x128xf32>
    %55 = arith.addf %50, %54 : vector<2x128xf32>
    %c12 = arith.constant 12 : index
    %c0_42 = arith.constant 0 : index
    %56 = vector.load %arg8[%c12, %c0_42] : memref<72x256xf32, #tpu.memory_space<vmem>>, vector<2x256xf32>
    %c6_43 = arith.constant 6 : index
    %c0_44 = arith.constant 0 : index
    %c0_45 = arith.constant 0 : index
    %57 = vector.load %arg3[%c6_43, %c0_44, %c0_45] : memref<36x256x128xf32, #tpu.memory_space<vmem>>, vector<1x256x128xf32>
    %58 = vector.shape_cast %57 : vector<1x256x128xf32> to vector<256x128xf32>
    %cst_46 = arith.constant dense<0.000000e+00> : vector<2x128xf32>
    %59 = tpu.matmul %56, %58, %cst_46 {dimension_numbers = #tpu.dot_dimension_numbers<[1], [0], [0], [1], [0, 0, 1, 1], [], []>} : vector<2x256xf32>, vector<256x128xf32>, vector<2x128xf32> -> vector<2x128xf32>
    %60 = arith.addf %55, %59 : vector<2x128xf32>
    %c14 = arith.constant 14 : index
    %c0_47 = arith.constant 0 : index
    %61 = vector.load %arg8[%c14, %c0_47] : memref<72x256xf32, #tpu.memory_space<vmem>>, vector<2x256xf32>
    %c7 = arith.constant 7 : index
    %c0_48 = arith.constant 0 : index
    %c0_49 = arith.constant 0 : index
    %62 = vector.load %arg3[%c7, %c0_48, %c0_49] : memref<36x256x128xf32, #tpu.memory_space<vmem>>, vector<1x256x128xf32>
    %63 = vector.shape_cast %62 : vector<1x256x128xf32> to vector<256x128xf32>
    %cst_50 = arith.constant dense<0.000000e+00> : vector<2x128xf32>
    %64 = tpu.matmul %61, %63, %cst_50 {dimension_numbers = #tpu.dot_dimension_numbers<[1], [0], [0], [1], [0, 0, 1, 1], [], []>} : vector<2x256xf32>, vector<256x128xf32>, vector<2x128xf32> -> vector<2x128xf32>
    %65 = arith.addf %60, %64 : vector<2x128xf32>
    %c16 = arith.constant 16 : index
    %c0_51 = arith.constant 0 : index
    %66 = vector.load %arg8[%c16, %c0_51] : memref<72x256xf32, #tpu.memory_space<vmem>>, vector<2x256xf32>
    %c8_52 = arith.constant 8 : index
    %c0_53 = arith.constant 0 : index
    %c0_54 = arith.constant 0 : index
    %67 = vector.load %arg3[%c8_52, %c0_53, %c0_54] : memref<36x256x128xf32, #tpu.memory_space<vmem>>, vector<1x256x128xf32>
    %68 = vector.shape_cast %67 : vector<1x256x128xf32> to vector<256x128xf32>
    %cst_55 = arith.constant dense<0.000000e+00> : vector<2x128xf32>
    %69 = tpu.matmul %66, %68, %cst_55 {dimension_numbers = #tpu.dot_dimension_numbers<[1], [0], [0], [1], [0, 0, 1, 1], [], []>} : vector<2x256xf32>, vector<256x128xf32>, vector<2x128xf32> -> vector<2x128xf32>
    %70 = arith.addf %65, %69 : vector<2x128xf32>
    %c18 = arith.constant 18 : index
    %c0_56 = arith.constant 0 : index
    %71 = vector.load %arg8[%c18, %c0_56] : memref<72x256xf32, #tpu.memory_space<vmem>>, vector<2x256xf32>
    %c9 = arith.constant 9 : index
    %c0_57 = arith.constant 0 : index
    %c0_58 = arith.constant 0 : index
    %72 = vector.load %arg3[%c9, %c0_57, %c0_58] : memref<36x256x128xf32, #tpu.memory_space<vmem>>, vector<1x256x128xf32>
    %73 = vector.shape_cast %72 : vector<1x256x128xf32> to vector<256x128xf32>
    %cst_59 = arith.constant dense<0.000000e+00> : vector<2x128xf32>
    %74 = tpu.matmul %71, %73, %cst_59 {dimension_numbers = #tpu.dot_dimension_numbers<[1], [0], [0], [1], [0, 0, 1, 1], [], []>} : vector<2x256xf32>, vector<256x128xf32>, vector<2x128xf32> -> vector<2x128xf32>
    %75 = arith.addf %70, %74 : vector<2x128xf32>
    %c20 = arith.constant 20 : index
    %c0_60 = arith.constant 0 : index
    %76 = vector.load %arg8[%c20, %c0_60] : memref<72x256xf32, #tpu.memory_space<vmem>>, vector<2x256xf32>
    %c10_61 = arith.constant 10 : index
    %c0_62 = arith.constant 0 : index
    %c0_63 = arith.constant 0 : index
    %77 = vector.load %arg3[%c10_61, %c0_62, %c0_63] : memref<36x256x128xf32, #tpu.memory_space<vmem>>, vector<1x256x128xf32>
    %78 = vector.shape_cast %77 : vector<1x256x128xf32> to vector<256x128xf32>
    %cst_64 = arith.constant dense<0.000000e+00> : vector<2x128xf32>
    %79 = tpu.matmul %76, %78, %cst_64 {dimension_numbers = #tpu.dot_dimension_numbers<[1], [0], [0], [1], [0, 0, 1, 1], [], []>} : vector<2x256xf32>, vector<256x128xf32>, vector<2x128xf32> -> vector<2x128xf32>
    %80 = arith.addf %75, %79 : vector<2x128xf32>
    %c22 = arith.constant 22 : index
    %c0_65 = arith.constant 0 : index
    %81 = vector.load %arg8[%c22, %c0_65] : memref<72x256xf32, #tpu.memory_space<vmem>>, vector<2x256xf32>
    %c11 = arith.constant 11 : index
    %c0_66 = arith.constant 0 : index
    %c0_67 = arith.constant 0 : index
    %82 = vector.load %arg3[%c11, %c0_66, %c0_67] : memref<36x256x128xf32, #tpu.memory_space<vmem>>, vector<1x256x128xf32>
    %83 = vector.shape_cast %82 : vector<1x256x128xf32> to vector<256x128xf32>
    %cst_68 = arith.constant dense<0.000000e+00> : vector<2x128xf32>
    %84 = tpu.matmul %81, %83, %cst_68 {dimension_numbers = #tpu.dot_dimension_numbers<[1], [0], [0], [1], [0, 0, 1, 1], [], []>} : vector<2x256xf32>, vector<256x128xf32>, vector<2x128xf32> -> vector<2x128xf32>
    %85 = arith.addf %80, %84 : vector<2x128xf32>
    %c24 = arith.constant 24 : index
    %c0_69 = arith.constant 0 : index
    %86 = vector.load %arg8[%c24, %c0_69] : memref<72x256xf32, #tpu.memory_space<vmem>>, vector<2x256xf32>
    %c12_70 = arith.constant 12 : index
    %c0_71 = arith.constant 0 : index
    %c0_72 = arith.constant 0 : index
    %87 = vector.load %arg3[%c12_70, %c0_71, %c0_72] : memref<36x256x128xf32, #tpu.memory_space<vmem>>, vector<1x256x128xf32>
    %88 = vector.shape_cast %87 : vector<1x256x128xf32> to vector<256x128xf32>
    %cst_73 = arith.constant dense<0.000000e+00> : vector<2x128xf32>
    %89 = tpu.matmul %86, %88, %cst_73 {dimension_numbers = #tpu.dot_dimension_numbers<[1], [0], [0], [1], [0, 0, 1, 1], [], []>} : vector<2x256xf32>, vector<256x128xf32>, vector<2x128xf32> -> vector<2x128xf32>
    %90 = arith.addf %85, %89 : vector<2x128xf32>
    %c26 = arith.constant 26 : index
    %c0_74 = arith.constant 0 : index
    %91 = vector.load %arg8[%c26, %c0_74] : memref<72x256xf32, #tpu.memory_space<vmem>>, vector<2x256xf32>
    %c13 = arith.constant 13 : index
    %c0_75 = arith.constant 0 : index
    %c0_76 = arith.constant 0 : index
    %92 = vector.load %arg3[%c13, %c0_75, %c0_76] : memref<36x256x128xf32, #tpu.memory_space<vmem>>, vector<1x256x128xf32>
    %93 = vector.shape_cast %92 : vector<1x256x128xf32> to vector<256x128xf32>
    %cst_77 = arith.constant dense<0.000000e+00> : vector<2x128xf32>
    %94 = tpu.matmul %91, %93, %cst_77 {dimension_numbers = #tpu.dot_dimension_numbers<[1], [0], [0], [1], [0, 0, 1, 1], [], []>} : vector<2x256xf32>, vector<256x128xf32>, vector<2x128xf32> -> vector<2x128xf32>
    %95 = arith.addf %90, %94 : vector<2x128xf32>
    %c28 = arith.constant 28 : index
    %c0_78 = arith.constant 0 : index
    %96 = vector.load %arg8[%c28, %c0_78] : memref<72x256xf32, #tpu.memory_space<vmem>>, vector<2x256xf32>
    %c14_79 = arith.constant 14 : index
    %c0_80 = arith.constant 0 : index
    %c0_81 = arith.constant 0 : index
    %97 = vector.load %arg3[%c14_79, %c0_80, %c0_81] : memref<36x256x128xf32, #tpu.memory_space<vmem>>, vector<1x256x128xf32>
    %98 = vector.shape_cast %97 : vector<1x256x128xf32> to vector<256x128xf32>
    %cst_82 = arith.constant dense<0.000000e+00> : vector<2x128xf32>
    %99 = tpu.matmul %96, %98, %cst_82 {dimension_numbers = #tpu.dot_dimension_numbers<[1], [0], [0], [1], [0, 0, 1, 1], [], []>} : vector<2x256xf32>, vector<256x128xf32>, vector<2x128xf32> -> vector<2x128xf32>
    %100 = arith.addf %95, %99 : vector<2x128xf32>
    %c30 = arith.constant 30 : index
    %c0_83 = arith.constant 0 : index
    %101 = vector.load %arg8[%c30, %c0_83] : memref<72x256xf32, #tpu.memory_space<vmem>>, vector<2x256xf32>
    %c15 = arith.constant 15 : index
    %c0_84 = arith.constant 0 : index
    %c0_85 = arith.constant 0 : index
    %102 = vector.load %arg3[%c15, %c0_84, %c0_85] : memref<36x256x128xf32, #tpu.memory_space<vmem>>, vector<1x256x128xf32>
    %103 = vector.shape_cast %102 : vector<1x256x128xf32> to vector<256x128xf32>
    %cst_86 = arith.constant dense<0.000000e+00> : vector<2x128xf32>
    %104 = tpu.matmul %101, %103, %cst_86 {dimension_numbers = #tpu.dot_dimension_numbers<[1], [0], [0], [1], [0, 0, 1, 1], [], []>} : vector<2x256xf32>, vector<256x128xf32>, vector<2x128xf32> -> vector<2x128xf32>
    %105 = arith.addf %100, %104 : vector<2x128xf32>
    %c32 = arith.constant 32 : index
    %c0_87 = arith.constant 0 : index
    %106 = vector.load %arg8[%c32, %c0_87] : memref<72x256xf32, #tpu.memory_space<vmem>>, vector<2x256xf32>
    %c16_88 = arith.constant 16 : index
    %c0_89 = arith.constant 0 : index
    %c0_90 = arith.constant 0 : index
    %107 = vector.load %arg3[%c16_88, %c0_89, %c0_90] : memref<36x256x128xf32, #tpu.memory_space<vmem>>, vector<1x256x128xf32>
    %108 = vector.shape_cast %107 : vector<1x256x128xf32> to vector<256x128xf32>
    %cst_91 = arith.constant dense<0.000000e+00> : vector<2x128xf32>
    %109 = tpu.matmul %106, %108, %cst_91 {dimension_numbers = #tpu.dot_dimension_numbers<[1], [0], [0], [1], [0, 0, 1, 1], [], []>} : vector<2x256xf32>, vector<256x128xf32>, vector<2x128xf32> -> vector<2x128xf32>
    %110 = arith.addf %105, %109 : vector<2x128xf32>
    %c34 = arith.constant 34 : index
    %c0_92 = arith.constant 0 : index
    %111 = vector.load %arg8[%c34, %c0_92] : memref<72x256xf32, #tpu.memory_space<vmem>>, vector<2x256xf32>
    %c17 = arith.constant 17 : index
    %c0_93 = arith.constant 0 : index
    %c0_94 = arith.constant 0 : index
    %112 = vector.load %arg3[%c17, %c0_93, %c0_94] : memref<36x256x128xf32, #tpu.memory_space<vmem>>, vector<1x256x128xf32>
    %113 = vector.shape_cast %112 : vector<1x256x128xf32> to vector<256x128xf32>
    %cst_95 = arith.constant dense<0.000000e+00> : vector<2x128xf32>
    %114 = tpu.matmul %111, %113, %cst_95 {dimension_numbers = #tpu.dot_dimension_numbers<[1], [0], [0], [1], [0, 0, 1, 1], [], []>} : vector<2x256xf32>, vector<256x128xf32>, vector<2x128xf32> -> vector<2x128xf32>
    %115 = arith.addf %110, %114 : vector<2x128xf32>
    %c36 = arith.constant 36 : index
    %c0_96 = arith.constant 0 : index
    %116 = vector.load %arg8[%c36, %c0_96] : memref<72x256xf32, #tpu.memory_space<vmem>>, vector<2x256xf32>
    %c18_97 = arith.constant 18 : index
    %c0_98 = arith.constant 0 : index
    %c0_99 = arith.constant 0 : index
    %117 = vector.load %arg3[%c18_97, %c0_98, %c0_99] : memref<36x256x128xf32, #tpu.memory_space<vmem>>, vector<1x256x128xf32>
    %118 = vector.shape_cast %117 : vector<1x256x128xf32> to vector<256x128xf32>
    %cst_100 = arith.constant dense<0.000000e+00> : vector<2x128xf32>
    %119 = tpu.matmul %116, %118, %cst_100 {dimension_numbers = #tpu.dot_dimension_numbers<[1], [0], [0], [1], [0, 0, 1, 1], [], []>} : vector<2x256xf32>, vector<256x128xf32>, vector<2x128xf32> -> vector<2x128xf32>
    %120 = arith.addf %115, %119 : vector<2x128xf32>
    %c38 = arith.constant 38 : index
    %c0_101 = arith.constant 0 : index
    %121 = vector.load %arg8[%c38, %c0_101] : memref<72x256xf32, #tpu.memory_space<vmem>>, vector<2x256xf32>
    %c19 = arith.constant 19 : index
    %c0_102 = arith.constant 0 : index
    %c0_103 = arith.constant 0 : index
    %122 = vector.load %arg3[%c19, %c0_102, %c0_103] : memref<36x256x128xf32, #tpu.memory_space<vmem>>, vector<1x256x128xf32>
    %123 = vector.shape_cast %122 : vector<1x256x128xf32> to vector<256x128xf32>
    %cst_104 = arith.constant dense<0.000000e+00> : vector<2x128xf32>
    %124 = tpu.matmul %121, %123, %cst_104 {dimension_numbers = #tpu.dot_dimension_numbers<[1], [0], [0], [1], [0, 0, 1, 1], [], []>} : vector<2x256xf32>, vector<256x128xf32>, vector<2x128xf32> -> vector<2x128xf32>
    %125 = arith.addf %120, %124 : vector<2x128xf32>
    %c40 = arith.constant 40 : index
    %c0_105 = arith.constant 0 : index
    %126 = vector.load %arg8[%c40, %c0_105] : memref<72x256xf32, #tpu.memory_space<vmem>>, vector<2x256xf32>
    %c20_106 = arith.constant 20 : index
    %c0_107 = arith.constant 0 : index
    %c0_108 = arith.constant 0 : index
    %127 = vector.load %arg3[%c20_106, %c0_107, %c0_108] : memref<36x256x128xf32, #tpu.memory_space<vmem>>, vector<1x256x128xf32>
    %128 = vector.shape_cast %127 : vector<1x256x128xf32> to vector<256x128xf32>
    %cst_109 = arith.constant dense<0.000000e+00> : vector<2x128xf32>
    %129 = tpu.matmul %126, %128, %cst_109 {dimension_numbers = #tpu.dot_dimension_numbers<[1], [0], [0], [1], [0, 0, 1, 1], [], []>} : vector<2x256xf32>, vector<256x128xf32>, vector<2x128xf32> -> vector<2x128xf32>
    %130 = arith.addf %125, %129 : vector<2x128xf32>
    %c42 = arith.constant 42 : index
    %c0_110 = arith.constant 0 : index
    %131 = vector.load %arg8[%c42, %c0_110] : memref<72x256xf32, #tpu.memory_space<vmem>>, vector<2x256xf32>
    %c21 = arith.constant 21 : index
    %c0_111 = arith.constant 0 : index
    %c0_112 = arith.constant 0 : index
    %132 = vector.load %arg3[%c21, %c0_111, %c0_112] : memref<36x256x128xf32, #tpu.memory_space<vmem>>, vector<1x256x128xf32>
    %133 = vector.shape_cast %132 : vector<1x256x128xf32> to vector<256x128xf32>
    %cst_113 = arith.constant dense<0.000000e+00> : vector<2x128xf32>
    %134 = tpu.matmul %131, %133, %cst_113 {dimension_numbers = #tpu.dot_dimension_numbers<[1], [0], [0], [1], [0, 0, 1, 1], [], []>} : vector<2x256xf32>, vector<256x128xf32>, vector<2x128xf32> -> vector<2x128xf32>
    %135 = arith.addf %130, %134 : vector<2x128xf32>
    %c44 = arith.constant 44 : index
    %c0_114 = arith.constant 0 : index
    %136 = vector.load %arg8[%c44, %c0_114] : memref<72x256xf32, #tpu.memory_space<vmem>>, vector<2x256xf32>
    %c22_115 = arith.constant 22 : index
    %c0_116 = arith.constant 0 : index
    %c0_117 = arith.constant 0 : index
    %137 = vector.load %arg3[%c22_115, %c0_116, %c0_117] : memref<36x256x128xf32, #tpu.memory_space<vmem>>, vector<1x256x128xf32>
    %138 = vector.shape_cast %137 : vector<1x256x128xf32> to vector<256x128xf32>
    %cst_118 = arith.constant dense<0.000000e+00> : vector<2x128xf32>
    %139 = tpu.matmul %136, %138, %cst_118 {dimension_numbers = #tpu.dot_dimension_numbers<[1], [0], [0], [1], [0, 0, 1, 1], [], []>} : vector<2x256xf32>, vector<256x128xf32>, vector<2x128xf32> -> vector<2x128xf32>
    %140 = arith.addf %135, %139 : vector<2x128xf32>
    %c46 = arith.constant 46 : index
    %c0_119 = arith.constant 0 : index
    %141 = vector.load %arg8[%c46, %c0_119] : memref<72x256xf32, #tpu.memory_space<vmem>>, vector<2x256xf32>
    %c23 = arith.constant 23 : index
    %c0_120 = arith.constant 0 : index
    %c0_121 = arith.constant 0 : index
    %142 = vector.load %arg3[%c23, %c0_120, %c0_121] : memref<36x256x128xf32, #tpu.memory_space<vmem>>, vector<1x256x128xf32>
    %143 = vector.shape_cast %142 : vector<1x256x128xf32> to vector<256x128xf32>
    %cst_122 = arith.constant dense<0.000000e+00> : vector<2x128xf32>
    %144 = tpu.matmul %141, %143, %cst_122 {dimension_numbers = #tpu.dot_dimension_numbers<[1], [0], [0], [1], [0, 0, 1, 1], [], []>} : vector<2x256xf32>, vector<256x128xf32>, vector<2x128xf32> -> vector<2x128xf32>
    %145 = arith.addf %140, %144 : vector<2x128xf32>
    %c48 = arith.constant 48 : index
    %c0_123 = arith.constant 0 : index
    %146 = vector.load %arg8[%c48, %c0_123] : memref<72x256xf32, #tpu.memory_space<vmem>>, vector<2x256xf32>
    %c24_124 = arith.constant 24 : index
    %c0_125 = arith.constant 0 : index
    %c0_126 = arith.constant 0 : index
    %147 = vector.load %arg3[%c24_124, %c0_125, %c0_126] : memref<36x256x128xf32, #tpu.memory_space<vmem>>, vector<1x256x128xf32>
    %148 = vector.shape_cast %147 : vector<1x256x128xf32> to vector<256x128xf32>
    %cst_127 = arith.constant dense<0.000000e+00> : vector<2x128xf32>
    %149 = tpu.matmul %146, %148, %cst_127 {dimension_numbers = #tpu.dot_dimension_numbers<[1], [0], [0], [1], [0, 0, 1, 1], [], []>} : vector<2x256xf32>, vector<256x128xf32>, vector<2x128xf32> -> vector<2x128xf32>
    %150 = arith.addf %145, %149 : vector<2x128xf32>
    %c50 = arith.constant 50 : index
    %c0_128 = arith.constant 0 : index
    %151 = vector.load %arg8[%c50, %c0_128] : memref<72x256xf32, #tpu.memory_space<vmem>>, vector<2x256xf32>
    %c25 = arith.constant 25 : index
    %c0_129 = arith.constant 0 : index
    %c0_130 = arith.constant 0 : index
    %152 = vector.load %arg3[%c25, %c0_129, %c0_130] : memref<36x256x128xf32, #tpu.memory_space<vmem>>, vector<1x256x128xf32>
    %153 = vector.shape_cast %152 : vector<1x256x128xf32> to vector<256x128xf32>
    %cst_131 = arith.constant dense<0.000000e+00> : vector<2x128xf32>
    %154 = tpu.matmul %151, %153, %cst_131 {dimension_numbers = #tpu.dot_dimension_numbers<[1], [0], [0], [1], [0, 0, 1, 1], [], []>} : vector<2x256xf32>, vector<256x128xf32>, vector<2x128xf32> -> vector<2x128xf32>
    %155 = arith.addf %150, %154 : vector<2x128xf32>
    %c52 = arith.constant 52 : index
    %c0_132 = arith.constant 0 : index
    %156 = vector.load %arg8[%c52, %c0_132] : memref<72x256xf32, #tpu.memory_space<vmem>>, vector<2x256xf32>
    %c26_133 = arith.constant 26 : index
    %c0_134 = arith.constant 0 : index
    %c0_135 = arith.constant 0 : index
    %157 = vector.load %arg3[%c26_133, %c0_134, %c0_135] : memref<36x256x128xf32, #tpu.memory_space<vmem>>, vector<1x256x128xf32>
    %158 = vector.shape_cast %157 : vector<1x256x128xf32> to vector<256x128xf32>
    %cst_136 = arith.constant dense<0.000000e+00> : vector<2x128xf32>
    %159 = tpu.matmul %156, %158, %cst_136 {dimension_numbers = #tpu.dot_dimension_numbers<[1], [0], [0], [1], [0, 0, 1, 1], [], []>} : vector<2x256xf32>, vector<256x128xf32>, vector<2x128xf32> -> vector<2x128xf32>
    %160 = arith.addf %155, %159 : vector<2x128xf32>
    %c54 = arith.constant 54 : index
    %c0_137 = arith.constant 0 : index
    %161 = vector.load %arg8[%c54, %c0_137] : memref<72x256xf32, #tpu.memory_space<vmem>>, vector<2x256xf32>
    %c27 = arith.constant 27 : index
    %c0_138 = arith.constant 0 : index
    %c0_139 = arith.constant 0 : index
    %162 = vector.load %arg3[%c27, %c0_138, %c0_139] : memref<36x256x128xf32, #tpu.memory_space<vmem>>, vector<1x256x128xf32>
    %163 = vector.shape_cast %162 : vector<1x256x128xf32> to vector<256x128xf32>
    %cst_140 = arith.constant dense<0.000000e+00> : vector<2x128xf32>
    %164 = tpu.matmul %161, %163, %cst_140 {dimension_numbers = #tpu.dot_dimension_numbers<[1], [0], [0], [1], [0, 0, 1, 1], [], []>} : vector<2x256xf32>, vector<256x128xf32>, vector<2x128xf32> -> vector<2x128xf32>
    %165 = arith.addf %160, %164 : vector<2x128xf32>
    %c56 = arith.constant 56 : index
    %c0_141 = arith.constant 0 : index
    %166 = vector.load %arg8[%c56, %c0_141] : memref<72x256xf32, #tpu.memory_space<vmem>>, vector<2x256xf32>
    %c28_142 = arith.constant 28 : index
    %c0_143 = arith.constant 0 : index
    %c0_144 = arith.constant 0 : index
    %167 = vector.load %arg3[%c28_142, %c0_143, %c0_144] : memref<36x256x128xf32, #tpu.memory_space<vmem>>, vector<1x256x128xf32>
    %168 = vector.shape_cast %167 : vector<1x256x128xf32> to vector<256x128xf32>
    %cst_145 = arith.constant dense<0.000000e+00> : vector<2x128xf32>
    %169 = tpu.matmul %166, %168, %cst_145 {dimension_numbers = #tpu.dot_dimension_numbers<[1], [0], [0], [1], [0, 0, 1, 1], [], []>} : vector<2x256xf32>, vector<256x128xf32>, vector<2x128xf32> -> vector<2x128xf32>
    %170 = arith.addf %165, %169 : vector<2x128xf32>
    %c58 = arith.constant 58 : index
    %c0_146 = arith.constant 0 : index
    %171 = vector.load %arg8[%c58, %c0_146] : memref<72x256xf32, #tpu.memory_space<vmem>>, vector<2x256xf32>
    %c29 = arith.constant 29 : index
    %c0_147 = arith.constant 0 : index
    %c0_148 = arith.constant 0 : index
    %172 = vector.load %arg3[%c29, %c0_147, %c0_148] : memref<36x256x128xf32, #tpu.memory_space<vmem>>, vector<1x256x128xf32>
    %173 = vector.shape_cast %172 : vector<1x256x128xf32> to vector<256x128xf32>
    %cst_149 = arith.constant dense<0.000000e+00> : vector<2x128xf32>
    %174 = tpu.matmul %171, %173, %cst_149 {dimension_numbers = #tpu.dot_dimension_numbers<[1], [0], [0], [1], [0, 0, 1, 1], [], []>} : vector<2x256xf32>, vector<256x128xf32>, vector<2x128xf32> -> vector<2x128xf32>
    %175 = arith.addf %170, %174 : vector<2x128xf32>
    %c60 = arith.constant 60 : index
    %c0_150 = arith.constant 0 : index
    %176 = vector.load %arg8[%c60, %c0_150] : memref<72x256xf32, #tpu.memory_space<vmem>>, vector<2x256xf32>
    %c30_151 = arith.constant 30 : index
    %c0_152 = arith.constant 0 : index
    %c0_153 = arith.constant 0 : index
    %177 = vector.load %arg3[%c30_151, %c0_152, %c0_153] : memref<36x256x128xf32, #tpu.memory_space<vmem>>, vector<1x256x128xf32>
    %178 = vector.shape_cast %177 : vector<1x256x128xf32> to vector<256x128xf32>
    %cst_154 = arith.constant dense<0.000000e+00> : vector<2x128xf32>
    %179 = tpu.matmul %176, %178, %cst_154 {dimension_numbers = #tpu.dot_dimension_numbers<[1], [0], [0], [1], [0, 0, 1, 1], [], []>} : vector<2x256xf32>, vector<256x128xf32>, vector<2x128xf32> -> vector<2x128xf32>
    %180 = arith.addf %175, %179 : vector<2x128xf32>
    %c62 = arith.constant 62 : index
    %c0_155 = arith.constant 0 : index
    %181 = vector.load %arg8[%c62, %c0_155] : memref<72x256xf32, #tpu.memory_space<vmem>>, vector<2x256xf32>
    %c31 = arith.constant 31 : index
    %c0_156 = arith.constant 0 : index
    %c0_157 = arith.constant 0 : index
    %182 = vector.load %arg3[%c31, %c0_156, %c0_157] : memref<36x256x128xf32, #tpu.memory_space<vmem>>, vector<1x256x128xf32>
    %183 = vector.shape_cast %182 : vector<1x256x128xf32> to vector<256x128xf32>
    %cst_158 = arith.constant dense<0.000000e+00> : vector<2x128xf32>
    %184 = tpu.matmul %181, %183, %cst_158 {dimension_numbers = #tpu.dot_dimension_numbers<[1], [0], [0], [1], [0, 0, 1, 1], [], []>} : vector<2x256xf32>, vector<256x128xf32>, vector<2x128xf32> -> vector<2x128xf32>
    %185 = arith.addf %180, %184 : vector<2x128xf32>
    %c64 = arith.constant 64 : index
    %c0_159 = arith.constant 0 : index
    %186 = vector.load %arg8[%c64, %c0_159] : memref<72x256xf32, #tpu.memory_space<vmem>>, vector<2x256xf32>
    %c32_160 = arith.constant 32 : index
    %c0_161 = arith.constant 0 : index
    %c0_162 = arith.constant 0 : index
    %187 = vector.load %arg3[%c32_160, %c0_161, %c0_162] : memref<36x256x128xf32, #tpu.memory_space<vmem>>, vector<1x256x128xf32>
    %188 = vector.shape_cast %187 : vector<1x256x128xf32> to vector<256x128xf32>
    %cst_163 = arith.constant dense<0.000000e+00> : vector<2x128xf32>
    %189 = tpu.matmul %186, %188, %cst_163 {dimension_numbers = #tpu.dot_dimension_numbers<[1], [0], [0], [1], [0, 0, 1, 1], [], []>} : vector<2x256xf32>, vector<256x128xf32>, vector<2x128xf32> -> vector<2x128xf32>
    %190 = arith.addf %185, %189 : vector<2x128xf32>
    %c66 = arith.constant 66 : index
    %c0_164 = arith.constant 0 : index
    %191 = vector.load %arg8[%c66, %c0_164] : memref<72x256xf32, #tpu.memory_space<vmem>>, vector<2x256xf32>
    %c33 = arith.constant 33 : index
    %c0_165 = arith.constant 0 : index
    %c0_166 = arith.constant 0 : index
    %192 = vector.load %arg3[%c33, %c0_165, %c0_166] : memref<36x256x128xf32, #tpu.memory_space<vmem>>, vector<1x256x128xf32>
    %193 = vector.shape_cast %192 : vector<1x256x128xf32> to vector<256x128xf32>
    %cst_167 = arith.constant dense<0.000000e+00> : vector<2x128xf32>
    %194 = tpu.matmul %191, %193, %cst_167 {dimension_numbers = #tpu.dot_dimension_numbers<[1], [0], [0], [1], [0, 0, 1, 1], [], []>} : vector<2x256xf32>, vector<256x128xf32>, vector<2x128xf32> -> vector<2x128xf32>
    %195 = arith.addf %190, %194 : vector<2x128xf32>
    %c68 = arith.constant 68 : index
    %c0_168 = arith.constant 0 : index
    %196 = vector.load %arg8[%c68, %c0_168] : memref<72x256xf32, #tpu.memory_space<vmem>>, vector<2x256xf32>
    %c34_169 = arith.constant 34 : index
    %c0_170 = arith.constant 0 : index
    %c0_171 = arith.constant 0 : index
    %197 = vector.load %arg3[%c34_169, %c0_170, %c0_171] : memref<36x256x128xf32, #tpu.memory_space<vmem>>, vector<1x256x128xf32>
    %198 = vector.shape_cast %197 : vector<1x256x128xf32> to vector<256x128xf32>
    %cst_172 = arith.constant dense<0.000000e+00> : vector<2x128xf32>
    %199 = tpu.matmul %196, %198, %cst_172 {dimension_numbers = #tpu.dot_dimension_numbers<[1], [0], [0], [1], [0, 0, 1, 1], [], []>} : vector<2x256xf32>, vector<256x128xf32>, vector<2x128xf32> -> vector<2x128xf32>
    %200 = arith.addf %195, %199 : vector<2x128xf32>
    %c70 = arith.constant 70 : index
    %c0_173 = arith.constant 0 : index
    %201 = vector.load %arg8[%c70, %c0_173] : memref<72x256xf32, #tpu.memory_space<vmem>>, vector<2x256xf32>
    %c35 = arith.constant 35 : index
    %c0_174 = arith.constant 0 : index
    %c0_175 = arith.constant 0 : index
    %202 = vector.load %arg3[%c35, %c0_174, %c0_175] : memref<36x256x128xf32, #tpu.memory_space<vmem>>, vector<1x256x128xf32>
    %203 = vector.shape_cast %202 : vector<1x256x128xf32> to vector<256x128xf32>
    %cst_176 = arith.constant dense<0.000000e+00> : vector<2x128xf32>
    %204 = tpu.matmul %201, %203, %cst_176 {dimension_numbers = #tpu.dot_dimension_numbers<[1], [0], [0], [1], [0, 0, 1, 1], [], []>} : vector<2x256xf32>, vector<256x128xf32>, vector<2x128xf32> -> vector<2x128xf32>
    %205 = arith.addf %200, %204 : vector<2x128xf32>
    %c0_177 = arith.constant 0 : index
    %c0_178 = arith.constant 0 : index
    %206 = vector.load %arg4[%c0_177, %c0_178] : memref<1x128xf32, #tpu.memory_space<vmem>>, vector<1x128xf32>
    %207 = vector.broadcast %206 : vector<1x128xf32> to vector<2x128xf32>
    %208 = arith.addf %205, %207 : vector<2x128xf32>
    %cst_179 = arith.constant 0.000000e+00 : f32
    %209 = vector.broadcast %cst_179 : f32 to vector<2x128xf32>
    %210 = arith.maximumf %208, %209 : vector<2x128xf32>
    %c0_180 = arith.constant 0 : index
    %c0_181 = arith.constant 0 : index
    %211 = vector.load %arg5[%c0_180, %c0_181] : memref<1x128xf32, #tpu.memory_space<vmem>>, vector<1x128xf32>
    %212 = vector.broadcast %211 : vector<1x128xf32> to vector<2x128xf32>
    %213 = arith.mulf %210, %212 : vector<2x128xf32>
    %cst_182 = arith.constant dense<0.000000e+00> : vector<2xf32>
    %214 = vector.multi_reduction <add>, %213, %cst_182 [1] : vector<2x128xf32> to vector<2xf32>
    %215 = vector.shape_cast %214 : vector<2xf32> to vector<2x1xf32>
    %c0_183 = arith.constant 0 : index
    %c0_184 = arith.constant 0 : index
    %216 = vector.load %arg6[%c0_183, %c0_184] : memref<1x1xf32, #tpu.memory_space<vmem>>, vector<1x1xf32>
    %217 = vector.broadcast %216 : vector<1x1xf32> to vector<2x1xf32>
    %218 = arith.addf %215, %217 : vector<2x1xf32>
    %cst_185 = arith.constant 0.000000e+00 : f32
    %219 = vector.broadcast %cst_185 : f32 to vector<2x1xf32>
    %220 = arith.subf %219, %218 : vector<2x1xf32>
    %221 = math.exp %220 : vector<2x1xf32>
    %cst_186 = arith.constant 1.000000e+00 : f32
    %222 = vector.broadcast %cst_186 : f32 to vector<2x1xf32>
    %223 = arith.addf %222, %221 : vector<2x1xf32>
    %cst_187 = arith.constant -1.000000e+00 : f32
    %224 = vector.broadcast %cst_187 : f32 to vector<2x1xf32>
    %225 = arith.divf %224, %223 : vector<2x1xf32>
    %c0_188 = arith.constant 0 : index
    %c0_189 = arith.constant 0 : index
    %226 = vector.load %arg7[%c0_188, %c0_189] : memref<2x1xf32, #tpu.memory_space<vmem>>, vector<2x1xf32>
    tpu.vector_store %arg7[%c0_188, %c0_189], %225 {strides = array<i32>} : memref<2x1xf32, #tpu.memory_space<vmem>>, vector<2x1xf32>,
    return
  }
}

</mosaic_0001>

<bundles_post_ra>
// kernel: e_forward.1
= control target key start
LH: loop header
LB: loop body
LE: loop exit
PB: predicated region body
PF: predicated region fallthrough
CT: control target
= control target key end

     0   :  { %s7438_s0 = inlined_call_operand.vmem [shape: f32[72,256], index: 0, kind: input, shape index: {}]   ;;  %s7439_s1 = inlined_call_operand.hbm [shape: f32[256,256], index: 1, kind: input, shape index: {}]   ;;  %s7440_s2 = inlined_call_operand.hbm [shape: f32[1,256], index: 2, kind: input, shape index: {}]   ;;  %s7441_s3 = inlined_call_operand.hbm [shape: f32[36,256,128], index: 3, kind: input, shape index: {}]   ;;  %s7442_s4 = inlined_call_operand.hbm [shape: f32[1,128], index: 4, kind: input, shape index: {}]   ;;  %s7443_s5 = inlined_call_operand.hbm [shape: f32[1,128], index: 5, kind: input, shape index: {}]   ;;  %s7444_s6 = inlined_call_operand.<no memory space> [shape: f32[1,1], index: 6, kind: input, shape index: {}]   ;;  %s7445_s7 = inlined_call_operand.vmem [shape: f32[2,1], index: 7, kind: output, shape index: {}]  }
   0x1   :  { %v12_v0 = vstv %s7444_s6 }
   0x2   :  { %13 = vst [vmem:[#allocation3] sm:$0x1] %v12_v0 }
   0x3   :  { %14 = vsyncpa [#allocation5], 0 }
   0x4   :  { %15 = vsyncpa [#allocation7], 0 }
   0x5   :  { %16 = vsyncpa [#allocation10], 0  ;;  %s7089_s26 = smov [#allocation6]   ;;  %s7090_s28 = smov [#allocation9]  }
   0x6   :  { %s37_s27 = sshll.u32 %s7089_s26, 4  ;;  %s59_s29 = sshll.u32 %s7090_s28, 4  ;;  %s38_s27 = int_to_ptr.vmem [resolvable:$true] %s37_s27  ;;  %s60_s29 = int_to_ptr.vmem [resolvable:$true] %s59_s29 }
   0x7   :  { %s6973_s9 = scalar_lea.hbm %s7440_s2, 32 }
   0x8   :  { %p6974_p0 = scmp.ne.s32.totalorder %s7440_s2, %s6973_s9  ;;  %p6977_p1 = scmp.lt.u32.totalorder %s6973_s9, %s7440_s2 }
   0xa   :  { %p6979_p2 = pnand %p6977_p1, %p6974_p0 }
   0xc   :  { %6982 = shalt.err (!%p6979_p2)
}
   0xd   :  { %s6983_s13 = scalar_lea.vmem %s38_s27, 32  ;;  %p6988_p4 = scmp.lt.s32.totalorder %s38_s27, %s38_s27 }
   0xe   :  { %p6984_p3 = scmp.ne.s32.totalorder %s38_s27, %s6983_s13  ;;  %p6989_p5 = scmp.lt.s32.totalorder %s6983_s13, %s6983_s13 }
  0x10   :  { %p6990_p6 = por %p6989_p5, %p6988_p4 }
  0x12   :  { %p6991_p7 = pnand %p6990_p6, %p6984_p3 }
  0x14   :  { %6994 = shalt.err (!%p6991_p7)
}
  0x15   :  { %40 = dma.hbm_to_vmem [thread:$0]  %s7440_s2, 32, %s38_s27, [#allocation7]  }
  0x16   :  { %s6995_s18 = scalar_lea.hbm %s7442_s4, 16 }
  0x17   :  { %p6996_p8 = scmp.ne.s32.totalorder %s7442_s4, %s6995_s18  ;;  %p6999_p9 = scmp.lt.u32.totalorder %s6995_s18, %s7442_s4 }
  0x19   :  { %p7001_p10 = pnand %p6999_p9, %p6996_p8 }
  0x1b   :  { %7004 = shalt.err (!%p7001_p10)
}
  0x1c   :  { %s7005_s23 = scalar_lea.vmem %s60_s29, 16  ;;  %s7009_s24 = scalar_lea.vmem %s60_s29, 32 }
  0x1d   :  { %p7006_p11 = scmp.ne.s32.totalorder %s60_s29, %s7005_s23  ;;  %p7010_p12 = scmp.lt.s32.totalorder %s60_s29, %s60_s29 }
  0x1e   :  { %p7011_p13 = scmp.lt.s32.totalorder %s7009_s24, %s7005_s23 }
  0x20   :  { %p7012_p0 = por %p7011_p13, %p7010_p12 }
  0x22   :  { %p7013_p1 = pnand %p7012_p0, %p7006_p11 }
  0x24   :  { %7016 = shalt.err (!%p7013_p1)
}
  0x25   :  { %62 = dma.hbm_to_vmem [thread:$0]  %s7442_s4, 16, %s60_s29, [#allocation10]  }
  0x26   :  { %s7091_s26 = smov [#allocation4]   ;;  %s7017_s8 = scalar_lea.hbm %s7439_s1, 8192 }
  0x27   :  { %s24_s27 = sshll.u32 %s7091_s26, 4  ;;  %p7018_p2 = scmp.ne.s32.totalorder %s7439_s1, %s7017_s8  ;;  %s25_s27 = int_to_ptr.vmem [resolvable:$true] %s24_s27 }
  0x28   :  { %p7021_p3 = scmp.lt.u32.totalorder %s7017_s8, %s7439_s1 }
  0x2a   :  { %p7023_p4 = pnand %p7021_p3, %p7018_p2 }
  0x2c   :  { %7026 = shalt.err (!%p7023_p4)
}
  0x2d   :  { %s7027_s6 = scalar_lea.vmem %s25_s27, 8192  ;;  %p7032_p6 = scmp.lt.s32.totalorder %s25_s27, %s25_s27 }
  0x2e   :  { %p7028_p5 = scmp.ne.s32.totalorder %s25_s27, %s7027_s6  ;;  %p7033_p7 = scmp.lt.s32.totalorder %s7027_s6, %s7027_s6 }
  0x30   :  { %p7034_p8 = por %p7033_p7, %p7032_p6 }
  0x32   :  { %p7035_p9 = pnand %p7034_p8, %p7028_p5 }
  0x34   :  { %7038 = shalt.err (!%p7035_p9)
}
  0x35   :  { %s7092_s4 = smov 256   ;;  %s7093_s29 = smov 16  }
  0x36   :  { %30 = dma.hbm_to_vmem [thread:$0]  %s7439_s1, 8192, %s25_s27, [#allocation5], %s7092_s4, %s7092_s4, %s7093_s29  }
  0x37   :  { %s7094_s15 = smov [#allocation8]   ;;  %s7039_s19 = scalar_lea.hbm %s7441_s3, 147456 }
  0x38   :  { %s46_s16 = sshll.u32 %s7094_s15, 4  ;;  %p7040_p10 = scmp.ne.s32.totalorder %s7441_s3, %s7039_s19  ;;  %s47_s16 = int_to_ptr.vmem [resolvable:$true] %s46_s16 }
  0x39   :  { %p7043_p11 = scmp.lt.u32.totalorder %s7039_s19, %s7441_s3 }
  0x3b   :  { %p7045_p12 = pnand %p7043_p11, %p7040_p10 }
  0x3d   :  { %7048 = shalt.err (!%p7045_p12)
}
  0x3e   :  { %s7049_s24 = scalar_lea.vmem %s47_s16, 147456  ;;  %p7054_p0 = scmp.lt.s32.totalorder %s47_s16, %s47_s16 }
  0x3f   :  { %p7050_p13 = scmp.ne.s32.totalorder %s47_s16, %s7049_s24  ;;  %p7055_p1 = scmp.lt.s32.totalorder %s7049_s24, %s7049_s24 }
  0x41   :  { %p7056_p2 = por %p7055_p1, %p7054_p0 }
  0x43   :  { %p7057_p3 = pnand %p7056_p2, %p7050_p13 }
  0x45   :  { %7060 = shalt.err (!%p7057_p3)
}
  0x46   :  { %s7095_s1 = smov 128   ;;  %s7096_s2 = smov 8  }
  0x47   :  { %52 = dma.hbm_to_vmem [thread:$0]  %s7441_s3, 147456, %s47_s16, [#allocation7], %s7095_s1, %s7095_s1, %s7096_s2  }
  0x48   :  { %s7097_s27 = smov [#allocation11]   ;;  %s7061_s9 = scalar_lea.hbm %s7443_s5, 16 }
  0x49   :  { %s69_s28 = sshll.u32 %s7097_s27, 4  ;;  %p7062_p4 = scmp.ne.s32.totalorder %s7443_s5, %s7061_s9  ;;  %s70_s28 = int_to_ptr.vmem [resolvable:$true] %s69_s28 }
  0x4a   :  { %p7065_p5 = scmp.lt.u32.totalorder %s7061_s9, %s7443_s5 }
  0x4c   :  { %p7067_p6 = pnand %p7065_p5, %p7062_p4 }
  0x4e   :  { %7070 = shalt.err (!%p7067_p6)
}
  0x4f   :  { %s7071_s4 = scalar_lea.vmem %s70_s28, 16  ;;  %s7075_s3 = scalar_lea.vmem %s70_s28, 32 }
  0x50   :  { %p7072_p7 = scmp.ne.s32.totalorder %s70_s28, %s7071_s4  ;;  %p7076_p8 = scmp.lt.s32.totalorder %s70_s28, %s70_s28 }
  0x51   :  { %p7077_p9 = scmp.lt.s32.totalorder %s7075_s3, %s7071_s4 }
  0x53   :  { %p7078_p10 = por %p7077_p9, %p7076_p8 }
  0x55   :  { %p7079_p11 = pnand %p7078_p10, %p7072_p7 }
  0x57   :  { %7082 = shalt.err (!%p7079_p11)
}
  0x58   :  { %72 = dma.hbm_to_vmem [thread:$0]  %s7443_s5, 16, %s70_s28, [#allocation10]  }
  0x59   :  { %7083 = dma.done.wait [#allocation5], 8192  }
  0x5a   :  { %7084 = vsyncadd [#allocation5], 4294959104 }
  0x5b   :  { %7085 = dma.done.wait [#allocation7], 147488  }
  0x5c   :  { %7086 = vsyncadd [#allocation7], 4294819808 }
  0x5d   :  { %7087 = dma.done.wait [#allocation10], 32  }
  0x5e   :  { %7088 = vsyncadd [#allocation10], 4294967264  ;;  %v109_v1 = vld [vmem:[#allocation4 + $0x8] sm:$0xff]  ;;  %v111_v2 = vld [vmem:[#allocation4 + $0x18] sm:$0xff]  ;;  %vm4450_vm0 = vcmask 1041408   ;;  %vm4468_vm1 = vcmask 1024  }
  0x5f   :  { %v108_v3 = vld [vmem:[#allocation4] sm:$0xff]  ;;  %v5740_v4 = vpack.c.bf16 %v111_v2, %v109_v1  ;;  %v110_v5 = vld [vmem:[#allocation4 + $0x10] sm:$0xff]  ;;  %v113_v6 = vld [vmem:[#allocation4 + $0x28] sm:$0xff] }
  0x60   :  { %v115_v7 = vld [vmem:[#allocation4 + $0x38] sm:$0xff]  ;;  %v5742_v8 = vpack.c.bf16 %v110_v5, %v108_v3  ;;  %v112_v10 = vld [vmem:[#allocation4 + $0x20] sm:$0xff]  ;;  %v114_v11 = vld [vmem:[#allocation4 + $0x30] sm:$0xff] }
  0x61   :  { %v5744_v9 = vpack.c.bf16 %v115_v7, %v113_v6  ;;  %v117_v12 = vld [vmem:[#allocation4 + $0x48] sm:$0xff]  ;;  %5741 = vmatprep.subr.bf16.mxu0 %v5740_v4  ;;  %v119_v13 = vld [vmem:[#allocation4 + $0x58] sm:$0xff]  ;;  %v5746_v14 = vpack.c.bf16 %v114_v11, %v112_v10  ;;  %v116_v16 = vld [vmem:[#allocation4 + $0x40] sm:$0xff] }
  0x62   :  { %5743 = vmatpush1.bf16.msra.mxu0 %v5742_v8  ;;  %v5748_v15 = vpack.c.bf16 %v119_v13, %v117_v12  ;;  %v118_v17 = vld [vmem:[#allocation4 + $0x50] sm:$0xff]  ;;  %v121_v18 = vld [vmem:[#allocation4 + $0x68] sm:$0xff]  ;;  %v123_v19 = vld [vmem:[#allocation4 + $0x78] sm:$0xff] }
  0x63   :  { %5745 = vmatprep.subr.bf16.mxu0 %v5744_v9  ;;  %v5750_v20 = vpack.c.bf16 %v118_v17, %v116_v16  ;;  %v5752_v21 = vpack.c.bf16 %v123_v19, %v121_v18  ;;  %v120_v22 = vld [vmem:[#allocation4 + $0x60] sm:$0xff]  ;;  %v122_v23 = vld [vmem:[#allocation4 + $0x70] sm:$0xff]  ;;  %v125_v24 = vld [vmem:[#allocation4 + $0x88] sm:$0xff] }
  0x64   :  { %v127_v25 = vld [vmem:[#allocation4 + $0x98] sm:$0xff]  ;;  %v5754_v26 = vpack.c.bf16 %v122_v23, %v120_v22  ;;  %v124_v28 = vld [vmem:[#allocation4 + $0x80] sm:$0xff]  ;;  %v126_v29 = vld [vmem:[#allocation4 + $0x90] sm:$0xff] }
  0x65   :  { %v5756_v27 = vpack.c.bf16 %v127_v25, %v125_v24  ;;  %v129_v30 = vld [vmem:[#allocation4 + $0xa8] sm:$0xff]  ;;  %v131_v31 = vld [vmem:[#allocation4 + $0xb8] sm:$0xff]  ;;  %v5758_v32 = vpack.c.bf16 %v126_v29, %v124_v28  ;;  %v128_v34 = vld [vmem:[#allocation4 + $0xa0] sm:$0xff] }
  0x66   :  { %5747 = vmatpush1.bf16.msra.mxu0 %v5746_v14  ;;  %v5760_v33 = vpack.c.bf16 %v131_v31, %v129_v30  ;;  %v130_v35 = vld [vmem:[#allocation4 + $0xb0] sm:$0xff]  ;;  %v133_v36 = vld [vmem:[#allocation4 + $0xc8] sm:$0xff]  ;;  %v135_v37 = vld [vmem:[#allocation4 + $0xd8] sm:$0xff] }
  0x67   :  { %5749 = vmatprep.subr.bf16.mxu0 %v5748_v15  ;;  %v5762_v38 = vpack.c.bf16 %v130_v35, %v128_v34  ;;  %v5764_v39 = vpack.c.bf16 %v135_v37, %v133_v36  ;;  %v132_v40 = vld [vmem:[#allocation4 + $0xc0] sm:$0xff]  ;;  %v134_v41 = vld [vmem:[#allocation4 + $0xd0] sm:$0xff]  ;;  %v137_v43 = vld [vmem:[#allocation4 + $0xe8] sm:$0xff] }
  0x68   :  { %v91_v42 = vld [vmem:[%s7438_s0 + $0x8] sm:$0xff]  ;;  %v5766_v45 = vpack.c.bf16 %v134_v41, %v132_v40  ;;  %v136_v47 = vld [vmem:[#allocation4 + $0xe0] sm:$0xff]  ;;  %v141_v49 = vld [vmem:[#allocation4 + $0x108] sm:$0xff] }
  0x69   :  { %v139_v44 = vld [vmem:[#allocation4 + $0xf8] sm:$0xff]  ;;  %248 = vmatprep.mubr.f32.mxu0 %v91_v42  ;;  %v138_v48 = vld [vmem:[#allocation4 + $0xf0] sm:$0xff]  ;;  %v140_v53 = vld [vmem:[#allocation4 + $0x100] sm:$0xff] }
  0x6a   :  { %5751 = vmatpush1.bf16.msra.mxu0 %v5750_v20  ;;  %v5768_v46 = vpack.c.bf16 %v139_v44, %v137_v43  ;;  %v143_v50 = vld [vmem:[#allocation4 + $0x118] sm:$0xff]  ;;  %v5770_v51 = vpack.c.bf16 %v138_v48, %v136_v47  ;;  %v142_v54 = vld [vmem:[#allocation4 + $0x110] sm:$0xff]  ;;  %v145_v55 = vld [vmem:[#allocation4 + $0x128] sm:$0xff] }
  0x6b   :  { %5753 = vmatprep.subr.bf16.mxu0 %v5752_v21  ;;  %v5772_v52 = vpack.c.bf16 %v143_v50, %v141_v49  ;;  %v147_v56 = vld [vmem:[#allocation4 + $0x138] sm:$0xff]  ;;  %v5774_v57 = vpack.c.bf16 %v142_v54, %v140_v53  ;;  %v144_v59 = vld [vmem:[#allocation4 + $0x120] sm:$0xff]  ;;  %v146_v60 = vld [vmem:[#allocation4 + $0x130] sm:$0xff] }
  0x6c   :  { %v5776_v58 = vpack.c.bf16 %v147_v56, %v145_v55  ;;  %v149_v61 = vld [vmem:[#allocation4 + $0x148] sm:$0xff]  ;;  %v151_v62 = vld [vmem:[#allocation4 + $0x158] sm:$0xff]  ;;  %v5778_v63 = vpack.c.bf16 %v146_v60, %v144_v59  ;;  %v148_v1 = vld [vmem:[#allocation4 + $0x140] sm:$0xff] }
  0x6d   :  { %v5780_v0 = vpack.c.bf16 %v151_v62, %v149_v61  ;;  %v150_v2 = vld [vmem:[#allocation4 + $0x150] sm:$0xff]  ;;  %v153_v3 = vld [vmem:[#allocation4 + $0x168] sm:$0xff]  ;;  %v155_v4 = vld [vmem:[#allocation4 + $0x178] sm:$0xff] }
  0x6e   :  { %5755 = vmatpush1.bf16.msra.mxu0 %v5754_v26  ;;  %v5782_v5 = vpack.c.bf16 %v150_v2, %v148_v1  ;;  %v5784_v6 = vpack.c.bf16 %v155_v4, %v153_v3  ;;  %v152_v7 = vld [vmem:[#allocation4 + $0x160] sm:$0xff]  ;;  %v154_v8 = vld [vmem:[#allocation4 + $0x170] sm:$0xff]  ;;  %v157_v9 = vld [vmem:[#allocation4 + $0x188] sm:$0xff] }
  0x6f   :  { %5757 = vmatprep.subr.bf16.mxu0 %v5756_v27  ;;  %v159_v10 = vld [vmem:[#allocation4 + $0x198] sm:$0xff]  ;;  %v5786_v11 = vpack.c.bf16 %v154_v8, %v152_v7  ;;  %v156_v13 = vld [vmem:[#allocation4 + $0x180] sm:$0xff]  ;;  %v158_v14 = vld [vmem:[#allocation4 + $0x190] sm:$0xff] }
  0x70   :  { %v5788_v12 = vpack.c.bf16 %v159_v10, %v157_v9  ;;  %v161_v15 = vld [vmem:[#allocation4 + $0x1a8] sm:$0xff]  ;;  %v163_v16 = vld [vmem:[#allocation4 + $0x1b8] sm:$0xff]  ;;  %v5790_v17 = vpack.c.bf16 %v158_v14, %v156_v13  ;;  %v160_v19 = vld [vmem:[#allocation4 + $0x1a0] sm:$0xff] }
  0x71   :  { %v5792_v18 = vpack.c.bf16 %v163_v16, %v161_v15  ;;  %v162_v20 = vld [vmem:[#allocation4 + $0x1b0] sm:$0xff]  ;;  %v165_v21 = vld [vmem:[#allocation4 + $0x1c8] sm:$0xff]  ;;  %v167_v22 = vld [vmem:[#allocation4 + $0x1d8] sm:$0xff] }
  0x72   :  { %5759 = vmatpush1.bf16.msra.mxu0 %v5758_v32  ;;  %v5794_v23 = vpack.c.bf16 %v162_v20, %v160_v19  ;;  %v5796_v24 = vpack.c.bf16 %v167_v22, %v165_v21  ;;  %v164_v25 = vld [vmem:[#allocation4 + $0x1c0] sm:$0xff]  ;;  %v166_v26 = vld [vmem:[#allocation4 + $0x1d0] sm:$0xff]  ;;  %v169_v27 = vld [vmem:[#allocation4 + $0x1e8] sm:$0xff] }
  0x73   :  { %5761 = vmatprep.subr.bf16.mxu0 %v5760_v33  ;;  %v171_v28 = vld [vmem:[#allocation4 + $0x1f8] sm:$0xff]  ;;  %v5798_v29 = vpack.c.bf16 %v166_v26, %v164_v25  ;;  %v168_v31 = vld [vmem:[#allocation4 + $0x1e0] sm:$0xff]  ;;  %v170_v32 = vld [vmem:[#allocation4 + $0x1f0] sm:$0xff] }
  0x74   :  { %v5800_v30 = vpack.c.bf16 %v171_v28, %v169_v27  ;;  %v5802_v33 = vpack.c.bf16 %v170_v32, %v168_v31  ;;  %v90_v34 = vld [vmem:[%s7438_s0] sm:$0xff]  ;;  %v93_v35 = vld [vmem:[%s7438_s0 + $0x18] sm:$0xff]  ;;  %v92_v36 = vld [vmem:[%s7438_s0 + $0x10] sm:$0xff] }
  0x75   :  { %v95_v37 = vld [vmem:[%s7438_s0 + $0x28] sm:$0xff]  ;;  %v96_v40 = vld [vmem:[%s7438_s0 + $0x30] sm:$0xff]  ;;  %v98_v42 = vld [vmem:[%s7438_s0 + $0x40] sm:$0xff] }
  0x76   :  { %5763 = vmatpush1.bf16.msra.mxu0 %v5762_v38  ;;  %v94_v38 = vld [vmem:[%s7438_s0 + $0x20] sm:$0xff]  ;;  %v99_v41 = vld [vmem:[%s7438_s0 + $0x48] sm:$0xff]  ;;  %v101_v43 = vld [vmem:[%s7438_s0 + $0x58] sm:$0xff] }
  0x77   :  { %5765 = vmatprep.subr.bf16.mxu0 %v5764_v39  ;;  %v97_v39 = vld [vmem:[%s7438_s0 + $0x38] sm:$0xff]  ;;  %v100_v44 = vld [vmem:[%s7438_s0 + $0x50] sm:$0xff]  ;;  %v107_v49 = vld [vmem:[%s7438_s0 + $0x88] sm:$0xff] }
  0x78   :  { %v105_v47 = vld [vmem:[%s7438_s0 + $0x78] sm:$0xff]  ;;  %v104_v48 = vld [vmem:[%s7438_s0 + $0x70] sm:$0xff]  ;;  %v106_v50 = vld [vmem:[%s7438_s0 + $0x80] sm:$0xff] }
  0x79   :  { %v804_v53 = vld [vmem:[#allocation8 + $0x380] sm:$0xff]  ;;  %v805_v55 = vld [vmem:[#allocation8 + $0x388] sm:$0xff]  ;;  %v806_v1 = vld [vmem:[#allocation8 + $0x390] sm:$0xff] }
  0x7a   :  { %5767 = vmatpush1.bf16.msra.mxu0 %v5766_v45  ;;  %v103_v45 = vld [vmem:[%s7438_s0 + $0x68] sm:$0xff]  ;;  %v495_v56 = vld [vmem:[#allocation8 + $0x100] sm:$0xff]  ;;  %v789_v61 = vld [vmem:[#allocation8 + $0x308] sm:$0xff] }
  0x7b   :  { %5769 = vmatprep.subr.bf16.mxu0 %v5768_v46  ;;  %v102_v46 = vld [vmem:[%s7438_s0 + $0x60] sm:$0xff]  ;;  %v788_v60 = vld [vmem:[#allocation8 + $0x300] sm:$0xff]  ;;  %v807_v3 = vld [vmem:[#allocation8 + $0x398] sm:$0xff] }
  0x7c   :  { %v5902_v62 = vpack.c.bf16 %v789_v61, %v788_v60  ;;  %v497_v4 = vld [vmem:[#allocation8 + $0x110] sm:$0xff]  ;;  %v791_v9 = vld [vmem:[#allocation8 + $0x318] sm:$0xff]  ;;  %v808_v13 = vld [vmem:[#allocation8 + $0x3a0] sm:$0xff] }
  0x7d   :  { %v790_v8 = vld [vmem:[#allocation8 + $0x310] sm:$0xff]  ;;  %v809_v15 = vld [vmem:[#allocation8 + $0x3a8] sm:$0xff]  ;;  %v499_v16 = vld [vmem:[#allocation8 + $0x120] sm:$0xff] }
  0x7e   :  { %5771 = vmatpush1.bf16.msra.mxu0 %v5770_v51  ;;  %v511_v51 = vld [vmem:[#allocation8 + $0x180] sm:$0xff]  ;;  %v5906_v10 = vpack.c.bf16 %v791_v9, %v790_v8  ;;  %v793_v21 = vld [vmem:[#allocation8 + $0x328] sm:$0xff]  ;;  %v810_v25 = vld [vmem:[#allocation8 + $0x3b0] sm:$0xff] }
  0x7f   :  { %5773 = vmatprep.subr.bf16.mxu0 %v5772_v52  ;;  %v512_v52 = vld [vmem:[#allocation8 + $0x188] sm:$0xff]  ;;  %v792_v20 = vld [vmem:[#allocation8 + $0x320] sm:$0xff]  ;;  %v811_v27 = vld [vmem:[#allocation8 + $0x3b8] sm:$0xff] }
  0x80   :  { %v5804_v54 = vpack.c.bf16 %v512_v52, %v511_v51  ;;  %v5910_v22 = vpack.c.bf16 %v793_v21, %v792_v20  ;;  %v501_v28 = vld [vmem:[#allocation8 + $0x130] sm:$0xff]  ;;  %v815_v51 = vld [vmem:[#allocation8 + $0x3d8] sm:$0xff]  ;;  %v524_v60 = vld [vmem:[#allocation8 + $0x1e8] sm:$0xff] }
  0x81   :  { %v794_v32 = vld [vmem:[#allocation8 + $0x330] sm:$0xff]  ;;  %v816_v61 = vld [vmem:[#allocation8 + $0x3e0] sm:$0xff]  ;;  %v526_v8 = vld [vmem:[#allocation8 + $0x1f8] sm:$0xff] }
  0x82   :  { %5775 = vmatpush1.bf16.msra.mxu0 %v5774_v57  ;;  %v496_v57 = vld [vmem:[#allocation8 + $0x108] sm:$0xff]  ;;  %5805 = vmatprep.subr.bf16.mxu1 %v5804_v54  ;;  %v505_v52 = vld [vmem:[#allocation8 + $0x150] sm:$0xff]  ;;  %v1022_v21 = vld [vmem:[#allocation8 + $0x580] sm:$0xff] }
  0x83   :  { %5777 = vmatprep.subr.bf16.mxu0 %v5776_v58  ;;  %v5900_v58 = vpack.c.bf16 %v805_v55, %v804_v53  ;;  %v5806_v59 = vpack.c.bf16 %v496_v57, %v495_v56  ;;  %v506_v53 = vld [vmem:[#allocation8 + $0x158] sm:$0xff]  ;;  %v798_v56 = vld [vmem:[#allocation8 + $0x350] sm:$0xff]  ;;  %v477_v20 = vld [vmem:[#allocation8 + $0x88] sm:$0xff] }
  0x84   :  { %v5826_v55 = vpack.c.bf16 %v506_v53, %v505_v52  ;;  %v799_v57 = vld [vmem:[#allocation8 + $0x358] sm:$0xff]  ;;  %v818_v9 = vld [vmem:[#allocation8 + $0x3f0] sm:$0xff] }
  0x85   :  { %5807 = vmatpush3.bf16.msra.mxu1 %v5806_v59  ;;  %v523_v59 = vld [vmem:[#allocation8 + $0x1e0] sm:$0xff] }
  0x86   :  { %5779 = vmatpush1.bf16.msra.mxu0 %v5778_v63  ;;  %v513_v63 = vld [vmem:[#allocation8 + $0x190] sm:$0xff] }
  0x87   :  { %5781 = vmatprep.subr.bf16.mxu0 %v5780_v0  ;;  %v514_v0 = vld [vmem:[#allocation8 + $0x198] sm:$0xff] }
  0x88   :  { %v5808_v2 = vpack.c.bf16 %v514_v0, %v513_v63  ;;  %v817_v63 = vld [vmem:[#allocation8 + $0x3e8] sm:$0xff]  ;;  %v507_v0 = vld [vmem:[#allocation8 + $0x160] sm:$0xff] }
  0x8a   :  { %5783 = vmatpush1.bf16.msra.mxu0 %v5782_v5  ;;  %v498_v5 = vld [vmem:[#allocation8 + $0x118] sm:$0xff]  ;;  %5809 = vmatprep.subr.bf16.mxu1 %v5808_v2  ;;  %v5924_v2 = vpack.c.bf16 %v817_v63, %v816_v61 }
  0x8b   :  { %5785 = vmatprep.subr.bf16.mxu0 %v5784_v6  ;;  %v5904_v6 = vpack.c.bf16 %v807_v3, %v806_v1  ;;  %v5810_v7 = vpack.c.bf16 %v498_v5, %v497_v4  ;;  %v508_v1 = vld [vmem:[#allocation8 + $0x168] sm:$0xff]  ;;  %v800_v4 = vld [vmem:[#allocation8 + $0x360] sm:$0xff] }
  0x8c   :  { %v5830_v3 = vpack.c.bf16 %v508_v1, %v507_v0  ;;  %v801_v5 = vld [vmem:[#allocation8 + $0x368] sm:$0xff] }
  0x8d   :  { %5811 = vmatpush3.bf16.msra.mxu1 %v5810_v7  ;;  %v5926_v7 = vpack.c.bf16 %v801_v5, %v800_v4 }
  0x8e   :  { %5787 = vmatpush1.bf16.msra.mxu0 %v5786_v11  ;;  %v515_v11 = vld [vmem:[#allocation8 + $0x1a0] sm:$0xff] }
  0x8f   :  { %5789 = vmatprep.subr.bf16.mxu0 %v5788_v12  ;;  %v516_v12 = vld [vmem:[#allocation8 + $0x1a8] sm:$0xff] }
  0x90   :  { %v5812_v14 = vpack.c.bf16 %v516_v12, %v515_v11 }
  0x92   :  { %5791 = vmatpush1.bf16.msra.mxu0 %v5790_v17  ;;  %v500_v17 = vld [vmem:[#allocation8 + $0x128] sm:$0xff]  ;;  %5813 = vmatprep.subr.bf16.mxu1 %v5812_v14  ;;  %v510_v14 = vld [vmem:[#allocation8 + $0x178] sm:$0xff] }
  0x93   :  { %5793 = vmatprep.subr.bf16.mxu0 %v5792_v18  ;;  %v5908_v18 = vpack.c.bf16 %v809_v15, %v808_v13  ;;  %v5814_v19 = vpack.c.bf16 %v500_v17, %v499_v16  ;;  %v509_v13 = vld [vmem:[#allocation8 + $0x170] sm:$0xff]  ;;  %v803_v17 = vld [vmem:[#allocation8 + $0x378] sm:$0xff] }
  0x94   :  { %v802_v15 = vld [vmem:[#allocation8 + $0x370] sm:$0xff]  ;;  %v5834_v16 = vpack.c.bf16 %v510_v14, %v509_v13 }
  0x95   :  { %5815 = vmatpush3.bf16.msra.mxu1 %v5814_v19  ;;  %v476_v19 = vld [vmem:[#allocation8 + $0x80] sm:$0xff] }
  0x96   :  { %5795 = vmatpush1.bf16.msra.mxu0 %v5794_v23  ;;  %v517_v23 = vld [vmem:[#allocation8 + $0x1b0] sm:$0xff] }
  0x97   :  { %5797 = vmatprep.subr.bf16.mxu0 %v5796_v24  ;;  %v518_v24 = vld [vmem:[#allocation8 + $0x1b8] sm:$0xff] }
  0x98   :  { %v5816_v26 = vpack.c.bf16 %v518_v24, %v517_v23  ;;  %v5836_v23 = vpack.c.bf16 %v477_v20, %v476_v19  ;;  %v1023_v24 = vld [vmem:[#allocation8 + $0x588] sm:$0xff] }
  0x9a   :  { %5799 = vmatpush1.bf16.msra.mxu0 %v5798_v29  ;;  %v502_v29 = vld [vmem:[#allocation8 + $0x138] sm:$0xff]  ;;  %5817 = vmatprep.subr.bf16.mxu1 %v5816_v26 }
  0x9b   :  { %5801 = vmatprep.subr.bf16.mxu0 %v5800_v30  ;;  %v5912_v30 = vpack.c.bf16 %v811_v27, %v810_v25  ;;  %v5818_v31 = vpack.c.bf16 %v502_v29, %v501_v28  ;;  %v5964_v25 = vpack.c.bf16 %v1023_v24, %v1022_v21  ;;  %v172_v28 = vld [vmem:[#allocation6] sm:$0x3] }
  0x9d   :  { %5819 = vmatpush3.bf16.msra.mxu1 %v5818_v31 }
  0x9e   :  { %5803 = vmatpush1.bf16.msra.mxu0 %v5802_v33  ;;  %v795_v33 = vld [vmem:[#allocation8 + $0x338] sm:$0xff] }
  0x9f   :  { %5901 = vmatprep.subr.bf16.mxu0 %v5900_v58  ;;  %v5922_v58 = vpack.c.bf16 %v799_v57, %v798_v56 }
  0xa1   :  { %249 = vmatmul.mubr.f32.vlgmr.msra.gmra.mrb[0].mxu0 %v90_v34  ;;  %v5914_v34 = vpack.c.bf16 %v795_v33, %v794_v32 }
  0xa2   :  { %254 = vmatprep.mubr.f32.mxu0 %v93_v35  ;;  %5903 = vmatpush3.bf16.msra.mxu0 %v5902_v62  ;;  %v519_v35 = vld [vmem:[#allocation8 + $0x1c0] sm:$0xff]  ;;  %v5828_v62 = vpack.c.bf16 %v524_v60, %v523_v59 }
  0xa3   :  { %5905 = vmatprep.subr.bf16.mxu0 %v5904_v6  ;;  %v525_v6 = vld [vmem:[#allocation8 + $0x1f0] sm:$0xff] }
  0xa4   :  { %v5832_v11 = vpack.c.bf16 %v526_v8, %v525_v6 }
  0xa5   :  { %255 = vmatmul.mubr.f32.gmra.mrb[2].mxu0 %v92_v36  ;;  %v520_v36 = vld [vmem:[#allocation8 + $0x1c8] sm:$0xff] }
  0xa6   :  { %260 = vmatprep.mubr.f32.mxu0 %v95_v37  ;;  %5907 = vmatpush3.bf16.msra.mxu0 %v5906_v10  ;;  %v812_v37 = vld [vmem:[#allocation8 + $0x3c0] sm:$0xff]  ;;  %v819_v10 = vld [vmem:[#allocation8 + $0x3f8] sm:$0xff] }
  0xa7   :  { %5909 = vmatprep.subr.bf16.mxu0 %v5908_v18  ;;  %v5928_v12 = vpack.c.bf16 %v819_v10, %v818_v9  ;;  %v5930_v18 = vpack.c.bf16 %v803_v17, %v802_v15 }
  0xa9   :  { %261 = vmatmul.mubr.f32.gmra.mrb[4].mxu0 %v94_v38  ;;  %v5820_v38 = vpack.c.bf16 %v520_v36, %v519_v35 }
  0xaa   :  { %266 = vmatprep.mubr.f32.mxu0 %v97_v39  ;;  %5911 = vmatpush3.bf16.msra.mxu0 %v5910_v22  ;;  %v813_v39 = vld [vmem:[#allocation8 + $0x3c8] sm:$0xff]  ;;  %v174_v22 = vlaneseq }
  0xab   :  { %5913 = vmatprep.subr.bf16.mxu0 %v5912_v30  ;;  %5821 = vmatprep.subr.bf16.mxu1 %v5820_v38 }
  0xac   :  { %v175_v26 = vshrl.u32 %v174_v22, 7 }
  0xad   :  { %267 = vmatmul.mubr.f32.gmra.mrb[6].mxu0 %v96_v40  ;;  %v503_v40 = vld [vmem:[#allocation8 + $0x140] sm:$0xff] }
  0xae   :  { %272 = vmatprep.mubr.f32.mxu0 %v99_v41  ;;  %5915 = vmatpush3.bf16.msra.mxu0 %v5914_v34  ;;  %v504_v41 = vld [vmem:[#allocation8 + $0x148] sm:$0xff]  ;;  %v176_v27 = vsub.s32 0, %v175_v26  ;;  %v180_v29 = vsub.s32 1, %v175_v26 }
  0xb0   :  { %v177_v31 = vrot.slane %v172_v28, %v176_v27  ;;  %v181_v33 = vrot.slane %v172_v28, %v180_v29 }
  0xb1   :  { %273 = vmatmul.mubr.f32.gmra.mrb[8].mxu0 %v98_v42  ;;  %v5916_v42 = vpack.c.bf16 %v813_v39, %v812_v37 }
  0xb2   :  { %278 = vmatprep.mubr.f32.mxu0 %v101_v43  ;;  %v5822_v43 = vpack.c.bf16 %v504_v41, %v503_v40 }
  0xb3   :  { %5917 = vmatprep.subr.bf16.mxu0 %v5916_v42 }
  0xb4   :  { %5823 = vmatpush3.bf16.msra.mxu1 %v5822_v43 }
  0xb5   :  { %279 = vmatmul.mubr.f32.gmra.mrb[10].mxu0 %v100_v44  ;;  %v796_v44 = vld [vmem:[#allocation8 + $0x340] sm:$0xff] }
  0xb6   :  { %284 = vmatprep.mubr.f32.mxu0 %v103_v45  ;;  %v797_v45 = vld [vmem:[#allocation8 + $0x348] sm:$0xff] }
  0xb9   :  { %285 = vmatmul.mubr.f32.gmra.mrb[12].mxu0 %v102_v46  ;;  %v5918_v46 = vpack.c.bf16 %v797_v45, %v796_v44 }
  0xba   :  { %290 = vmatprep.mubr.f32.mxu0 %v105_v47  ;;  %v521_v47 = vld [vmem:[#allocation8 + $0x1d0] sm:$0xff] }
  0xbb   :  { %5919 = vmatpush3.bf16.msra.mxu0 %v5918_v46 }
  0xbd   :  { %291 = vmatmul.mubr.f32.gmra.mrb[14].mxu0 %v104_v48  ;;  %v522_v48 = vld [vmem:[#allocation8 + $0x1d8] sm:$0xff] }
  0xbe   :  { %296 = vmatprep.mubr.f32.mxu0 %v107_v49  ;;  %v814_v49 = vld [vmem:[#allocation8 + $0x3d0] sm:$0xff] }
  0xbf   :  { %v5920_v54 = vpack.c.bf16 %v815_v51, %v814_v49 }
  0xc1   :  { %297 = vmatmul.mubr.f32.gmra.mrb[16].mxu0 %v106_v50  ;;  %v5824_v50 = vpack.c.bf16 %v522_v48, %v521_v47  ;;  %5921 = vmatprep.subr.bf16.mxu0 %v5920_v54 }
  0xc2   :  { %5923 = vmatpush3.bf16.msra.mxu0 %v5922_v58 }
  0xc3   :  { %5825 = vmatprep.subr.bf16.mxu1 %v5824_v50  ;;  %5925 = vmatprep.subr.bf16.mxu0 %v5924_v2 }
  0xc4   :  { %5827 = vmatpush3.bf16.msra.mxu1 %v5826_v55 }
  0xc5   :  { %5829 = vmatprep.subr.bf16.mxu1 %v5828_v62 }
  0xc6   :  { %5927 = vmatpush3.bf16.msra.mxu0 %v5926_v7 }
  0xc7   :  { %5929 = vmatprep.subr.bf16.mxu0 %v5928_v12 }
  0xc8   :  { %5831 = vmatpush3.bf16.msra.mxu1 %v5830_v3 }
  0xc9   :  { %5833 = vmatprep.subr.bf16.mxu1 %v5832_v11 }
  0xca   :  { %5931 = vmatpush3.bf16.msra.mxu0 %v5930_v18 }
  0xcb   :  { %5965 = vmatprep.subr.bf16.mxu0 %v5964_v25 }
  0xcc   :  { %5835 = vmatpush3.bf16.msra.mxu1 %v5834_v16 }
  0xcd   :  { %5837 = vmatprep.subr.bf16.mxu1 %v5836_v23 }
 0x174   :  { %v250_v30 = vpop.f32.mrb[0].mxu0 }
 0x175   :  { %v252_v32 = vpop.f32.mrb[1].mxu0  ;;  %v7255_v35 = vadd.f32 %v250_v30, %v177_v31 }
 0x176   :  { %v7259_v38 = vadd.f32 %v252_v32, %v181_v33 }
 0x178   :  { %v256_v34 = vpop.f32.mrb[2].mxu0 }
 0x179   :  { %v7257_v36 = vadd.f32 %v256_v34, %v177_v31  ;;  %v258_v37 = vpop.f32.mrb[3].mxu0 }
 0x17a   :  { %v7261_v39 = vadd.f32 %v258_v37, %v181_v33 }
 0x17b   :  { %v303_v40 = vadd.f32 %v7257_v36, %v7255_v35 }
 0x17c   :  { %v317_v41 = vadd.f32 %v7261_v39, %v7259_v38  ;;  %v262_v42 = vpop.f32.mrb[4].mxu0 }
 0x17d   :  { %v263_v43 = vadd.f32 %v262_v42, %v177_v31  ;;  %v264_v44 = vpop.f32.mrb[5].mxu0 }
 0x17e   :  { %v7267_v45 = vadd.f32 %v264_v44, %v181_v33 }
 0x17f   :  { %v304_v46 = vadd.f32 %v303_v40, %v263_v43 }
 0x180   :  { %v318_v47 = vadd.f32 %v317_v41, %v7267_v45  ;;  %v268_v48 = vpop.f32.mrb[6].mxu0 }
 0x181   :  { %v269_v49 = vadd.f32 %v268_v48, %v177_v31  ;;  %v270_v50 = vpop.f32.mrb[7].mxu0 }
 0x182   :  { %v7270_v51 = vadd.f32 %v270_v50, %v181_v33 }
 0x183   :  { %v305_v52 = vadd.f32 %v304_v46, %v269_v49 }
 0x184   :  { %v319_v53 = vadd.f32 %v318_v47, %v7270_v51  ;;  %v274_v54 = vpop.f32.mrb[8].mxu0 }
 0x185   :  { %v275_v55 = vadd.f32 %v274_v54, %v177_v31  ;;  %v276_v56 = vpop.f32.mrb[9].mxu0 }
 0x186   :  { %v277_v57 = vadd.f32 %v276_v56, %v181_v33 }
 0x187   :  { %v306_v58 = vadd.f32 %v305_v52, %v275_v55 }
 0x188   :  { %v320_v59 = vadd.f32 %v319_v53, %v277_v57  ;;  %v280_v60 = vpop.f32.mrb[10].mxu0 }
 0x189   :  { %v281_v61 = vadd.f32 %v280_v60, %v177_v31  ;;  %v282_v62 = vpop.f32.mrb[11].mxu0 }
 0x18a   :  { %v283_v63 = vadd.f32 %v282_v62, %v181_v33 }
 0x18b   :  { %v307_v0 = vadd.f32 %v306_v58, %v281_v61 }
 0x18c   :  { %v321_v1 = vadd.f32 %v320_v59, %v283_v63  ;;  %v286_v2 = vpop.f32.mrb[12].mxu0 }
 0x18d   :  { %v287_v3 = vadd.f32 %v286_v2, %v177_v31  ;;  %v288_v4 = vpop.f32.mrb[13].mxu0 }
 0x18e   :  { %v289_v5 = vadd.f32 %v288_v4, %v181_v33 }
 0x18f   :  { %v308_v6 = vadd.f32 %v307_v0, %v287_v3 }
 0x190   :  { %v322_v7 = vadd.f32 %v321_v1, %v289_v5  ;;  %v292_v8 = vpop.f32.mrb[14].mxu0 }
 0x191   :  { %v293_v9 = vadd.f32 %v292_v8, %v177_v31  ;;  %v294_v10 = vpop.f32.mrb[15].mxu0 }
 0x192   :  { %v295_v11 = vadd.f32 %v294_v10, %v181_v33 }
 0x193   :  { %v309_v12 = vadd.f32 %v308_v6, %v293_v9 }
 0x194   :  { %v323_v13 = vadd.f32 %v322_v7, %v295_v11  ;;  %v298_v14 = vpop.f32.mrb[16].mxu0 }
 0x195   :  { %v299_v15 = vadd.f32 %v298_v14, %v177_v31  ;;  %v300_v16 = vpop.f32.mrb[17].mxu0 }
 0x196   :  { %v301_v17 = vadd.f32 %v300_v16, %v181_v33 }
 0x197   :  { %v310_v18 = vadd.f32 %v309_v12, %v299_v15 }
 0x198   :  { %v324_v19 = vadd.f32 %v323_v13, %v301_v17 }
 0x199   :  { %v311_v20 = vrot.slane %v310_v18, 4 }
 0x19a   :  { %v325_v21 = vrot.slane %v324_v19, 4 }
 0x19b   :  { %v312_v22 = vadd.f32 %v311_v20, %v310_v18 }
 0x19c   :  { %v326_v23 = vadd.f32 %v325_v21, %v324_v19 }
 0x19d   :  { %v313_v24 = vrot.slane %v312_v22, 2 }
 0x19e   :  { %v327_v25 = vrot.slane %v326_v23, 2 }
 0x19f   :  { %v314_v26 = vadd.f32 %v313_v24, %v312_v22 }
 0x1a0   :  { %v328_v27 = vadd.f32 %v327_v25, %v326_v23 }
 0x1a1   :  { %v315_v28 = vrot.slane %v314_v26, 1 }
 0x1a2   :  { %v329_v29 = vrot.slane %v328_v27, 1 }
 0x1a3   :  { %v316_v30 = vadd.f32 %v315_v28, %v314_v26 }
 0x1a4   :  { %v330_v32 = vadd.f32 %v329_v29, %v328_v27 }
 0x1a5   :  { %v332_v34 = vmul.f32 0.013888889, %v316_v30 }
 0x1a6   :  { %v333_v37 = vmul.f32 0.013888889, %v330_v32 }
 0x1a7   :  { %v7274_v31 = vsub.f32 %v7255_v35, %v332_v34  ;;  %v7277_v33 = vsub.f32 %v7257_v36, %v332_v34  ;;  %v7279_v40 = vsub.f32 %v263_v43, %v332_v34  ;;  %v7281_v41 = vsub.f32 %v269_v49, %v332_v34 }
 0x1a8   :  { %v7283_v42 = vsub.f32 %v275_v55, %v332_v34  ;;  %v7285_v44 = vsub.f32 %v281_v61, %v332_v34  ;;  %v7287_v46 = vsub.f32 %v287_v3, %v332_v34  ;;  %v7289_v47 = vsub.f32 %v293_v9, %v332_v34 }
 0x1a9   :  { %v7291_v48 = vsub.f32 %v299_v15, %v332_v34  ;;  %v352_v35 = vmul.f32 %v7274_v31, %v7274_v31  ;;  %v354_v36 = vmul.f32 %v7277_v33, %v7277_v33  ;;  %v356_v43 = vmul.f32 %v7279_v40, %v7279_v40 }
 0x1aa   :  { %v358_v49 = vmul.f32 %v7281_v41, %v7281_v41  ;;  %v7302_v52 = vsub.f32 %v7259_v38, %v333_v37  ;;  %v7305_v53 = vsub.f32 %v7261_v39, %v333_v37  ;;  %v7308_v54 = vsub.f32 %v7267_v45, %v333_v37 }
 0x1ab   :  { %v370_v50 = vadd.f32 %v354_v36, %v352_v35  ;;  %v7311_v55 = vsub.f32 %v7270_v51, %v333_v37  ;;  %v7313_v56 = vsub.f32 %v277_v57, %v333_v37  ;;  %v7315_v59 = vsub.f32 %v283_v63, %v333_v37 }
 0x1ac   :  { %v7317_v60 = vsub.f32 %v289_v5, %v333_v37  ;;  %v7319_v61 = vsub.f32 %v295_v11, %v333_v37  ;;  %v7321_v38 = vsub.f32 %v301_v17, %v333_v37  ;;  %v353_v39 = vmul.f32 %v7302_v52, %v7302_v52 }
 0x1ad   :  { %v371_v58 = vadd.f32 %v370_v50, %v356_v43  ;;  %v355_v45 = vmul.f32 %v7305_v53, %v7305_v53  ;;  %v360_v51 = vmul.f32 %v7283_v42, %v7283_v42  ;;  %v357_v62 = vmul.f32 %v7308_v54, %v7308_v54 }
 0x1ae   :  { %v362_v0 = vmul.f32 %v7285_v44, %v7285_v44  ;;  %v359_v2 = vmul.f32 %v7311_v55, %v7311_v55  ;;  %v364_v4 = vmul.f32 %v7287_v46, %v7287_v46  ;;  %v361_v6 = vmul.f32 %v7313_v56, %v7313_v56 }
 0x1af   :  { %v372_v57 = vadd.f32 %v371_v58, %v358_v49  ;;  %v384_v63 = vadd.f32 %v355_v45, %v353_v39  ;;  %v366_v8 = vmul.f32 %v7289_v47, %v7289_v47  ;;  %v363_v10 = vmul.f32 %v7315_v59, %v7315_v59 }
 0x1b0   :  { %v368_v12 = vmul.f32 %v7291_v48, %v7291_v48  ;;  %v365_v14 = vmul.f32 %v7317_v60, %v7317_v60  ;;  %v367_v17 = vmul.f32 %v7319_v61, %v7319_v61  ;;  %v369_v20 = vmul.f32 %v7321_v38, %v7321_v38 }
 0x1b1   :  { %v373_v1 = vadd.f32 %v372_v57, %v360_v51  ;;  %v385_v3 = vadd.f32 %v384_v63, %v357_v62 }
 0x1b3   :  { %v374_v5 = vadd.f32 %v373_v1, %v362_v0  ;;  %v386_v7 = vadd.f32 %v385_v3, %v359_v2 }
 0x1b5   :  { %v375_v9 = vadd.f32 %v374_v5, %v364_v4  ;;  %v387_v11 = vadd.f32 %v386_v7, %v361_v6 }
 0x1b7   :  { %v376_v13 = vadd.f32 %v375_v9, %v366_v8  ;;  %v388_v15 = vadd.f32 %v387_v11, %v363_v10 }
 0x1b9   :  { %v377_v16 = vadd.f32 %v376_v13, %v368_v12  ;;  %v389_v18 = vadd.f32 %v388_v15, %v365_v14 }
 0x1bb   :  { %v378_v19 = vrot.slane %v377_v16, 4  ;;  %v390_v21 = vadd.f32 %v389_v18, %v367_v17  ;;  %v479_v17 = vld [vmem:[#allocation8 + $0x98] sm:$0xff] }
 0x1bd   :  { %v379_v22 = vadd.f32 %v378_v19, %v377_v16  ;;  %v391_v23 = vadd.f32 %v390_v21, %v369_v20  ;;  %v1024_v20 = vld [vmem:[#allocation8 + $0x590] sm:$0xff] }
 0x1bf   :  { %v380_v24 = vrot.slane %v379_v22, 2  ;;  %v392_v25 = vrot.slane %v391_v23, 4 }
 0x1c1   :  { %v381_v26 = vadd.f32 %v380_v24, %v379_v22  ;;  %v393_v27 = vadd.f32 %v392_v25, %v391_v23  ;;  %v1025_v23 = vld [vmem:[#allocation8 + $0x598] sm:$0xff] }
 0x1c3   :  { %v382_v28 = vrot.slane %v381_v26, 1  ;;  %v394_v29 = vrot.slane %v393_v27, 2 }
 0x1c5   :  { %v383_v30 = vadd.f32 %v382_v28, %v381_v26  ;;  %v395_v32 = vadd.f32 %v394_v29, %v393_v27  ;;  %v462_v29 = vld [vmem:[#allocation8 + $0x10] sm:$0xff] }
 0x1c7   :  { %v398_v34 = vmul.f32 0.013888889, %v383_v30  ;;  %v396_v37 = vrot.slane %v395_v32, 1  ;;  %v463_v30 = vld [vmem:[#allocation8 + $0x18] sm:$0xff] }
 0x1c9   :  { %v400_v35 = vadd.f32 1e-05, %v398_v34  ;;  %v397_v36 = vadd.f32 %v396_v37, %v395_v32  ;;  %v1008_v37 = vld [vmem:[#allocation8 + $0x510] sm:$0xff] }
 0x1cb   :  { %6965 = vrsqrt.f32 %v400_v35  ;;  %v399_v43 = vmul.f32 0.013888889, %v397_v36  ;;  %v1009_v35 = vld [vmem:[#allocation8 + $0x518] sm:$0xff]  ;;  %v480_v36 = vld [vmem:[#allocation8 + $0xa0] sm:$0xff] }
 0x1cd   :  { %v401_v49 = vadd.f32 1e-05, %v399_v43 }
 0x1cf   :  { %6967 = vrsqrt.f32 %v401_v49  ;;  %v5968_v49 = vpack.c.bf16 %v1025_v23, %v1024_v20  ;;  %v488_v23 = vld [vmem:[#allocation8 + $0xe0] sm:$0xff] }
 0x1d5   :  { %v6966_v50 = vpop.eup %6965 }
 0x1d6   :  { %v404_v58 = vmul.f32 %v6966_v50, %v7274_v31  ;;  %v406_v39 = vmul.f32 %v6966_v50, %v7277_v33  ;;  %v408_v45 = vmul.f32 %v6966_v50, %v7279_v40  ;;  %v410_v51 = vmul.f32 %v6966_v50, %v7281_v41 }
 0x1d7   :  { %v412_v57 = vmul.f32 %v6966_v50, %v7283_v42  ;;  %v414_v62 = vmul.f32 %v6966_v50, %v7285_v44  ;;  %v416_v63 = vmul.f32 %v6966_v50, %v7287_v46  ;;  %v418_v0 = vmul.f32 %v6966_v50, %v7289_v47 }
 0x1d8   :  { %v420_v1 = vmul.f32 %v6966_v50, %v7291_v48  ;;  %v422_v2 = vmax.f32 %v404_v58, 0.0  ;;  %v424_v3 = vmax.f32 %v406_v39, 0.0  ;;  %v426_v4 = vmax.f32 %v408_v45, 0.0  ;;  %v481_v50 = vld [vmem:[#allocation8 + $0xa8] sm:$0xff]  ;;  %v1026_v58 = vld [vmem:[#allocation8 + $0x5a0] sm:$0xff] }
 0x1d9   :  { %v428_v31 = vmax.f32 %v410_v51, 0.0  ;;  %v430_v5 = vmax.f32 %v412_v57, 0.0  ;;  %v432_v33 = vmax.f32 %v414_v62, 0.0  ;;  %v434_v6 = vmax.f32 %v416_v63, 0.0  ;;  %v6968_v40 = vpop.eup %6967  ;;  %v1027_v39 = vld [vmem:[#allocation8 + $0x5a8] sm:$0xff]  ;;  %v464_v63 = vld [vmem:[#allocation8 + $0x20] sm:$0xff] }
 0x1da   :  { %v436_v7 = vmax.f32 %v418_v0, 0.0  ;;  %v438_v41 = vmax.f32 %v420_v1, 0.0  ;;  %440 = vst [vmem:[#allocation2] sm:$0xff] %v422_v2  ;;  %442 = vst [vmem:[#allocation2 + $0x10] sm:$0xff] %v424_v3  ;;  %v405_v42 = vmul.f32 %v6968_v40, %v7302_v52  ;;  %v407_v44 = vmul.f32 %v6968_v40, %v7305_v53  ;;  %v465_v0 = vld [vmem:[#allocation8 + $0x28] sm:$0xff]  ;;  %v1010_v3 = vld [vmem:[#allocation8 + $0x520] sm:$0xff] }
 0x1db   :  { %444 = vst [vmem:[#allocation2 + $0x20] sm:$0xff] %v426_v4  ;;  %446 = vst [vmem:[#allocation2 + $0x30] sm:$0xff] %v428_v31  ;;  %v409_v46 = vmul.f32 %v6968_v40, %v7308_v54  ;;  %v411_v47 = vmul.f32 %v6968_v40, %v7311_v55  ;;  %v413_v48 = vmul.f32 %v6968_v40, %v7313_v56  ;;  %v460_v56 = vld [vmem:[#allocation8] sm:$0xff]  ;;  %v1011_v4 = vld [vmem:[#allocation8 + $0x528] sm:$0xff] }
 0x1dc   :  { %448 = vst [vmem:[#allocation2 + $0x40] sm:$0xff] %v430_v5  ;;  %450 = vst [vmem:[#allocation2 + $0x50] sm:$0xff] %v432_v33  ;;  %v415_v8 = vmul.f32 %v6968_v40, %v7315_v59  ;;  %v417_v9 = vmul.f32 %v6968_v40, %v7317_v60  ;;  %v419_v10 = vmul.f32 %v6968_v40, %v7319_v61  ;;  %v423_v12 = vmax.f32 %v405_v42, 0.0  ;;  %v461_v59 = vld [vmem:[#allocation8 + $0x8] sm:$0xff]  ;;  %v1006_v60 = vld [vmem:[#allocation8 + $0x500] sm:$0xff] }
 0x1dd   :  { %452 = vst [vmem:[#allocation2 + $0x60] sm:$0xff] %v434_v6  ;;  %454 = vst [vmem:[#allocation2 + $0x70] sm:$0xff] %v436_v7  ;;  %v421_v11 = vmul.f32 %v6968_v40, %v7321_v38  ;;  %v425_v52 = vmax.f32 %v407_v44, 0.0  ;;  %v427_v13 = vmax.f32 %v409_v46, 0.0  ;;  %v429_v53 = vmax.f32 %v411_v47, 0.0  ;;  %v1007_v61 = vld [vmem:[#allocation8 + $0x508] sm:$0xff] }
 0x1de   :  { %456 = vst [vmem:[#allocation2 + $0x80] sm:$0xff] %v438_v41  ;;  %v431_v14 = vmax.f32 %v413_v48, 0.0  ;;  %v433_v54 = vmax.f32 %v415_v8, 0.0  ;;  %v435_v15 = vmax.f32 %v417_v9, 0.0  ;;  %v437_v55 = vmax.f32 %v419_v10, 0.0  ;;  %441 = vst [vmem:[#allocation2 + $0x8] sm:$0xff] %v423_v12 }
 0x1df   :  { %v439_v16 = vmax.f32 %v421_v11, 0.0  ;;  %443 = vst [vmem:[#allocation2 + $0x18] sm:$0xff] %v425_v52  ;;  %445 = vst [vmem:[#allocation2 + $0x28] sm:$0xff] %v427_v13  ;;  %v478_v38 = vld [vmem:[#allocation8 + $0x90] sm:$0xff]  ;;  %v5838_v26 = vpack.c.bf16 %v461_v59, %v460_v56  ;;  %v5966_v27 = vpack.c.bf16 %v1007_v61, %v1006_v60  ;;  %v5842_v57 = vpack.c.bf16 %v463_v30, %v462_v29  ;;  %v483_v5 = vld [vmem:[#allocation8 + $0xb8] sm:$0xff] }
 0x1e0   :  { %447 = vst [vmem:[#allocation2 + $0x38] sm:$0xff] %v429_v53  ;;  %449 = vst [vmem:[#allocation2 + $0x48] sm:$0xff] %v431_v14  ;;  %v5840_v43 = vpack.c.bf16 %v479_v17, %v478_v38  ;;  %v5970_v62 = vpack.c.bf16 %v1009_v35, %v1008_v37  ;;  %v5844_v1 = vpack.c.bf16 %v481_v50, %v480_v36  ;;  %v482_v31 = vld [vmem:[#allocation8 + $0xb0] sm:$0xff]  ;;  %v1029_v6 = vld [vmem:[#allocation8 + $0x5b8] sm:$0xff] }
 0x1e1   :  { %451 = vst [vmem:[#allocation2 + $0x58] sm:$0xff] %v433_v54  ;;  %453 = vst [vmem:[#allocation2 + $0x68] sm:$0xff] %v435_v15  ;;  %v492_v18 = vld [vmem:[#allocation2] sm:$0xc]  ;;  %v785_v19 = vld [vmem:[#allocation2] sm:$0xc0]  ;;  %v5972_v2 = vpack.c.bf16 %v1027_v39, %v1026_v58  ;;  %v5846_v40 = vpack.c.bf16 %v465_v0, %v464_v63  ;;  %v5974_v7 = vpack.c.bf16 %v1011_v4, %v1010_v3 }
 0x1e2   :  { %455 = vst [vmem:[#allocation2 + $0x78] sm:$0xff] %v437_v55  ;;  %457 = vst [vmem:[#allocation2 + $0x88] sm:$0xff] %v439_v16  ;;  %v529_v32 = vrot.slane %v492_v18, 2  ;;  %v822_v34 = vrot.slane %v785_v19, 6  ;;  %v1028_v33 = vld [vmem:[#allocation8 + $0x5b0] sm:$0xff]  ;;  %v467_v42 = vld [vmem:[#allocation8 + $0x38] sm:$0xff]  ;;  %v5848_v44 = vpack.c.bf16 %v483_v5, %v482_v31 }
 0x1e3   :  { %v466_v41 = vld [vmem:[#allocation8 + $0x30] sm:$0xff]  ;;  %v5976_v46 = vpack.c.bf16 %v1029_v6, %v1028_v33  ;;  %v1013_v48 = vld [vmem:[#allocation8 + $0x538] sm:$0xff]  ;;  %v484_v8 = vld [vmem:[#allocation8 + $0xc0] sm:$0xff] }
 0x1e4   :  { %v1012_v47 = vld [vmem:[#allocation8 + $0x530] sm:$0xff]  ;;  %v485_v9 = vld [vmem:[#allocation8 + $0xc8] sm:$0xff]  ;;  %v1030_v10 = vld [vmem:[#allocation8 + $0x5c0] sm:$0xff]  ;;  %v5850_v12 = vpack.c.bf16 %v467_v42, %v466_v41 }
 0x1e5   :  { %v493_v21 = vld [vmem:[#allocation2 + $0x8] sm:$0xc]  ;;  %v786_v22 = vld [vmem:[#allocation2 + $0x8] sm:$0xc0]  ;;  %v459_v51 = vld [vmem:[#allocation2 + $0x8] sm:$0x3]  ;;  %v5978_v52 = vpack.c.bf16 %v1013_v48, %v1012_v47  ;;  %v5852_v14 = vpack.c.bf16 %v485_v9, %v484_v8 }
 0x1e6   :  { %v530_v24 = vrot.slane %v493_v21, 2  ;;  %v823_v25 = vrot.slane %v786_v22, 6  ;;  %v1004_v28 = vld [vmem:[#allocation2 + $0x18] sm:$0xc]  ;;  %v486_v16 = vld [vmem:[#allocation8 + $0xd0] sm:$0xff]  ;;  %v487_v56 = vld [vmem:[#allocation8 + $0xd8] sm:$0xff] }
 0x1e7   :  { %v1041_v45 = vrot.slane %v1004_v28, 2  ;;  %v1031_v11 = vld [vmem:[#allocation8 + $0x5c8] sm:$0xff]  ;;  %v468_v13 = vld [vmem:[#allocation8 + $0x40] sm:$0xff]  ;;  %v1032_v59 = vld [vmem:[#allocation8 + $0x5d0] sm:$0xff]  ;;  %v5856_v19 = vpack.c.bf16 %v487_v56, %v486_v16 }
 0x1e8   :  { %597 = vmatprep.mubr.f32.mxu1 %v530_v24  ;;  %890 = vmatprep.mubr.f32.mxu0 %v823_v25  ;;  %v469_v53 = vld [vmem:[#allocation8 + $0x48] sm:$0xff]  ;;  %v5980_v54 = vpack.c.bf16 %v1031_v11, %v1030_v10  ;;  %v1014_v15 = vld [vmem:[#allocation8 + $0x540] sm:$0xff]  ;;  %v1033_v60 = vld [vmem:[#allocation8 + $0x5d8] sm:$0xff] }
 0x1e9   :  { %598 = vmatmul.mubr.f32.vlgmr.msra.gmra.mrb[0].mxu1 %v529_v32  ;;  %891 = vmatmul.mubr.f32.vlgmr.msra.gmra.mrb[18].mxu0 %v822_v34  ;;  %v1015_v55 = vld [vmem:[#allocation8 + $0x548] sm:$0xff]  ;;  %v5854_v61 = vpack.c.bf16 %v469_v53, %v468_v13  ;;  %v470_v17 = vld [vmem:[#allocation8 + $0x50] sm:$0xff]  ;;  %v471_v18 = vld [vmem:[#allocation8 + $0x58] sm:$0xff]  ;;  %v5984_v20 = vpack.c.bf16 %v1033_v60, %v1032_v59 }
 0x1ea   :  { %5839 = vmatpush3.bf16.msra.mxu1 %v5838_v26  ;;  %5967 = vmatpush3.bf16.msra.mxu0 %v5966_v27  ;;  %v5982_v38 = vpack.c.bf16 %v1015_v55, %v1014_v15  ;;  %v1016_v21 = vld [vmem:[#allocation8 + $0x550] sm:$0xff]  ;;  %v1017_v22 = vld [vmem:[#allocation8 + $0x558] sm:$0xff]  ;;  %v489_v24 = vld [vmem:[#allocation8 + $0xe8] sm:$0xff]  ;;  %v5858_v27 = vpack.c.bf16 %v471_v18, %v470_v17 }
 0x1eb   :  { %667 = vmatprep.mubr.f32.mxu1 %v459_v51  ;;  %1108 = vmatprep.mubr.f32.mxu0 %v1041_v45  ;;  %v1034_v25 = vld [vmem:[#allocation8 + $0x5e0] sm:$0xff]  ;;  %v1035_v26 = vld [vmem:[#allocation8 + $0x5e8] sm:$0xff]  ;;  %v5986_v28 = vpack.c.bf16 %v1017_v22, %v1016_v21  ;;  %v5860_v32 = vpack.c.bf16 %v489_v24, %v488_v23  ;;  %v490_v36 = vld [vmem:[#allocation8 + $0xf0] sm:$0xff] }
 0x1ec   :  { %5841 = vmatprep.subr.bf16.mxu1 %v5840_v43  ;;  %5969 = vmatprep.subr.bf16.mxu0 %v5968_v49  ;;  %v472_v29 = vld [vmem:[#allocation8 + $0x60] sm:$0xff]  ;;  %v473_v30 = vld [vmem:[#allocation8 + $0x68] sm:$0xff]  ;;  %v5988_v34 = vpack.c.bf16 %v1035_v26, %v1034_v25  ;;  %v491_v43 = vld [vmem:[#allocation8 + $0xf8] sm:$0xff] }
 0x1ed   :  { %v1018_v37 = vld [vmem:[#allocation8 + $0x560] sm:$0xff]  ;;  %v1019_v35 = vld [vmem:[#allocation8 + $0x568] sm:$0xff]  ;;  %v1036_v49 = vld [vmem:[#allocation8 + $0x5f0] sm:$0xff]  ;;  %v5862_v58 = vpack.c.bf16 %v473_v30, %v472_v29 }
 0x1ee   :  { %5843 = vmatpush3.bf16.msra.mxu1 %v5842_v57  ;;  %5971 = vmatpush3.bf16.msra.mxu0 %v5970_v62  ;;  %v1037_v50 = vld [vmem:[#allocation8 + $0x5f8] sm:$0xff]  ;;  %v5990_v39 = vpack.c.bf16 %v1019_v35, %v1018_v37  ;;  %v474_v45 = vld [vmem:[#allocation8 + $0x70] sm:$0xff]  ;;  %v5864_v57 = vpack.c.bf16 %v491_v43, %v490_v36  ;;  %v1246_v3 = vld [vmem:[#allocation8 + $0x780] sm:$0xff] }
 0x1ef   :  { %5845 = vmatprep.subr.bf16.mxu1 %v5844_v1  ;;  %5973 = vmatprep.subr.bf16.mxu0 %v5972_v2  ;;  %v475_v51 = vld [vmem:[#allocation8 + $0x78] sm:$0xff]  ;;  %v5992_v62 = vpack.c.bf16 %v1037_v50, %v1036_v49  ;;  %v1020_v63 = vld [vmem:[#allocation8 + $0x570] sm:$0xff]  ;;  %v692_v1 = vld [vmem:[#allocation8 + $0x280] sm:$0xff] }
 0x1f0   :  { %v1021_v0 = vld [vmem:[#allocation8 + $0x578] sm:$0xff]  ;;  %v693_v2 = vld [vmem:[#allocation8 + $0x288] sm:$0xff]  ;;  %v5866_v31 = vpack.c.bf16 %v475_v51, %v474_v45  ;;  %v676_v33 = vld [vmem:[#allocation8 + $0x200] sm:$0xff] }
 0x1f1   :  { %v1247_v4 = vld [vmem:[#allocation8 + $0x788] sm:$0xff]  ;;  %v5994_v5 = vpack.c.bf16 %v1021_v0, %v1020_v63  ;;  %v5868_v6 = vpack.c.bf16 %v693_v2, %v692_v1  ;;  %v1230_v41 = vld [vmem:[#allocation8 + $0x700] sm:$0xff]  ;;  %v695_v47 = vld [vmem:[#allocation8 + $0x298] sm:$0xff] }
 0x1f2   :  { %5847 = vmatpush3.bf16.msra.mxu1 %v5846_v40  ;;  %5975 = vmatpush3.bf16.msra.mxu0 %v5974_v7  ;;  %v6028_v40 = vpack.c.bf16 %v1247_v4, %v1246_v3  ;;  %v677_v7 = vld [vmem:[#allocation8 + $0x208] sm:$0xff]  ;;  %v674_v48 = vld [vmem:[#allocation2 + $0x8] sm:$0x30]  ;;  %v1248_v8 = vld [vmem:[#allocation8 + $0x790] sm:$0xff] }
 0x1f3   :  { %5849 = vmatprep.subr.bf16.mxu1 %v5848_v44  ;;  %5977 = vmatprep.subr.bf16.mxu0 %v5976_v46  ;;  %v1231_v42 = vld [vmem:[#allocation8 + $0x708] sm:$0xff]  ;;  %v1003_v44 = vld [vmem:[#allocation2 + $0x10] sm:$0xc]  ;;  %v694_v46 = vld [vmem:[#allocation8 + $0x290] sm:$0xff]  ;;  %v5870_v10 = vpack.c.bf16 %v677_v7, %v676_v33  ;;  %v711_v55 = vrot.slane %v674_v48, 4 }
 0x1f4   :  { %v1249_v9 = vld [vmem:[#allocation8 + $0x798] sm:$0xff]  ;;  %v1228_v11 = vld [vmem:[#allocation2 + $0x18] sm:$0xc0]  ;;  %v6030_v13 = vpack.c.bf16 %v1231_v42, %v1230_v41  ;;  %v458_v15 = vld [vmem:[#allocation2] sm:$0x3]  ;;  %v5872_v16 = vpack.c.bf16 %v695_v47, %v694_v46 }
 0x1f5   :  { %v679_v53 = vld [vmem:[#allocation8 + $0x218] sm:$0xff]  ;;  %v6032_v56 = vpack.c.bf16 %v1249_v9, %v1248_v8  ;;  %v696_v59 = vld [vmem:[#allocation8 + $0x2a0] sm:$0xff]  ;;  %v697_v60 = vld [vmem:[#allocation8 + $0x2a8] sm:$0xff] }
 0x1f6   :  { %5851 = vmatpush3.bf16.msra.mxu1 %v5850_v12  ;;  %5979 = vmatpush3.bf16.msra.mxu0 %v5978_v52  ;;  %v678_v12 = vld [vmem:[#allocation8 + $0x210] sm:$0xff]  ;;  %v1040_v52 = vrot.slane %v1003_v44, 2  ;;  %v1251_v17 = vld [vmem:[#allocation8 + $0x7a8] sm:$0xff]  ;;  %v680_v21 = vld [vmem:[#allocation8 + $0x220] sm:$0xff] }
 0x1f7   :  { %5853 = vmatprep.subr.bf16.mxu1 %v5852_v14  ;;  %5981 = vmatprep.subr.bf16.mxu0 %v5980_v54  ;;  %v1232_v14 = vld [vmem:[#allocation8 + $0x710] sm:$0xff]  ;;  %v1233_v54 = vld [vmem:[#allocation8 + $0x718] sm:$0xff]  ;;  %v5874_v18 = vpack.c.bf16 %v679_v53, %v678_v12  ;;  %v681_v22 = vld [vmem:[#allocation8 + $0x228] sm:$0xff] }
 0x1f8   :  { %v1234_v23 = vld [vmem:[#allocation8 + $0x720] sm:$0xff]  ;;  %v1235_v25 = vld [vmem:[#allocation8 + $0x728] sm:$0xff]  ;;  %v698_v26 = vld [vmem:[#allocation8 + $0x2b0] sm:$0xff]  ;;  %v5878_v30 = vpack.c.bf16 %v681_v22, %v680_v21 }
 0x1f9   :  { %v1253_v29 = vld [vmem:[#allocation8 + $0x7b8] sm:$0xff]  ;;  %v682_v37 = vld [vmem:[#allocation8 + $0x230] sm:$0xff]  ;;  %v700_v50 = vld [vmem:[#allocation8 + $0x2c0] sm:$0xff] }
 0x1fa   :  { %5855 = vmatpush3.bf16.msra.mxu1 %v5854_v61  ;;  %5983 = vmatpush3.bf16.msra.mxu0 %v5982_v38  ;;  %v1265_v61 = vrot.slane %v1228_v11, 6  ;;  %v1250_v38 = vld [vmem:[#allocation8 + $0x7a0] sm:$0xff]  ;;  %v683_v35 = vld [vmem:[#allocation8 + $0x238] sm:$0xff]  ;;  %v1236_v36 = vld [vmem:[#allocation8 + $0x730] sm:$0xff] }
 0x1fb   :  { %5857 = vmatprep.subr.bf16.mxu1 %v5856_v19  ;;  %5985 = vmatprep.subr.bf16.mxu0 %v5984_v20  ;;  %v6034_v19 = vpack.c.bf16 %v1233_v54, %v1232_v14  ;;  %v5876_v20 = vpack.c.bf16 %v697_v60, %v696_v59  ;;  %v6036_v24 = vpack.c.bf16 %v1251_v17, %v1250_v38  ;;  %v1237_v49 = vld [vmem:[#allocation8 + $0x738] sm:$0xff]  ;;  %v1255_v45 = vld [vmem:[#allocation8 + $0x7c8] sm:$0xff]  ;;  %v684_v63 = vld [vmem:[#allocation8 + $0x240] sm:$0xff] }
 0x1fc   :  { %v5882_v51 = vpack.c.bf16 %v683_v35, %v682_v37  ;;  %v685_v0 = vld [vmem:[#allocation8 + $0x248] sm:$0xff]  ;;  %v1238_v1 = vld [vmem:[#allocation8 + $0x740] sm:$0xff]  ;;  %v702_v4 = vld [vmem:[#allocation8 + $0x2d0] sm:$0xff] }
 0x1fd   :  { %v1239_v3 = vld [vmem:[#allocation8 + $0x748] sm:$0xff]  ;;  %v1257_v33 = vld [vmem:[#allocation8 + $0x7d8] sm:$0xff]  ;;  %v686_v41 = vld [vmem:[#allocation8 + $0x250] sm:$0xff] }
 0x1fe   :  { %5859 = vmatpush3.bf16.msra.mxu1 %v5858_v27  ;;  %5987 = vmatpush3.bf16.msra.mxu0 %v5986_v28  ;;  %v699_v27 = vld [vmem:[#allocation8 + $0x2b8] sm:$0xff]  ;;  %v1252_v28 = vld [vmem:[#allocation8 + $0x7b0] sm:$0xff]  ;;  %v704_v48 = vld [vmem:[#allocation8 + $0x2e0] sm:$0xff] }
 0x1ff   :  { %5861 = vmatprep.subr.bf16.mxu1 %v5860_v32  ;;  %5989 = vmatprep.subr.bf16.mxu0 %v5988_v34  ;;  %v6038_v32 = vpack.c.bf16 %v1235_v25, %v1234_v23  ;;  %v5880_v34 = vpack.c.bf16 %v699_v27, %v698_v26  ;;  %v6040_v43 = vpack.c.bf16 %v1253_v29, %v1252_v28  ;;  %v687_v42 = vld [vmem:[#allocation8 + $0x258] sm:$0xff]  ;;  %v1240_v44 = vld [vmem:[#allocation8 + $0x750] sm:$0xff]  ;;  %v705_v8 = vld [vmem:[#allocation8 + $0x2e8] sm:$0xff] }
 0x200   :  { %v1241_v47 = vld [vmem:[#allocation8 + $0x758] sm:$0xff]  ;;  %v1258_v9 = vld [vmem:[#allocation8 + $0x7e0] sm:$0xff]  ;;  %v5890_v11 = vpack.c.bf16 %v687_v42, %v686_v41  ;;  %v689_v53 = vld [vmem:[#allocation8 + $0x268] sm:$0xff] }
 0x201   :  { %v6050_v12 = vpack.c.bf16 %v1241_v47, %v1240_v44  ;;  %v1242_v14 = vld [vmem:[#allocation8 + $0x760] sm:$0xff]  ;;  %v1261_v59 = vld [vmem:[#allocation8 + $0x7f8] sm:$0xff]  ;;  %v690_v17 = vld [vmem:[#allocation8 + $0x270] sm:$0xff] }
 0x202   :  { %5863 = vmatpush3.bf16.msra.mxu1 %v5862_v58  ;;  %5991 = vmatpush3.bf16.msra.mxu0 %v5990_v39  ;;  %v701_v58 = vld [vmem:[#allocation8 + $0x2c8] sm:$0xff]  ;;  %v1254_v39 = vld [vmem:[#allocation8 + $0x7c0] sm:$0xff]  ;;  %v1245_v21 = vld [vmem:[#allocation8 + $0x778] sm:$0xff] }
 0x203   :  { %5865 = vmatprep.subr.bf16.mxu1 %v5864_v57  ;;  %5993 = vmatprep.subr.bf16.mxu0 %v5992_v62  ;;  %v6042_v57 = vpack.c.bf16 %v1237_v49, %v1236_v36  ;;  %v5884_v62 = vpack.c.bf16 %v701_v58, %v700_v50  ;;  %v6044_v2 = vpack.c.bf16 %v1255_v45, %v1254_v39  ;;  %v916_v22 = vld [vmem:[#allocation8 + $0x480] sm:$0xff]  ;;  %v917_v23 = vld [vmem:[#allocation8 + $0x488] sm:$0xff]  ;;  %v919_v49 = vld [vmem:[#allocation8 + $0x498] sm:$0xff] }
 0x204   :  { %v1465_v25 = vld [vmem:[#allocation8 + $0x988] sm:$0xff]  ;;  %v5932_v28 = vpack.c.bf16 %v917_v23, %v916_v22  ;;  %v900_v29 = vld [vmem:[#allocation8 + $0x400] sm:$0xff]  ;;  %v1466_v58 = vld [vmem:[#allocation8 + $0x990] sm:$0xff] }
 0x205   :  { %v1448_v37 = vld [vmem:[#allocation8 + $0x900] sm:$0xff]  ;;  %v1449_v35 = vld [vmem:[#allocation8 + $0x908] sm:$0xff]  ;;  %v1467_v39 = vld [vmem:[#allocation8 + $0x998] sm:$0xff] }
 0x206   :  { %5867 = vmatpush3.bf16.msra.mxu1 %v5866_v31  ;;  %5995 = vmatpush3.bf16.msra.mxu0 %v5994_v5  ;;  %v703_v31 = vld [vmem:[#allocation8 + $0x2d8] sm:$0xff]  ;;  %v1256_v5 = vld [vmem:[#allocation8 + $0x7d0] sm:$0xff]  ;;  %v1227_v36 = vld [vmem:[#allocation2 + $0x10] sm:$0xc0] }
 0x207   :  { %5869 = vmatprep.subr.bf16.mxu1 %v5868_v6  ;;  %6029 = vmatprep.subr.bf16.mxu0 %v6028_v40  ;;  %v5886_v6 = vpack.c.bf16 %v685_v0, %v684_v63  ;;  %v6046_v40 = vpack.c.bf16 %v1239_v3, %v1238_v1  ;;  %v5888_v7 = vpack.c.bf16 %v703_v31, %v702_v4  ;;  %v902_v45 = vld [vmem:[#allocation8 + $0x410] sm:$0xff]  ;;  %v903_v63 = vld [vmem:[#allocation8 + $0x418] sm:$0xff]  ;;  %v1264_v1 = vrot.slane %v1227_v36, 6  ;;  %v920_v4 = vld [vmem:[#allocation8 + $0x4a0] sm:$0xff] }
 0x208   :  { %v6048_v46 = vpack.c.bf16 %v1257_v33, %v1256_v5  ;;  %v1450_v0 = vld [vmem:[#allocation8 + $0x910] sm:$0xff]  ;;  %v1451_v3 = vld [vmem:[#allocation8 + $0x918] sm:$0xff]  ;;  %v921_v31 = vld [vmem:[#allocation8 + $0x4a8] sm:$0xff]  ;;  %v6096_v5 = vpack.c.bf16 %v1467_v39, %v1466_v58  ;;  %v5938_v41 = vpack.c.bf16 %v903_v63, %v902_v45 }
 0x209   :  { %668 = vmatmul.mubr.f32.vlgmr.msra.gmra.mrb[2].mxu1 %v458_v15  ;;  %1109 = vmatmul.mubr.f32.vlgmr.msra.gmra.mrb[20].mxu0 %v1040_v52  ;;  %v5892_v52 = vpack.c.bf16 %v705_v8, %v704_v48  ;;  %v1243_v15 = vld [vmem:[#allocation8 + $0x768] sm:$0xff]  ;;  %v1468_v33 = vld [vmem:[#allocation8 + $0x9a0] sm:$0xff]  ;;  %v6098_v42 = vpack.c.bf16 %v1451_v3, %v1450_v0  ;;  %v5940_v44 = vpack.c.bf16 %v921_v31, %v920_v4  ;;  %v930_v3 = vld [vmem:[#allocation8 + $0x4f0] sm:$0xff] }
 0x20a   :  { %5871 = vmatpush3.bf16.msra.mxu1 %v5870_v10  ;;  %778 = vmatprep.mubr.f32.mxu1 %v711_v55  ;;  %v1259_v10 = vld [vmem:[#allocation8 + $0x7e8] sm:$0xff]  ;;  %v706_v55 = vld [vmem:[#allocation8 + $0x2f0] sm:$0xff]  ;;  %v1452_v48 = vld [vmem:[#allocation8 + $0x920] sm:$0xff] }
 0x20b   :  { %6031 = vmatpush3.bf16.msra.mxu0 %v6030_v13  ;;  %1332 = vmatprep.mubr.f32.mxu0 %v1265_v61  ;;  %v688_v13 = vld [vmem:[#allocation8 + $0x260] sm:$0xff]  ;;  %v6052_v54 = vpack.c.bf16 %v1259_v10, %v1258_v9  ;;  %v6054_v61 = vpack.c.bf16 %v1243_v15, %v1242_v14  ;;  %v905_v47 = vld [vmem:[#allocation8 + $0x428] sm:$0xff]  ;;  %v922_v10 = vld [vmem:[#allocation8 + $0x4b0] sm:$0xff] }
 0x20c   :  { %5873 = vmatprep.subr.bf16.mxu1 %v5872_v16  ;;  %6033 = vmatprep.subr.bf16.mxu0 %v6032_v56  ;;  %v707_v16 = vld [vmem:[#allocation8 + $0x2f8] sm:$0xff]  ;;  %v1260_v56 = vld [vmem:[#allocation8 + $0x7f0] sm:$0xff]  ;;  %v5894_v60 = vpack.c.bf16 %v689_v53, %v688_v13  ;;  %v1453_v9 = vld [vmem:[#allocation8 + $0x928] sm:$0xff] }
 0x20d   :  { %v5896_v38 = vpack.c.bf16 %v707_v16, %v706_v55  ;;  %v6102_v53 = vpack.c.bf16 %v1453_v9, %v1452_v48  ;;  %v907_v15 = vld [vmem:[#allocation8 + $0x438] sm:$0xff]  ;;  %v1454_v55 = vld [vmem:[#allocation8 + $0x930] sm:$0xff]  ;;  %v1456_v22 = vld [vmem:[#allocation8 + $0x940] sm:$0xff] }
 0x20e   :  { %5875 = vmatpush3.bf16.msra.mxu1 %v5874_v18  ;;  %v691_v18 = vld [vmem:[#allocation8 + $0x278] sm:$0xff]  ;;  %v1476_v58 = vld [vmem:[#allocation8 + $0x9e0] sm:$0xff]  ;;  %v1477_v39 = vld [vmem:[#allocation8 + $0x9e8] sm:$0xff] }
 0x20f   :  { %6035 = vmatpush3.bf16.msra.mxu0 %v6034_v19  ;;  %5877 = vmatprep.subr.bf16.mxu1 %v5876_v20  ;;  %v1244_v19 = vld [vmem:[#allocation8 + $0x770] sm:$0xff]  ;;  %v6056_v20 = vpack.c.bf16 %v1261_v59, %v1260_v56  ;;  %v5898_v26 = vpack.c.bf16 %v691_v18, %v690_v17  ;;  %v1455_v56 = vld [vmem:[#allocation8 + $0x938] sm:$0xff]  ;;  %v924_v59 = vld [vmem:[#allocation8 + $0x4c0] sm:$0xff] }
 0x210   :  { %6037 = vmatprep.subr.bf16.mxu0 %v6036_v24  ;;  %v1464_v24 = vld [vmem:[#allocation8 + $0x980] sm:$0xff]  ;;  %v6058_v27 = vpack.c.bf16 %v1245_v21, %v1244_v19  ;;  %v6106_v18 = vpack.c.bf16 %v1455_v56, %v1454_v55  ;;  %v909_v21 = vld [vmem:[#allocation8 + $0x448] sm:$0xff]  ;;  %v931_v4 = vld [vmem:[#allocation8 + $0x4f8] sm:$0xff] }
 0x211   :  { %v913_v63 = vld [vmem:[#allocation8 + $0x468] sm:$0xff]  ;;  %v1460_v0 = vld [vmem:[#allocation8 + $0x960] sm:$0xff]  ;;  %v1478_v31 = vld [vmem:[#allocation8 + $0x9f0] sm:$0xff] }
 0x212   :  { %5879 = vmatpush3.bf16.msra.mxu1 %v5878_v30  ;;  %v901_v30 = vld [vmem:[#allocation8 + $0x408] sm:$0xff]  ;;  %v1137_v55 = vld [vmem:[#allocation8 + $0x698] sm:$0xff]  ;;  %v1690_v56 = vld [vmem:[#allocation8 + $0xb90] sm:$0xff] }
 0x213   :  { %6039 = vmatpush3.bf16.msra.mxu0 %v6038_v32  ;;  %5881 = vmatprep.subr.bf16.mxu1 %v5880_v34  ;;  %v673_v32 = vld [vmem:[#allocation2] sm:$0x30]  ;;  %v6092_v34 = vpack.c.bf16 %v1465_v25, %v1464_v24  ;;  %v5934_v50 = vpack.c.bf16 %v901_v30, %v900_v29  ;;  %v1457_v24 = vld [vmem:[#allocation8 + $0x948] sm:$0xff] }
 0x214   :  { %6041 = vmatprep.subr.bf16.mxu0 %v6040_v43  ;;  %v918_v43 = vld [vmem:[#allocation8 + $0x490] sm:$0xff]  ;;  %v6110_v30 = vpack.c.bf16 %v1457_v24, %v1456_v22  ;;  %v1135_v48 = vld [vmem:[#allocation8 + $0x688] sm:$0xff]  ;;  %v897_v22 = vld [vmem:[#allocation2 + $0x10] sm:$0x3] }
 0x215   :  { %v926_v25 = vld [vmem:[#allocation8 + $0x4d0] sm:$0xff]  ;;  %v1689_v9 = vld [vmem:[#allocation8 + $0xb88] sm:$0xff] }
 0x216   :  { %5883 = vmatpush3.bf16.msra.mxu1 %v5882_v51  ;;  %v710_v51 = vrot.slane %v673_v32, 4 }
 0x217   :  { %6043 = vmatpush3.bf16.msra.mxu0 %v6042_v57  ;;  %5885 = vmatprep.subr.bf16.mxu1 %v5884_v62  ;;  %v6094_v57 = vpack.c.bf16 %v1449_v35, %v1448_v37  ;;  %v1446_v62 = vld [vmem:[#allocation2 + $0x28] sm:$0xc] }
 0x218   :  { %6045 = vmatprep.subr.bf16.mxu0 %v6044_v2  ;;  %v5936_v2 = vpack.c.bf16 %v919_v49, %v918_v43  ;;  %v911_v37 = vld [vmem:[#allocation8 + $0x458] sm:$0xff]  ;;  %v1458_v35 = vld [vmem:[#allocation8 + $0x950] sm:$0xff]  ;;  %v928_v49 = vld [vmem:[#allocation8 + $0x4e0] sm:$0xff] }
 0x219   :  { %v1459_v43 = vld [vmem:[#allocation8 + $0x958] sm:$0xff] }
 0x21a   :  { %5887 = vmatpush3.bf16.msra.mxu1 %v5886_v6  ;;  %v1469_v6 = vld [vmem:[#allocation8 + $0x9a8] sm:$0xff] }
 0x21b   :  { %6047 = vmatpush3.bf16.msra.mxu0 %v6046_v40  ;;  %5889 = vmatprep.subr.bf16.mxu1 %v5888_v7  ;;  %v898_v40 = vld [vmem:[#allocation2 + $0x18] sm:$0x3]  ;;  %v1483_v7 = vrot.slane %v1446_v62, 2  ;;  %v6100_v8 = vpack.c.bf16 %v1469_v6, %v1468_v33 }
 0x21c   :  { %6049 = vmatprep.subr.bf16.mxu0 %v6048_v46  ;;  %v904_v46 = vld [vmem:[#allocation8 + $0x420] sm:$0xff] }
 0x21d   :  { %v5942_v13 = vpack.c.bf16 %v905_v47, %v904_v46  ;;  %v912_v62 = vld [vmem:[#allocation8 + $0x460] sm:$0xff]  ;;  %v1463_v46 = vld [vmem:[#allocation8 + $0x978] sm:$0xff] }
 0x21e   :  { %5891 = vmatpush3.bf16.msra.mxu1 %v5890_v11  ;;  %v923_v11 = vld [vmem:[#allocation8 + $0x4b8] sm:$0xff]  ;;  %v5958_v33 = vpack.c.bf16 %v913_v63, %v912_v62  ;;  %v1134_v47 = vld [vmem:[#allocation8 + $0x680] sm:$0xff] }
 0x21f   :  { %6051 = vmatpush3.bf16.msra.mxu0 %v6050_v12  ;;  %5893 = vmatprep.subr.bf16.mxu1 %v5892_v52  ;;  %v1470_v12 = vld [vmem:[#allocation8 + $0x9b0] sm:$0xff]  ;;  %v1471_v52 = vld [vmem:[#allocation8 + $0x9b8] sm:$0xff]  ;;  %v5944_v14 = vpack.c.bf16 %v923_v11, %v922_v10 }
 0x220   :  { %6053 = vmatprep.subr.bf16.mxu0 %v6052_v54  ;;  %v906_v54 = vld [vmem:[#allocation8 + $0x430] sm:$0xff]  ;;  %v6104_v16 = vpack.c.bf16 %v1471_v52, %v1470_v12  ;;  %v5996_v12 = vpack.c.bf16 %v1135_v48, %v1134_v47  ;;  %v1118_v52 = vld [vmem:[#allocation8 + $0x600] sm:$0xff] }
 0x221   :  { %v5946_v17 = vpack.c.bf16 %v907_v15, %v906_v54  ;;  %v1673_v54 = vld [vmem:[#allocation8 + $0xb08] sm:$0xff]  ;;  %v1136_v15 = vld [vmem:[#allocation8 + $0x690] sm:$0xff]  ;;  %v1680_v47 = vld [vmem:[#allocation8 + $0xb40] sm:$0xff] }
 0x222   :  { %5895 = vmatpush3.bf16.msra.mxu1 %v5894_v60  ;;  %v925_v60 = vld [vmem:[#allocation8 + $0x4c8] sm:$0xff]  ;;  %v6000_v24 = vpack.c.bf16 %v1137_v55, %v1136_v15  ;;  %v1682_v15 = vld [vmem:[#allocation8 + $0xb50] sm:$0xff] }
 0x223   :  { %6055 = vmatpush3.bf16.msra.mxu0 %v6054_v61  ;;  %5897 = vmatprep.subr.bf16.mxu1 %v5896_v38  ;;  %v1472_v61 = vld [vmem:[#allocation8 + $0x9c0] sm:$0xff]  ;;  %v1473_v38 = vld [vmem:[#allocation8 + $0x9c8] sm:$0xff]  ;;  %v5948_v19 = vpack.c.bf16 %v925_v60, %v924_v59  ;;  %v1691_v59 = vld [vmem:[#allocation8 + $0xb98] sm:$0xff] }
 0x224   :  { %6057 = vmatprep.subr.bf16.mxu0 %v6056_v20  ;;  %v908_v20 = vld [vmem:[#allocation8 + $0x440] sm:$0xff]  ;;  %v6108_v23 = vpack.c.bf16 %v1473_v38, %v1472_v61  ;;  %v1116_v61 = vld [vmem:[#allocation2 + $0x18] sm:$0x30]  ;;  %v1120_v38 = vld [vmem:[#allocation8 + $0x610] sm:$0xff] }
 0x225   :  { %v5950_v29 = vpack.c.bf16 %v909_v21, %v908_v20  ;;  %v1674_v20 = vld [vmem:[#allocation8 + $0xb10] sm:$0xff]  ;;  %v1675_v21 = vld [vmem:[#allocation8 + $0xb18] sm:$0xff] }
 0x226   :  { %5899 = vmatpush3.bf16.msra.mxu1 %v5898_v26  ;;  %v927_v26 = vld [vmem:[#allocation8 + $0x4d8] sm:$0xff] }
 0x227   :  { %6059 = vmatpush3.bf16.msra.mxu0 %v6058_v27  ;;  %5933 = vmatprep.subr.bf16.mxu1 %v5932_v28  ;;  %v1474_v27 = vld [vmem:[#allocation8 + $0x9d0] sm:$0xff]  ;;  %v1475_v28 = vld [vmem:[#allocation8 + $0x9d8] sm:$0xff]  ;;  %v5952_v32 = vpack.c.bf16 %v927_v26, %v926_v25  ;;  %v1138_v25 = vld [vmem:[#allocation8 + $0x6a0] sm:$0xff] }
 0x228   :  { %6093 = vmatprep.subr.bf16.mxu0 %v6092_v34  ;;  %v910_v34 = vld [vmem:[#allocation8 + $0x450] sm:$0xff]  ;;  %v6112_v36 = vpack.c.bf16 %v1475_v28, %v1474_v27  ;;  %v1139_v26 = vld [vmem:[#allocation8 + $0x6a8] sm:$0xff]  ;;  %v1153_v27 = vrot.slane %v1116_v61, 4  ;;  %v6160_v28 = vpack.c.bf16 %v1691_v59, %v1690_v56  ;;  %v1146_v56 = vld [vmem:[#allocation8 + $0x6e0] sm:$0xff] }
 0x229   :  { %779 = vmatmul.mubr.f32.vlgmr.msra.gmra.mrb[4].mxu1 %v710_v51  ;;  %v5954_v45 = vpack.c.bf16 %v911_v37, %v910_v34  ;;  %v6114_v51 = vpack.c.bf16 %v1459_v43, %v1458_v35  ;;  %v6162_v37 = vpack.c.bf16 %v1675_v21, %v1674_v20  ;;  %v6004_v35 = vpack.c.bf16 %v1139_v26, %v1138_v25  ;;  %v1123_v43 = vld [vmem:[#allocation8 + $0x628] sm:$0xff]  ;;  %v1684_v21 = vld [vmem:[#allocation8 + $0xb60] sm:$0xff]  ;;  %v1149_v25 = vld [vmem:[#allocation8 + $0x6f8] sm:$0xff] }
 0x22a   :  { %1333 = vmatmul.mubr.f32.vlgmr.msra.gmra.mrb[22].mxu0 %v1264_v1  ;;  %5935 = vmatpush3.bf16.msra.mxu1 %v5934_v50  ;;  %v929_v50 = vld [vmem:[#allocation8 + $0x4e8] sm:$0xff]  ;;  %v6116_v1 = vpack.c.bf16 %v1477_v39, %v1476_v58  ;;  %v1140_v39 = vld [vmem:[#allocation8 + $0x6b0] sm:$0xff] }
 0x22b   :  { %996 = vmatprep.mubr.f32.mxu1 %v898_v40  ;;  %6095 = vmatpush3.bf16.msra.mxu0 %v6094_v57  ;;  %v5956_v57 = vpack.c.bf16 %v929_v50, %v928_v49  ;;  %v5960_v40 = vpack.c.bf16 %v931_v4, %v930_v3  ;;  %v1676_v49 = vld [vmem:[#allocation8 + $0xb20] sm:$0xff]  ;;  %v1677_v58 = vld [vmem:[#allocation8 + $0xb28] sm:$0xff]  ;;  %v1678_v3 = vld [vmem:[#allocation8 + $0xb30] sm:$0xff] }
 0x22c   :  { %1550 = vmatprep.mubr.f32.mxu0 %v1483_v7  ;;  %5937 = vmatprep.subr.bf16.mxu1 %v5936_v2  ;;  %v1461_v2 = vld [vmem:[#allocation8 + $0x968] sm:$0xff]  ;;  %v914_v7 = vld [vmem:[#allocation8 + $0x470] sm:$0xff]  ;;  %v6166_v63 = vpack.c.bf16 %v1677_v58, %v1676_v49 }
 0x22d   :  { %6097 = vmatprep.subr.bf16.mxu0 %v6096_v5  ;;  %v1479_v5 = vld [vmem:[#allocation8 + $0x9f8] sm:$0xff]  ;;  %v6118_v6 = vpack.c.bf16 %v1461_v2, %v1460_v0  ;;  %v1147_v59 = vld [vmem:[#allocation8 + $0x6e8] sm:$0xff]  ;;  %v1702_v26 = vld [vmem:[#allocation8 + $0xbf0] sm:$0xff] }
 0x22e   :  { %5939 = vmatpush3.bf16.msra.mxu1 %v5938_v41  ;;  %v915_v41 = vld [vmem:[#allocation8 + $0x478] sm:$0xff]  ;;  %v1701_v61 = vld [vmem:[#allocation8 + $0xbe8] sm:$0xff] }
 0x22f   :  { %6099 = vmatpush3.bf16.msra.mxu0 %v6098_v42  ;;  %5941 = vmatprep.subr.bf16.mxu1 %v5940_v44  ;;  %v1462_v42 = vld [vmem:[#allocation8 + $0x970] sm:$0xff]  ;;  %v6120_v44 = vpack.c.bf16 %v1479_v5, %v1478_v31  ;;  %v5962_v10 = vpack.c.bf16 %v915_v41, %v914_v7  ;;  %v1125_v2 = vld [vmem:[#allocation8 + $0x638] sm:$0xff]  ;;  %v1142_v5 = vld [vmem:[#allocation8 + $0x6c0] sm:$0xff] }
 0x230   :  { %6101 = vmatprep.subr.bf16.mxu0 %v6100_v8  ;;  %v1688_v8 = vld [vmem:[#allocation8 + $0xb80] sm:$0xff]  ;;  %v6122_v11 = vpack.c.bf16 %v1463_v46, %v1462_v42  ;;  %v1679_v31 = vld [vmem:[#allocation8 + $0xb38] sm:$0xff]  ;;  %v1127_v46 = vld [vmem:[#allocation8 + $0x648] sm:$0xff] }
 0x231   :  { %v6170_v41 = vpack.c.bf16 %v1679_v31, %v1678_v3  ;;  %v1131_v20 = vld [vmem:[#allocation8 + $0x668] sm:$0xff]  ;;  %v1669_v3 = vld [vmem:[#allocation2 + $0x20] sm:$0xc0]  ;;  %v1361_v31 = vld [vmem:[#allocation8 + $0x898] sm:$0xff] }
 0x232   :  { %5943 = vmatpush3.bf16.msra.mxu1 %v5942_v13  ;;  %v1119_v13 = vld [vmem:[#allocation8 + $0x608] sm:$0xff] }
 0x233   :  { %6103 = vmatpush3.bf16.msra.mxu0 %v6102_v53  ;;  %5945 = vmatprep.subr.bf16.mxu1 %v5944_v14  ;;  %v1672_v53 = vld [vmem:[#allocation8 + $0xb00] sm:$0xff]  ;;  %v6156_v14 = vpack.c.bf16 %v1689_v9, %v1688_v8  ;;  %v5998_v60 = vpack.c.bf16 %v1119_v13, %v1118_v52  ;;  %v1681_v8 = vld [vmem:[#allocation8 + $0xb48] sm:$0xff]  ;;  %v1144_v9 = vld [vmem:[#allocation8 + $0x6d0] sm:$0xff] }
 0x234   :  { %6105 = vmatprep.subr.bf16.mxu0 %v6104_v16  ;;  %v1445_v16 = vld [vmem:[#allocation2 + $0x20] sm:$0xc]  ;;  %v6174_v13 = vpack.c.bf16 %v1681_v8, %v1680_v47  ;;  %v1706_v47 = vrot.slane %v1669_v3, 6  ;;  %v1893_v8 = vld [vmem:[#allocation8 + $0xd18] sm:$0xff] }
 0x235   :  { %v1359_v49 = vld [vmem:[#allocation8 + $0x888] sm:$0xff] }
 0x236   :  { %5947 = vmatpush3.bf16.msra.mxu1 %v5946_v17  ;;  %v1121_v17 = vld [vmem:[#allocation8 + $0x618] sm:$0xff]  ;;  %v1907_v58 = vld [vmem:[#allocation8 + $0xd88] sm:$0xff] }
 0x237   :  { %6107 = vmatpush3.bf16.msra.mxu0 %v6106_v18  ;;  %5949 = vmatprep.subr.bf16.mxu1 %v5948_v19  ;;  %v6158_v18 = vpack.c.bf16 %v1673_v54, %v1672_v53  ;;  %v1670_v19 = vld [vmem:[#allocation2 + $0x28] sm:$0xc0]  ;;  %v6002_v34 = vpack.c.bf16 %v1121_v17, %v1120_v38 }
 0x238   :  { %6109 = vmatprep.subr.bf16.mxu0 %v6108_v23  ;;  %v1482_v23 = vrot.slane %v1445_v16, 2  ;;  %v1129_v54 = vld [vmem:[#allocation8 + $0x658] sm:$0xff] }
 0x239   :  { %v1683_v16 = vld [vmem:[#allocation8 + $0xb58] sm:$0xff] }
 0x23a   :  { %5951 = vmatpush3.bf16.msra.mxu1 %v5950_v29  ;;  %v1692_v29 = vld [vmem:[#allocation8 + $0xba0] sm:$0xff]  ;;  %v6178_v17 = vpack.c.bf16 %v1683_v16, %v1682_v15  ;;  %v1347_v16 = vld [vmem:[#allocation8 + $0x828] sm:$0xff] }
 0x23b   :  { %6111 = vmatpush3.bf16.msra.mxu0 %v6110_v30  ;;  %5953 = vmatprep.subr.bf16.mxu1 %v5952_v32  ;;  %v1693_v30 = vld [vmem:[#allocation8 + $0xba8] sm:$0xff]  ;;  %v1707_v32 = vrot.slane %v1670_v19, 6  ;;  %v1130_v19 = vld [vmem:[#allocation8 + $0x660] sm:$0xff] }
 0x23c   :  { %6113 = vmatprep.subr.bf16.mxu0 %v6112_v36  ;;  %v1122_v36 = vld [vmem:[#allocation8 + $0x620] sm:$0xff]  ;;  %v6164_v50 = vpack.c.bf16 %v1693_v30, %v1692_v29 }
 0x23d   :  { %v6006_v62 = vpack.c.bf16 %v1123_v43, %v1122_v36  ;;  %v1687_v36 = vld [vmem:[#allocation8 + $0xb78] sm:$0xff]  ;;  %v1358_v43 = vld [vmem:[#allocation8 + $0x880] sm:$0xff] }
 0x23e   :  { %5955 = vmatpush3.bf16.msra.mxu1 %v5954_v45  ;;  %v1141_v45 = vld [vmem:[#allocation8 + $0x6b8] sm:$0xff] }
 0x23f   :  { %6115 = vmatpush3.bf16.msra.mxu0 %v6114_v51  ;;  %5957 = vmatprep.subr.bf16.mxu1 %v5956_v57  ;;  %v1694_v51 = vld [vmem:[#allocation8 + $0xbb0] sm:$0xff]  ;;  %v1695_v57 = vld [vmem:[#allocation8 + $0xbb8] sm:$0xff]  ;;  %v6008_v0 = vpack.c.bf16 %v1141_v45, %v1140_v39 }
 0x240   :  { %6117 = vmatprep.subr.bf16.mxu0 %v6116_v1  ;;  %v1124_v1 = vld [vmem:[#allocation8 + $0x630] sm:$0xff]  ;;  %v6168_v4 = vpack.c.bf16 %v1695_v57, %v1694_v51  ;;  %v6060_v51 = vpack.c.bf16 %v1359_v49, %v1358_v43  ;;  %v1342_v57 = vld [vmem:[#allocation8 + $0x800] sm:$0xff] }
 0x241   :  { %v6010_v7 = vpack.c.bf16 %v1125_v2, %v1124_v1  ;;  %v1890_v1 = vld [vmem:[#allocation8 + $0xd00] sm:$0xff]  ;;  %v1891_v2 = vld [vmem:[#allocation8 + $0xd08] sm:$0xff] }
 0x242   :  { %5959 = vmatpush3.bf16.msra.mxu1 %v5958_v33  ;;  %v1143_v33 = vld [vmem:[#allocation8 + $0x6c8] sm:$0xff]  ;;  %v1898_v43 = vld [vmem:[#allocation8 + $0xd40] sm:$0xff] }
 0x243   :  { %6119 = vmatpush3.bf16.msra.mxu0 %v6118_v6  ;;  %5961 = vmatprep.subr.bf16.mxu1 %v5960_v40  ;;  %v1696_v6 = vld [vmem:[#allocation8 + $0xbc0] sm:$0xff]  ;;  %v1697_v40 = vld [vmem:[#allocation8 + $0xbc8] sm:$0xff]  ;;  %v6012_v42 = vpack.c.bf16 %v1143_v33, %v1142_v5 }
 0x244   :  { %6121 = vmatprep.subr.bf16.mxu0 %v6120_v44  ;;  %v1126_v44 = vld [vmem:[#allocation8 + $0x640] sm:$0xff]  ;;  %v6172_v48 = vpack.c.bf16 %v1697_v40, %v1696_v6  ;;  %v1908_v6 = vld [vmem:[#allocation8 + $0xd90] sm:$0xff]  ;;  %v1909_v40 = vld [vmem:[#allocation8 + $0xd98] sm:$0xff] }
 0x245   :  { %v6014_v52 = vpack.c.bf16 %v1127_v46, %v1126_v44  ;;  %v1888_v33 = vld [vmem:[#allocation2 + $0x38] sm:$0xc]  ;;  %v1345_v44 = vld [vmem:[#allocation8 + $0x818] sm:$0xff]  ;;  %v1892_v46 = vld [vmem:[#allocation8 + $0xd10] sm:$0xff] }
 0x246   :  { %5963 = vmatpush3.bf16.msra.mxu1 %v5962_v10  ;;  %v1145_v10 = vld [vmem:[#allocation8 + $0x6d8] sm:$0xff] }
 0x247   :  { %6123 = vmatpush3.bf16.msra.mxu0 %v6122_v11  ;;  %5997 = vmatprep.subr.bf16.mxu1 %v5996_v12  ;;  %v1698_v11 = vld [vmem:[#allocation8 + $0xbd0] sm:$0xff]  ;;  %v1699_v12 = vld [vmem:[#allocation8 + $0xbd8] sm:$0xff]  ;;  %v6016_v53 = vpack.c.bf16 %v1145_v10, %v1144_v9  ;;  %v1362_v9 = vld [vmem:[#allocation8 + $0x8a0] sm:$0xff] }
 0x248   :  { %6157 = vmatprep.subr.bf16.mxu0 %v6156_v14  ;;  %v1128_v14 = vld [vmem:[#allocation8 + $0x650] sm:$0xff]  ;;  %v6176_v55 = vpack.c.bf16 %v1699_v12, %v1698_v11  ;;  %v1363_v10 = vld [vmem:[#allocation8 + $0x8a8] sm:$0xff]  ;;  %v6224_v11 = vpack.c.bf16 %v1909_v40, %v1908_v6  ;;  %v1910_v12 = vld [vmem:[#allocation8 + $0xda0] sm:$0xff] }
 0x249   :  { %997 = vmatmul.mubr.f32.vlgmr.msra.gmra.mrb[6].mxu1 %v897_v22  ;;  %v6018_v38 = vpack.c.bf16 %v1129_v54, %v1128_v14  ;;  %v6226_v54 = vpack.c.bf16 %v1893_v8, %v1892_v46  ;;  %v6068_v15 = vpack.c.bf16 %v1363_v10, %v1362_v9  ;;  %v1919_v6 = vld [vmem:[#allocation8 + $0xde8] sm:$0xff]  ;;  %v1902_v46 = vld [vmem:[#allocation8 + $0xd60] sm:$0xff]  ;;  %v1372_v8 = vld [vmem:[#allocation8 + $0x8f0] sm:$0xff] }
 0x24a   :  { %1551 = vmatmul.mubr.f32.vlgmr.msra.gmra.mrb[24].mxu0 %v1482_v23  ;;  %5999 = vmatpush3.bf16.msra.mxu1 %v5998_v60  ;;  %v1700_v60 = vld [vmem:[#allocation8 + $0xbe0] sm:$0xff]  ;;  %v1685_v23 = vld [vmem:[#allocation8 + $0xb68] sm:$0xff]  ;;  %v1373_v9 = vld [vmem:[#allocation8 + $0x8f8] sm:$0xff] }
 0x24b   :  { %1220 = vmatprep.mubr.f32.mxu1 %v1153_v27  ;;  %6159 = vmatpush3.bf16.msra.mxu0 %v6158_v18  ;;  %v6020_v18 = vpack.c.bf16 %v1147_v59, %v1146_v56  ;;  %v6180_v22 = vpack.c.bf16 %v1701_v61, %v1700_v60  ;;  %v1703_v27 = vld [vmem:[#allocation8 + $0xbf8] sm:$0xff]  ;;  %v6182_v29 = vpack.c.bf16 %v1685_v23, %v1684_v21  ;;  %v1894_v56 = vld [vmem:[#allocation8 + $0xd20] sm:$0xff]  ;;  %v1895_v60 = vld [vmem:[#allocation8 + $0xd28] sm:$0xff] }
 0x24c   :  { %1774 = vmatprep.mubr.f32.mxu0 %v1707_v32  ;;  %6001 = vmatprep.subr.bf16.mxu1 %v6000_v24  ;;  %v1148_v24 = vld [vmem:[#allocation8 + $0x6f0] sm:$0xff]  ;;  %v1349_v23 = vld [vmem:[#allocation8 + $0x838] sm:$0xff] }
 0x24d   :  { %6161 = vmatprep.subr.bf16.mxu0 %v6160_v28  ;;  %v6022_v28 = vpack.c.bf16 %v1131_v20, %v1130_v19  ;;  %v6024_v30 = vpack.c.bf16 %v1149_v25, %v1148_v24  ;;  %v1132_v32 = vld [vmem:[#allocation8 + $0x670] sm:$0xff]  ;;  %v6230_v20 = vpack.c.bf16 %v1895_v60, %v1894_v56  ;;  %v1577_v56 = vld [vmem:[#allocation8 + $0xa88] sm:$0xff] }
 0x24e   :  { %6003 = vmatpush3.bf16.msra.mxu1 %v6002_v34  ;;  %v1133_v34 = vld [vmem:[#allocation8 + $0x678] sm:$0xff]  ;;  %v1364_v61 = vld [vmem:[#allocation8 + $0x8b0] sm:$0xff]  ;;  %v2131_v60 = vld [vmem:[#allocation8 + $0xf88] sm:$0xff] }
 0x24f   :  { %6163 = vmatpush3.bf16.msra.mxu0 %v6162_v37  ;;  %6005 = vmatprep.subr.bf16.mxu1 %v6004_v35  ;;  %v1686_v37 = vld [vmem:[#allocation8 + $0xb70] sm:$0xff]  ;;  %v6184_v35 = vpack.c.bf16 %v1703_v27, %v1702_v26  ;;  %v6026_v39 = vpack.c.bf16 %v1133_v34, %v1132_v32  ;;  %v1897_v26 = vld [vmem:[#allocation8 + $0xd38] sm:$0xff]  ;;  %v1366_v27 = vld [vmem:[#allocation8 + $0x8c0] sm:$0xff] }
 0x250   :  { %6165 = vmatprep.subr.bf16.mxu0 %v6164_v50  ;;  %v1906_v50 = vld [vmem:[#allocation8 + $0xd80] sm:$0xff]  ;;  %v6186_v45 = vpack.c.bf16 %v1687_v36, %v1686_v37  ;;  %v1896_v24 = vld [vmem:[#allocation8 + $0xd30] sm:$0xff]  ;;  %v1351_v36 = vld [vmem:[#allocation8 + $0x848] sm:$0xff] }
 0x251   :  { %v6234_v34 = vpack.c.bf16 %v1897_v26, %v1896_v24  ;;  %v1920_v10 = vld [vmem:[#allocation8 + $0xdf0] sm:$0xff]  ;;  %v1558_v24 = vld [vmem:[#allocation2 + $0x28] sm:$0x30] }
 0x252   :  { %6007 = vmatpush3.bf16.msra.mxu1 %v6006_v62  ;;  %v1343_v62 = vld [vmem:[#allocation8 + $0x808] sm:$0xff]  ;;  %v1579_v26 = vld [vmem:[#allocation8 + $0xa98] sm:$0xff] }
 0x253   :  { %6167 = vmatpush3.bf16.msra.mxu0 %v6166_v63  ;;  %6009 = vmatprep.subr.bf16.mxu1 %v6008_v0  ;;  %v1115_v63 = vld [vmem:[#allocation2 + $0x10] sm:$0x30]  ;;  %v6220_v0 = vpack.c.bf16 %v1907_v58, %v1906_v50  ;;  %v6062_v5 = vpack.c.bf16 %v1343_v62, %v1342_v57  ;;  %v1899_v50 = vld [vmem:[#allocation8 + $0xd48] sm:$0xff]  ;;  %v1368_v58 = vld [vmem:[#allocation8 + $0x8d0] sm:$0xff] }
 0x254   :  { %6169 = vmatprep.subr.bf16.mxu0 %v6168_v4  ;;  %v1360_v4 = vld [vmem:[#allocation8 + $0x890] sm:$0xff]  ;;  %v6238_v62 = vpack.c.bf16 %v1899_v50, %v1898_v43  ;;  %v2117_v50 = vld [vmem:[#allocation8 + $0xf18] sm:$0xff] }
 0x256   :  { %6011 = vmatpush3.bf16.msra.mxu1 %v6010_v7  ;;  %v1152_v7 = vrot.slane %v1115_v63, 4 }
 0x257   :  { %6171 = vmatpush3.bf16.msra.mxu0 %v6170_v41  ;;  %6013 = vmatprep.subr.bf16.mxu1 %v6012_v42  ;;  %v6222_v41 = vpack.c.bf16 %v1891_v2, %v1890_v1  ;;  %v1344_v42 = vld [vmem:[#allocation8 + $0x810] sm:$0xff]  ;;  %v1353_v1 = vld [vmem:[#allocation8 + $0x858] sm:$0xff] }
 0x258   :  { %6173 = vmatprep.subr.bf16.mxu0 %v6172_v48  ;;  %v6064_v48 = vpack.c.bf16 %v1361_v31, %v1360_v4  ;;  %v6066_v14 = vpack.c.bf16 %v1345_v44, %v1344_v42  ;;  %v1900_v2 = vld [vmem:[#allocation8 + $0xd50] sm:$0xff]  ;;  %v1901_v4 = vld [vmem:[#allocation8 + $0xd58] sm:$0xff]  ;;  %v1370_v31 = vld [vmem:[#allocation8 + $0x8e0] sm:$0xff] }
 0x259   :  { %v1354_v42 = vld [vmem:[#allocation8 + $0x860] sm:$0xff]  ;;  %v1355_v44 = vld [vmem:[#allocation8 + $0x868] sm:$0xff] }
 0x25a   :  { %6015 = vmatpush3.bf16.msra.mxu1 %v6014_v52  ;;  %v1911_v52 = vld [vmem:[#allocation8 + $0xda8] sm:$0xff] }
 0x25b   :  { %6175 = vmatpush3.bf16.msra.mxu0 %v6174_v13  ;;  %6017 = vmatprep.subr.bf16.mxu1 %v6016_v53  ;;  %v1340_v13 = vld [vmem:[#allocation2 + $0x28] sm:$0x3]  ;;  %v1925_v53 = vrot.slane %v1888_v33, 2  ;;  %v6228_v59 = vpack.c.bf16 %v1911_v52, %v1910_v12  ;;  %v1918_v33 = vld [vmem:[#allocation8 + $0xde0] sm:$0xff]  ;;  %v6086_v12 = vpack.c.bf16 %v1355_v44, %v1354_v42 }
 0x25c   :  { %6177 = vmatprep.subr.bf16.mxu0 %v6176_v55  ;;  %v1346_v55 = vld [vmem:[#allocation8 + $0x820] sm:$0xff] }
 0x25d   :  { %v6070_v19 = vpack.c.bf16 %v1347_v16, %v1346_v55  ;;  %v1905_v55 = vld [vmem:[#allocation8 + $0xd78] sm:$0xff]  ;;  %v1576_v16 = vld [vmem:[#allocation8 + $0xa80] sm:$0xff] }
 0x25e   :  { %6019 = vmatpush3.bf16.msra.mxu1 %v6018_v38  ;;  %v1365_v38 = vld [vmem:[#allocation8 + $0x8b8] sm:$0xff] }
 0x25f   :  { %6179 = vmatpush3.bf16.msra.mxu0 %v6178_v17  ;;  %6021 = vmatprep.subr.bf16.mxu1 %v6020_v18  ;;  %v1912_v17 = vld [vmem:[#allocation8 + $0xdb0] sm:$0xff]  ;;  %v1913_v18 = vld [vmem:[#allocation8 + $0xdb8] sm:$0xff]  ;;  %v6072_v21 = vpack.c.bf16 %v1365_v38, %v1364_v61 }
 0x260   :  { %6181 = vmatprep.subr.bf16.mxu0 %v6180_v22  ;;  %v1348_v22 = vld [vmem:[#allocation8 + $0x830] sm:$0xff]  ;;  %v6232_v25 = vpack.c.bf16 %v1913_v18, %v1912_v17  ;;  %v6124_v17 = vpack.c.bf16 %v1577_v56, %v1576_v16  ;;  %v1560_v18 = vld [vmem:[#allocation8 + $0xa00] sm:$0xff] }
 0x261   :  { %v6074_v32 = vpack.c.bf16 %v1349_v23, %v1348_v22  ;;  %v2114_v22 = vld [vmem:[#allocation8 + $0xf00] sm:$0xff]  ;;  %v2115_v23 = vld [vmem:[#allocation8 + $0xf08] sm:$0xff] }
 0x262   :  { %6023 = vmatpush3.bf16.msra.mxu1 %v6022_v28  ;;  %v1367_v28 = vld [vmem:[#allocation8 + $0x8c8] sm:$0xff]  ;;  %v2122_v16 = vld [vmem:[#allocation8 + $0xf40] sm:$0xff] }
 0x263   :  { %6183 = vmatpush3.bf16.msra.mxu0 %v6182_v29  ;;  %6025 = vmatprep.subr.bf16.mxu1 %v6024_v30  ;;  %v1914_v29 = vld [vmem:[#allocation8 + $0xdc0] sm:$0xff]  ;;  %v1915_v30 = vld [vmem:[#allocation8 + $0xdc8] sm:$0xff]  ;;  %v6076_v37 = vpack.c.bf16 %v1367_v28, %v1366_v27 }
 0x264   :  { %6185 = vmatprep.subr.bf16.mxu0 %v6184_v35  ;;  %v1350_v35 = vld [vmem:[#allocation8 + $0x840] sm:$0xff]  ;;  %v6236_v49 = vpack.c.bf16 %v1915_v30, %v1914_v29  ;;  %v1339_v27 = vld [vmem:[#allocation2 + $0x20] sm:$0x3]  ;;  %v2112_v29 = vld [vmem:[#allocation2 + $0x38] sm:$0xc0] }
 0x265   :  { %v6078_v57 = vpack.c.bf16 %v1351_v36, %v1350_v35  ;;  %v2132_v30 = vld [vmem:[#allocation8 + $0xf90] sm:$0xff]  ;;  %v1563_v35 = vld [vmem:[#allocation8 + $0xa18] sm:$0xff] }
 0x266   :  { %6027 = vmatpush3.bf16.msra.mxu1 %v6026_v39  ;;  %v1369_v39 = vld [vmem:[#allocation8 + $0x8d8] sm:$0xff]  ;;  %v2116_v36 = vld [vmem:[#allocation8 + $0xf10] sm:$0xff] }
 0x267   :  { %6187 = vmatpush3.bf16.msra.mxu0 %v6186_v45  ;;  %6061 = vmatprep.subr.bf16.mxu1 %v6060_v51  ;;  %v1916_v45 = vld [vmem:[#allocation8 + $0xdd0] sm:$0xff]  ;;  %v1917_v51 = vld [vmem:[#allocation8 + $0xdd8] sm:$0xff]  ;;  %v6080_v63 = vpack.c.bf16 %v1369_v39, %v1368_v58  ;;  %v1580_v58 = vld [vmem:[#allocation8 + $0xaa0] sm:$0xff] }
 0x268   :  { %6221 = vmatprep.subr.bf16.mxu0 %v6220_v0  ;;  %v1352_v0 = vld [vmem:[#allocation8 + $0x850] sm:$0xff]  ;;  %v6240_v3 = vpack.c.bf16 %v1917_v51, %v1916_v45  ;;  %v1581_v39 = vld [vmem:[#allocation8 + $0xaa8] sm:$0xff]  ;;  %v1595_v45 = vrot.slane %v1558_v24, 4 }
 0x269   :  { %1221 = vmatmul.mubr.f32.vlgmr.msra.gmra.mrb[8].mxu1 %v1152_v7  ;;  %v6082_v40 = vpack.c.bf16 %v1353_v1, %v1352_v0  ;;  %v6242_v7 = vpack.c.bf16 %v1901_v4, %v1900_v2  ;;  %v6290_v1 = vpack.c.bf16 %v2117_v50, %v2116_v36  ;;  %v6132_v2 = vpack.c.bf16 %v1581_v39, %v1580_v58  ;;  %v1565_v4 = vld [vmem:[#allocation8 + $0xa28] sm:$0xff]  ;;  %v2126_v36 = vld [vmem:[#allocation8 + $0xf60] sm:$0xff]  ;;  %v1590_v50 = vld [vmem:[#allocation8 + $0xaf0] sm:$0xff] }
 0x26a   :  { %1775 = vmatmul.mubr.f32.vlgmr.msra.gmra.mrb[26].mxu0 %v1706_v47  ;;  %6063 = vmatpush3.bf16.msra.mxu1 %v6062_v5  ;;  %v1371_v5 = vld [vmem:[#allocation8 + $0x8e8] sm:$0xff]  ;;  %v6244_v47 = vpack.c.bf16 %v1919_v6, %v1918_v33  ;;  %v1582_v6 = vld [vmem:[#allocation8 + $0xab0] sm:$0xff]  ;;  %v1591_v58 = vld [vmem:[#allocation8 + $0xaf8] sm:$0xff] }
 0x26b   :  { %1438 = vmatprep.mubr.f32.mxu1 %v1340_v13  ;;  %6223 = vmatpush3.bf16.msra.mxu0 %v6222_v41  ;;  %v6084_v41 = vpack.c.bf16 %v1371_v5, %v1370_v31  ;;  %v6088_v13 = vpack.c.bf16 %v1373_v9, %v1372_v8  ;;  %v2118_v31 = vld [vmem:[#allocation8 + $0xf20] sm:$0xff]  ;;  %v2119_v33 = vld [vmem:[#allocation8 + $0xf28] sm:$0xff]  ;;  %v2120_v8 = vld [vmem:[#allocation8 + $0xf30] sm:$0xff] }
 0x26c   :  { %1992 = vmatprep.mubr.f32.mxu0 %v1925_v53  ;;  %6065 = vmatprep.subr.bf16.mxu1 %v6064_v48  ;;  %v1903_v48 = vld [vmem:[#allocation8 + $0xd68] sm:$0xff]  ;;  %v1356_v53 = vld [vmem:[#allocation8 + $0x870] sm:$0xff]  ;;  %v6294_v44 = vpack.c.bf16 %v2119_v33, %v2118_v31 }
 0x26d   :  { %6225 = vmatprep.subr.bf16.mxu0 %v6224_v11  ;;  %v1921_v11 = vld [vmem:[#allocation8 + $0xdf8] sm:$0xff]  ;;  %v6246_v52 = vpack.c.bf16 %v1903_v48, %v1902_v46  ;;  %v2144_v39 = vld [vmem:[#allocation8 + $0xff0] sm:$0xff]  ;;  %v1801_v31 = vld [vmem:[#allocation8 + $0xc88] sm:$0xff] }
 0x26e   :  { %6067 = vmatpush3.bf16.msra.mxu1 %v6066_v14  ;;  %v1357_v14 = vld [vmem:[#allocation8 + $0x878] sm:$0xff]  ;;  %v2349_v33 = vld [vmem:[#allocation8 + $0x1188] sm:$0xff] }
 0x26f   :  { %6227 = vmatpush3.bf16.msra.mxu0 %v6226_v54  ;;  %6069 = vmatprep.subr.bf16.mxu1 %v6068_v15  ;;  %v1904_v54 = vld [vmem:[#allocation8 + $0xd70] sm:$0xff]  ;;  %v6248_v15 = vpack.c.bf16 %v1921_v11, %v1920_v10  ;;  %v6090_v61 = vpack.c.bf16 %v1357_v14, %v1356_v53  ;;  %v1567_v48 = vld [vmem:[#allocation8 + $0xa38] sm:$0xff]  ;;  %v1584_v11 = vld [vmem:[#allocation8 + $0xac0] sm:$0xff] }
 0x270   :  { %6229 = vmatprep.subr.bf16.mxu0 %v6228_v59  ;;  %v2130_v59 = vld [vmem:[#allocation8 + $0xf80] sm:$0xff]  ;;  %v6250_v38 = vpack.c.bf16 %v1905_v55, %v1904_v54  ;;  %v2121_v10 = vld [vmem:[#allocation8 + $0xf38] sm:$0xff]  ;;  %v1569_v55 = vld [vmem:[#allocation8 + $0xa48] sm:$0xff] }
 0x271   :  { %v6298_v14 = vpack.c.bf16 %v2121_v10, %v2120_v8  ;;  %v2111_v8 = vld [vmem:[#allocation2 + $0x30] sm:$0xc0]  ;;  %v1803_v10 = vld [vmem:[#allocation8 + $0xc98] sm:$0xff] }
 0x272   :  { %6071 = vmatpush3.bf16.msra.mxu1 %v6070_v19  ;;  %v1561_v19 = vld [vmem:[#allocation8 + $0xa08] sm:$0xff] }
 0x273   :  { %6231 = vmatpush3.bf16.msra.mxu0 %v6230_v20  ;;  %6073 = vmatprep.subr.bf16.mxu1 %v6072_v21  ;;  %v1887_v20 = vld [vmem:[#allocation2 + $0x30] sm:$0xc]  ;;  %v6284_v21 = vpack.c.bf16 %v2131_v60, %v2130_v59  ;;  %v6126_v28 = vpack.c.bf16 %v1561_v19, %v1560_v18  ;;  %v2123_v59 = vld [vmem:[#allocation8 + $0xf48] sm:$0xff]  ;;  %v1586_v60 = vld [vmem:[#allocation8 + $0xad0] sm:$0xff] }
 0x274   :  { %6233 = vmatprep.subr.bf16.mxu0 %v6232_v25  ;;  %v1578_v25 = vld [vmem:[#allocation8 + $0xa90] sm:$0xff]  ;;  %v1924_v43 = vrot.slane %v1887_v20, 2  ;;  %v6302_v19 = vpack.c.bf16 %v2123_v59, %v2122_v16  ;;  %v2148_v16 = vrot.slane %v2111_v8, 6  ;;  %v2335_v59 = vld [vmem:[#allocation8 + $0x1118] sm:$0xff] }
 0x276   :  { %6075 = vmatpush3.bf16.msra.mxu1 %v6074_v32  ;;  %v2133_v32 = vld [vmem:[#allocation8 + $0xf98] sm:$0xff] }
 0x277   :  { %6235 = vmatpush3.bf16.msra.mxu0 %v6234_v34  ;;  %6077 = vmatprep.subr.bf16.mxu1 %v6076_v37  ;;  %v6286_v34 = vpack.c.bf16 %v2115_v23, %v2114_v22  ;;  %v1562_v37 = vld [vmem:[#allocation8 + $0xa10] sm:$0xff]  ;;  %v6288_v51 = vpack.c.bf16 %v2133_v32, %v2132_v30  ;;  %v1571_v22 = vld [vmem:[#allocation8 + $0xa58] sm:$0xff] }
 0x278   :  { %6237 = vmatprep.subr.bf16.mxu0 %v6236_v49  ;;  %v6128_v49 = vpack.c.bf16 %v1579_v26, %v1578_v25  ;;  %v6130_v0 = vpack.c.bf16 %v1563_v35, %v1562_v37  ;;  %v2124_v23 = vld [vmem:[#allocation8 + $0xf50] sm:$0xff]  ;;  %v2125_v25 = vld [vmem:[#allocation8 + $0xf58] sm:$0xff]  ;;  %v1588_v26 = vld [vmem:[#allocation8 + $0xae0] sm:$0xff] }
 0x279   :  { %v6306_v32 = vpack.c.bf16 %v2125_v25, %v2124_v23  ;;  %v1572_v37 = vld [vmem:[#allocation8 + $0xa60] sm:$0xff]  ;;  %v1573_v35 = vld [vmem:[#allocation8 + $0xa68] sm:$0xff] }
 0x27a   :  { %6079 = vmatpush3.bf16.msra.mxu1 %v6078_v57  ;;  %v2134_v57 = vld [vmem:[#allocation8 + $0xfa0] sm:$0xff]  ;;  %v1789_v25 = vld [vmem:[#allocation8 + $0xc28] sm:$0xff] }
 0x27b   :  { %6239 = vmatpush3.bf16.msra.mxu0 %v6238_v62  ;;  %6081 = vmatprep.subr.bf16.mxu1 %v6080_v63  ;;  %v2135_v62 = vld [vmem:[#allocation8 + $0xfa8] sm:$0xff]  ;;  %v2149_v63 = vrot.slane %v2112_v29, 6 }
 0x27c   :  { %6241 = vmatprep.subr.bf16.mxu0 %v6240_v3  ;;  %v1564_v3 = vld [vmem:[#allocation8 + $0xa20] sm:$0xff]  ;;  %v6292_v5 = vpack.c.bf16 %v2135_v62, %v2134_v57  ;;  %v2143_v29 = vld [vmem:[#allocation8 + $0xfe8] sm:$0xff]  ;;  %v6152_v62 = vpack.c.bf16 %v1591_v58, %v1590_v50  ;;  %v2338_v50 = vld [vmem:[#allocation8 + $0x1130] sm:$0xff] }
 0x27d   :  { %v6134_v42 = vpack.c.bf16 %v1565_v4, %v1564_v3  ;;  %v2129_v3 = vld [vmem:[#allocation8 + $0xf78] sm:$0xff]  ;;  %v1800_v4 = vld [vmem:[#allocation8 + $0xc80] sm:$0xff] }
 0x27e   :  { %6083 = vmatpush3.bf16.msra.mxu1 %v6082_v40  ;;  %v1583_v40 = vld [vmem:[#allocation8 + $0xab8] sm:$0xff] }
 0x27f   :  { %6243 = vmatpush3.bf16.msra.mxu0 %v6242_v7  ;;  %6085 = vmatprep.subr.bf16.mxu1 %v6084_v41  ;;  %v2136_v7 = vld [vmem:[#allocation8 + $0xfb0] sm:$0xff]  ;;  %v2137_v41 = vld [vmem:[#allocation8 + $0xfb8] sm:$0xff]  ;;  %v6136_v46 = vpack.c.bf16 %v1583_v40, %v1582_v6 }
 0x280   :  { %6245 = vmatprep.subr.bf16.mxu0 %v6244_v47  ;;  %v1566_v47 = vld [vmem:[#allocation8 + $0xa30] sm:$0xff]  ;;  %v6296_v9 = vpack.c.bf16 %v2137_v41, %v2136_v7  ;;  %v6188_v7 = vpack.c.bf16 %v1801_v31, %v1800_v4  ;;  %v1784_v41 = vld [vmem:[#allocation8 + $0xc00] sm:$0xff] }
 0x281   :  { %v6138_v53 = vpack.c.bf16 %v1567_v48, %v1566_v47  ;;  %v2332_v47 = vld [vmem:[#allocation8 + $0x1100] sm:$0xff]  ;;  %v2333_v48 = vld [vmem:[#allocation8 + $0x1108] sm:$0xff] }
 0x282   :  { %6087 = vmatpush3.bf16.msra.mxu1 %v6086_v12  ;;  %v1585_v12 = vld [vmem:[#allocation8 + $0xac8] sm:$0xff]  ;;  %v2340_v4 = vld [vmem:[#allocation8 + $0x1140] sm:$0xff] }
 0x283   :  { %6247 = vmatpush3.bf16.msra.mxu0 %v6246_v52  ;;  %6089 = vmatprep.subr.bf16.mxu1 %v6088_v13  ;;  %v2138_v52 = vld [vmem:[#allocation8 + $0xfc0] sm:$0xff]  ;;  %v2139_v13 = vld [vmem:[#allocation8 + $0xfc8] sm:$0xff]  ;;  %v6140_v54 = vpack.c.bf16 %v1585_v12, %v1584_v11  ;;  %v2330_v12 = vld [vmem:[#allocation2 + $0x48] sm:$0xc] }
 0x284   :  { %6249 = vmatprep.subr.bf16.mxu0 %v6248_v15  ;;  %v1568_v15 = vld [vmem:[#allocation8 + $0xa40] sm:$0xff]  ;;  %v6300_v56 = vpack.c.bf16 %v2139_v13, %v2138_v52  ;;  %v2350_v52 = vld [vmem:[#allocation8 + $0x1190] sm:$0xff]  ;;  %v2351_v13 = vld [vmem:[#allocation8 + $0x1198] sm:$0xff] }
 0x285   :  { %v6142_v18 = vpack.c.bf16 %v1569_v55, %v1568_v15  ;;  %v1787_v15 = vld [vmem:[#allocation8 + $0xc18] sm:$0xff]  ;;  %v2334_v55 = vld [vmem:[#allocation8 + $0x1110] sm:$0xff] }
 0x286   :  { %6091 = vmatpush3.bf16.msra.mxu1 %v6090_v61  ;;  %v1587_v61 = vld [vmem:[#allocation8 + $0xad8] sm:$0xff] }
 0x287   :  { %6251 = vmatpush3.bf16.msra.mxu0 %v6250_v38  ;;  %6125 = vmatprep.subr.bf16.mxu1 %v6124_v17  ;;  %v2140_v38 = vld [vmem:[#allocation8 + $0xfd0] sm:$0xff]  ;;  %v2141_v17 = vld [vmem:[#allocation8 + $0xfd8] sm:$0xff]  ;;  %v6144_v20 = vpack.c.bf16 %v1587_v61, %v1586_v60  ;;  %v1804_v60 = vld [vmem:[#allocation8 + $0xca0] sm:$0xff] }
 0x288   :  { %6285 = vmatprep.subr.bf16.mxu0 %v6284_v21  ;;  %v1570_v21 = vld [vmem:[#allocation8 + $0xa50] sm:$0xff]  ;;  %v6304_v24 = vpack.c.bf16 %v2141_v17, %v2140_v38  ;;  %v1805_v61 = vld [vmem:[#allocation8 + $0xca8] sm:$0xff]  ;;  %v6352_v38 = vpack.c.bf16 %v2351_v13, %v2350_v52  ;;  %v2352_v17 = vld [vmem:[#allocation8 + $0x11a0] sm:$0xff] }
 0x289   :  { %1439 = vmatmul.mubr.f32.vlgmr.msra.gmra.mrb[10].mxu1 %v1339_v27  ;;  %v1589_v27 = vld [vmem:[#allocation8 + $0xae8] sm:$0xff]  ;;  %v6146_v30 = vpack.c.bf16 %v1571_v22, %v1570_v21  ;;  %v6354_v22 = vpack.c.bf16 %v2335_v59, %v2334_v55  ;;  %v6196_v23 = vpack.c.bf16 %v1805_v61, %v1804_v60  ;;  %v2344_v55 = vld [vmem:[#allocation8 + $0x1160] sm:$0xff]  ;;  %v1814_v61 = vld [vmem:[#allocation8 + $0xcf0] sm:$0xff] }
 0x28a   :  { %1993 = vmatmul.mubr.f32.vlgmr.msra.gmra.mrb[28].mxu0 %v1924_v43  ;;  %6127 = vmatpush3.bf16.msra.mxu1 %v6126_v28  ;;  %v2142_v28 = vld [vmem:[#allocation8 + $0xfe0] sm:$0xff]  ;;  %v2361_v52 = vld [vmem:[#allocation8 + $0x11e8] sm:$0xff] }
 0x28b   :  { %1662 = vmatprep.mubr.f32.mxu1 %v1595_v45  ;;  %6287 = vmatpush3.bf16.msra.mxu0 %v6286_v34  ;;  %v6148_v34 = vpack.c.bf16 %v1589_v27, %v1588_v26  ;;  %v6308_v43 = vpack.c.bf16 %v2143_v29, %v2142_v28  ;;  %v2145_v45 = vld [vmem:[#allocation8 + $0xff8] sm:$0xff]  ;;  %v2336_v26 = vld [vmem:[#allocation8 + $0x1120] sm:$0xff]  ;;  %v2337_v28 = vld [vmem:[#allocation8 + $0x1128] sm:$0xff] }
 0x28c   :  { %2216 = vmatprep.mubr.f32.mxu0 %v2149_v63  ;;  %6129 = vmatprep.subr.bf16.mxu1 %v6128_v49  ;;  %v2127_v49 = vld [vmem:[#allocation8 + $0xf68] sm:$0xff]  ;;  %v1574_v63 = vld [vmem:[#allocation8 + $0xa70] sm:$0xff] }
 0x28d   :  { %6289 = vmatprep.subr.bf16.mxu0 %v6288_v51  ;;  %v6150_v51 = vpack.c.bf16 %v1573_v35, %v1572_v37  ;;  %v6310_v57 = vpack.c.bf16 %v2127_v49, %v2126_v36  ;;  %v1806_v29 = vld [vmem:[#allocation8 + $0xcb0] sm:$0xff]  ;;  %v6358_v35 = vpack.c.bf16 %v2337_v28, %v2336_v26  ;;  %v1791_v49 = vld [vmem:[#allocation8 + $0xc38] sm:$0xff]  ;;  %v2345_v60 = vld [vmem:[#allocation8 + $0x1168] sm:$0xff] }
 0x28e   :  { %6131 = vmatpush3.bf16.msra.mxu1 %v6130_v0  ;;  %v1575_v0 = vld [vmem:[#allocation8 + $0xa78] sm:$0xff]  ;;  %v1798_v26 = vld [vmem:[#allocation8 + $0xc70] sm:$0xff] }
 0x28f   :  { %6291 = vmatpush3.bf16.msra.mxu0 %v6290_v1  ;;  %6133 = vmatprep.subr.bf16.mxu1 %v6132_v2  ;;  %v2128_v1 = vld [vmem:[#allocation8 + $0xf70] sm:$0xff]  ;;  %v6312_v2 = vpack.c.bf16 %v2145_v45, %v2144_v39  ;;  %v6154_v6 = vpack.c.bf16 %v1575_v0, %v1574_v63  ;;  %v2339_v39 = vld [vmem:[#allocation8 + $0x1138] sm:$0xff]  ;;  %v1808_v45 = vld [vmem:[#allocation8 + $0xcc0] sm:$0xff] }
 0x290   :  { %6293 = vmatprep.subr.bf16.mxu0 %v6292_v5  ;;  %v2348_v5 = vld [vmem:[#allocation8 + $0x1180] sm:$0xff]  ;;  %v6314_v40 = vpack.c.bf16 %v2129_v3, %v2128_v1  ;;  %v6362_v0 = vpack.c.bf16 %v2339_v39, %v2338_v50  ;;  %v1793_v3 = vld [vmem:[#allocation8 + $0xc48] sm:$0xff]  ;;  %v2346_v28 = vld [vmem:[#allocation8 + $0x1170] sm:$0xff] }
 0x291   :  { %v2002_v50 = vld [vmem:[#allocation8 + $0xe00] sm:$0xff]  ;;  %v2329_v39 = vld [vmem:[#allocation2 + $0x40] sm:$0xc] }
 0x292   :  { %6135 = vmatpush3.bf16.msra.mxu1 %v6134_v42  ;;  %v1785_v42 = vld [vmem:[#allocation8 + $0xc08] sm:$0xff] }
 0x293   :  { %6295 = vmatpush3.bf16.msra.mxu0 %v6294_v44  ;;  %6137 = vmatprep.subr.bf16.mxu1 %v6136_v46  ;;  %v1557_v44 = vld [vmem:[#allocation2 + $0x20] sm:$0x30]  ;;  %v6348_v46 = vpack.c.bf16 %v2349_v33, %v2348_v5  ;;  %v6190_v11 = vpack.c.bf16 %v1785_v42, %v1784_v41  ;;  %v2341_v5 = vld [vmem:[#allocation8 + $0x1148] sm:$0xff] }
 0x294   :  { %6297 = vmatprep.subr.bf16.mxu0 %v6296_v9  ;;  %v1802_v9 = vld [vmem:[#allocation8 + $0xc90] sm:$0xff]  ;;  %v6366_v42 = vpack.c.bf16 %v2341_v5, %v2340_v4 }
 0x295   :  { %v1810_v33 = vld [vmem:[#allocation8 + $0xcd0] sm:$0xff] }
 0x296   :  { %6139 = vmatpush3.bf16.msra.mxu1 %v6138_v53  ;;  %v1594_v53 = vrot.slane %v1557_v44, 4  ;;  %v2574_v4 = vld [vmem:[#allocation8 + $0x1390] sm:$0xff] }
 0x297   :  { %6299 = vmatpush3.bf16.msra.mxu0 %v6298_v14  ;;  %6141 = vmatprep.subr.bf16.mxu1 %v6140_v54  ;;  %v6350_v14 = vpack.c.bf16 %v2333_v48, %v2332_v47  ;;  %v1786_v54 = vld [vmem:[#allocation8 + $0xc10] sm:$0xff]  ;;  %v1795_v47 = vld [vmem:[#allocation8 + $0xc58] sm:$0xff] }
 0x298   :  { %6301 = vmatprep.subr.bf16.mxu0 %v6300_v56  ;;  %v6192_v56 = vpack.c.bf16 %v1803_v10, %v1802_v9  ;;  %v6194_v21 = vpack.c.bf16 %v1787_v15, %v1786_v54  ;;  %v2342_v48 = vld [vmem:[#allocation8 + $0x1150] sm:$0xff]  ;;  %v2343_v9 = vld [vmem:[#allocation8 + $0x1158] sm:$0xff]  ;;  %v1812_v10 = vld [vmem:[#allocation8 + $0xce0] sm:$0xff] }
 0x299   :  { %v1796_v54 = vld [vmem:[#allocation8 + $0xc60] sm:$0xff]  ;;  %v1797_v15 = vld [vmem:[#allocation8 + $0xc68] sm:$0xff] }
 0x29a   :  { %6143 = vmatpush3.bf16.msra.mxu1 %v6142_v18  ;;  %v2353_v18 = vld [vmem:[#allocation8 + $0x11a8] sm:$0xff] }
 0x29b   :  { %6303 = vmatpush3.bf16.msra.mxu0 %v6302_v19  ;;  %6145 = vmatprep.subr.bf16.mxu1 %v6144_v20  ;;  %v1782_v19 = vld [vmem:[#allocation2 + $0x38] sm:$0x3]  ;;  %v2367_v20 = vrot.slane %v2330_v12, 2  ;;  %v6356_v27 = vpack.c.bf16 %v2353_v18, %v2352_v17 }
 0x29c   :  { %6305 = vmatprep.subr.bf16.mxu0 %v6304_v24  ;;  %v1788_v24 = vld [vmem:[#allocation8 + $0xc20] sm:$0xff] }
 0x29d   :  { %v6198_v37 = vpack.c.bf16 %v1789_v25, %v1788_v24  ;;  %v2360_v12 = vld [vmem:[#allocation8 + $0x11e0] sm:$0xff]  ;;  %v6374_v24 = vpack.c.bf16 %v2345_v60, %v2344_v55  ;;  %v2024_v55 = vld [vmem:[#allocation8 + $0xeb0] sm:$0xff] }
 0x29e   :  { %6147 = vmatpush3.bf16.msra.mxu1 %v6146_v30  ;;  %v1807_v30 = vld [vmem:[#allocation8 + $0xcb8] sm:$0xff]  ;;  %v6372_v59 = vpack.c.bf16 %v2361_v52, %v2360_v12 }
 0x29f   :  { %6307 = vmatpush3.bf16.msra.mxu0 %v6306_v32  ;;  %6149 = vmatprep.subr.bf16.mxu1 %v6148_v34  ;;  %v2354_v32 = vld [vmem:[#allocation8 + $0x11b0] sm:$0xff]  ;;  %v2355_v34 = vld [vmem:[#allocation8 + $0x11b8] sm:$0xff]  ;;  %v6200_v36 = vpack.c.bf16 %v1807_v30, %v1806_v29 }
 0x2a0   :  { %6309 = vmatprep.subr.bf16.mxu0 %v6308_v43  ;;  %v1790_v43 = vld [vmem:[#allocation8 + $0xc30] sm:$0xff]  ;;  %v6360_v58 = vpack.c.bf16 %v2355_v34, %v2354_v32  ;;  %v2347_v30 = vld [vmem:[#allocation8 + $0x1178] sm:$0xff]  ;;  %v2018_v32 = vld [vmem:[#allocation8 + $0xe80] sm:$0xff] }
 0x2a1   :  { %v6202_v63 = vpack.c.bf16 %v1791_v49, %v1790_v43  ;;  %v2019_v34 = vld [vmem:[#allocation8 + $0xe88] sm:$0xff]  ;;  %v6378_v43 = vpack.c.bf16 %v2347_v30, %v2346_v28 }
 0x2a2   :  { %6151 = vmatpush3.bf16.msra.mxu1 %v6150_v51  ;;  %v1809_v51 = vld [vmem:[#allocation8 + $0xcc8] sm:$0xff]  ;;  %v6252_v49 = vpack.c.bf16 %v2019_v34, %v2018_v32  ;;  %v2010_v32 = vld [vmem:[#allocation8 + $0xe40] sm:$0xff] }
 0x2a3   :  { %6311 = vmatpush3.bf16.msra.mxu0 %v6310_v57  ;;  %6153 = vmatprep.subr.bf16.mxu1 %v6152_v62  ;;  %v2356_v57 = vld [vmem:[#allocation8 + $0x11c0] sm:$0xff]  ;;  %v2357_v62 = vld [vmem:[#allocation8 + $0x11c8] sm:$0xff]  ;;  %v6204_v1 = vpack.c.bf16 %v1809_v51, %v1808_v45 }
 0x2a4   :  { %6313 = vmatprep.subr.bf16.mxu0 %v6312_v2  ;;  %v1792_v2 = vld [vmem:[#allocation8 + $0xc40] sm:$0xff]  ;;  %v6364_v31 = vpack.c.bf16 %v2357_v62, %v2356_v57  ;;  %v2557_v57 = vld [vmem:[#allocation8 + $0x1308] sm:$0xff] }
 0x2a5   :  { %v6206_v41 = vpack.c.bf16 %v1793_v3, %v1792_v2  ;;  %v2556_v51 = vld [vmem:[#allocation8 + $0x1300] sm:$0xff]  ;;  %v2000_v62 = vld [vmem:[#allocation2 + $0x38] sm:$0x30]  ;;  %v2554_v3 = vld [vmem:[#allocation2 + $0x48] sm:$0xc0] }
 0x2a6   :  { %6155 = vmatpush3.bf16.msra.mxu1 %v6154_v6  ;;  %v1811_v6 = vld [vmem:[#allocation8 + $0xcd8] sm:$0xff]  ;;  %v6414_v5 = vpack.c.bf16 %v2557_v57, %v2556_v51  ;;  %v2011_v34 = vld [vmem:[#allocation8 + $0xe48] sm:$0xff]  ;;  %v2012_v57 = vld [vmem:[#allocation8 + $0xe50] sm:$0xff] }
 0x2a7   :  { %6315 = vmatpush3.bf16.msra.mxu0 %v6314_v40  ;;  %6189 = vmatprep.subr.bf16.mxu1 %v6188_v7  ;;  %v2358_v40 = vld [vmem:[#allocation8 + $0x11d0] sm:$0xff]  ;;  %v2359_v7 = vld [vmem:[#allocation8 + $0x11d8] sm:$0xff]  ;;  %v6208_v44 = vpack.c.bf16 %v1811_v6, %v1810_v33 }
 0x2a8   :  { %6349 = vmatprep.subr.bf16.mxu0 %v6348_v46  ;;  %v1794_v46 = vld [vmem:[#allocation8 + $0xc50] sm:$0xff]  ;;  %v6368_v8 = vpack.c.bf16 %v2359_v7, %v2358_v40  ;;  %v2005_v6 = vld [vmem:[#allocation8 + $0xe18] sm:$0xff]  ;;  %v2366_v7 = vrot.slane %v2329_v39, 2  ;;  %v6270_v39 = vpack.c.bf16 %v2011_v34, %v2010_v32 }
 0x2a9   :  { %1663 = vmatmul.mubr.f32.vlgmr.msra.gmra.mrb[12].mxu1 %v1594_v53  ;;  %v6210_v13 = vpack.c.bf16 %v1795_v47, %v1794_v46  ;;  %v6370_v53 = vpack.c.bf16 %v2343_v9, %v2342_v48  ;;  %v2004_v33 = vld [vmem:[#allocation8 + $0xe10] sm:$0xff]  ;;  %v2023_v46 = vld [vmem:[#allocation8 + $0xea8] sm:$0xff]  ;;  %v2037_v47 = vrot.slane %v2000_v62, 4  ;;  %v2013_v62 = vld [vmem:[#allocation8 + $0xe58] sm:$0xff] }
 0x2aa   :  { %2217 = vmatmul.mubr.f32.vlgmr.msra.gmra.mrb[30].mxu0 %v2148_v16  ;;  %6191 = vmatpush3.bf16.msra.mxu1 %v6190_v11  ;;  %v1813_v11 = vld [vmem:[#allocation8 + $0xce8] sm:$0xff]  ;;  %v2558_v40 = vld [vmem:[#allocation8 + $0x1310] sm:$0xff]  ;;  %v2245_v32 = vld [vmem:[#allocation8 + $0x1098] sm:$0xff] }
 0x2ab   :  { %1880 = vmatprep.mubr.f32.mxu1 %v1782_v19  ;;  %6351 = vmatpush3.bf16.msra.mxu0 %v6350_v14  ;;  %v6212_v14 = vpack.c.bf16 %v1813_v11, %v1812_v10  ;;  %v2362_v19 = vld [vmem:[#allocation8 + $0x11f0] sm:$0xff]  ;;  %v2577_v9 = vld [vmem:[#allocation8 + $0x13a8] sm:$0xff]  ;;  %v2591_v10 = vrot.slane %v2554_v3, 6  ;;  %v6258_v11 = vpack.c.bf16 %v2005_v6, %v2004_v33 }
 0x2ac   :  { %2434 = vmatprep.mubr.f32.mxu0 %v2367_v20  ;;  %6193 = vmatprep.subr.bf16.mxu1 %v6192_v56  ;;  %v2363_v20 = vld [vmem:[#allocation8 + $0x11f8] sm:$0xff]  ;;  %v2031_v3 = vld [vmem:[#allocation8 + $0xee8] sm:$0xff] }
 0x2ad   :  { %6353 = vmatprep.subr.bf16.mxu0 %v6352_v38  ;;  %v1815_v38 = vld [vmem:[#allocation8 + $0xcf8] sm:$0xff]  ;;  %v6376_v29 = vpack.c.bf16 %v2363_v20, %v2362_v19  ;;  %v2562_v19 = vld [vmem:[#allocation8 + $0x1330] sm:$0xff] }
 0x2ae   :  { %6195 = vmatpush3.bf16.msra.mxu1 %v6194_v21  ;;  %v6216_v25 = vpack.c.bf16 %v1815_v38, %v1814_v61 }
 0x2af   :  { %6355 = vmatpush3.bf16.msra.mxu0 %v6354_v22  ;;  %6197 = vmatprep.subr.bf16.mxu1 %v6196_v23  ;;  %v6214_v23 = vpack.c.bf16 %v1797_v15, %v1796_v54  ;;  %v2561_v15 = vld [vmem:[#allocation8 + $0x1328] sm:$0xff] }
 0x2b0   :  { %6357 = vmatprep.subr.bf16.mxu0 %v6356_v27  ;;  %v1799_v27 = vld [vmem:[#allocation8 + $0xc78] sm:$0xff] }
 0x2b2   :  { %6199 = vmatpush3.bf16.msra.mxu1 %v6198_v37  ;;  %v2572_v37 = vld [vmem:[#allocation8 + $0x1380] sm:$0xff] }
 0x2b3   :  { %6359 = vmatpush3.bf16.msra.mxu0 %v6358_v35  ;;  %6201 = vmatprep.subr.bf16.mxu1 %v6200_v36  ;;  %v2573_v35 = vld [vmem:[#allocation8 + $0x1388] sm:$0xff]  ;;  %v6218_v36 = vpack.c.bf16 %v1799_v27, %v1798_v26  ;;  %v2580_v26 = vld [vmem:[#allocation8 + $0x13c0] sm:$0xff] }
 0x2b4   :  { %6361 = vmatprep.subr.bf16.mxu0 %v6360_v58  ;;  %v2003_v58 = vld [vmem:[#allocation8 + $0xe08] sm:$0xff]  ;;  %v6412_v45 = vpack.c.bf16 %v2573_v35, %v2572_v37  ;;  %v2564_v37 = vld [vmem:[#allocation8 + $0x1340] sm:$0xff] }
 0x2b5   :  { %v6254_v2 = vpack.c.bf16 %v2003_v58, %v2002_v50  ;;  %v2581_v27 = vld [vmem:[#allocation8 + $0x13c8] sm:$0xff]  ;;  %v2582_v50 = vld [vmem:[#allocation8 + $0x13d0] sm:$0xff]  ;;  %v2583_v58 = vld [vmem:[#allocation8 + $0x13d8] sm:$0xff] }
 0x2b6   :  { %6203 = vmatpush3.bf16.msra.mxu1 %v6202_v63  ;;  %v2020_v63 = vld [vmem:[#allocation8 + $0xe90] sm:$0xff]  ;;  %v6428_v35 = vpack.c.bf16 %v2581_v27, %v2580_v26  ;;  %v1999_v26 = vld [vmem:[#allocation2 + $0x30] sm:$0x30] }
 0x2b7   :  { %6363 = vmatpush3.bf16.msra.mxu0 %v6362_v0  ;;  %6205 = vmatprep.subr.bf16.mxu1 %v6204_v1  ;;  %v2021_v0 = vld [vmem:[#allocation8 + $0xe98] sm:$0xff] }
 0x2b8   :  { %6365 = vmatprep.subr.bf16.mxu0 %v6364_v31  ;;  %v1781_v1 = vld [vmem:[#allocation2 + $0x30] sm:$0x3] }
 0x2b9   :  { %v2575_v31 = vld [vmem:[#allocation8 + $0x1398] sm:$0xff] }
 0x2ba   :  { %6207 = vmatpush3.bf16.msra.mxu1 %v6206_v41  ;;  %v6256_v41 = vpack.c.bf16 %v2021_v0, %v2020_v63  ;;  %v6416_v48 = vpack.c.bf16 %v2575_v31, %v2574_v4  ;;  %v2566_v63 = vld [vmem:[#allocation8 + $0x1350] sm:$0xff]  ;;  %v6432_v0 = vpack.c.bf16 %v2583_v58, %v2582_v50  ;;  %v2584_v4 = vld [vmem:[#allocation8 + $0x13e0] sm:$0xff]  ;;  %v2585_v31 = vld [vmem:[#allocation8 + $0x13e8] sm:$0xff] }
 0x2bb   :  { %6367 = vmatpush3.bf16.msra.mxu0 %v6366_v42  ;;  %6209 = vmatprep.subr.bf16.mxu1 %v6208_v44  ;;  %v2559_v42 = vld [vmem:[#allocation8 + $0x1318] sm:$0xff]  ;;  %v2022_v44 = vld [vmem:[#allocation8 + $0xea0] sm:$0xff]  ;;  %v2228_v50 = vld [vmem:[#allocation8 + $0x1010] sm:$0xff] }
 0x2bc   :  { %v4512_v16 = vpop.f32.mrb[0].mxu1  ;;  %v4617_v56 = vpop.f32.mrb[18].mxu0  ;;  %6369 = vmatprep.subr.bf16.mxu0 %v6368_v8  ;;  %v2576_v8 = vld [vmem:[#allocation8 + $0x13a0] sm:$0xff]  ;;  %v6418_v12 = vpack.c.bf16 %v2559_v42, %v2558_v40  ;;  %v6260_v52 = vpack.c.bf16 %v2023_v46, %v2022_v44  ;;  %v6436_v46 = vpack.c.bf16 %v2585_v31, %v2584_v4  ;;  %v2229_v58 = vld [vmem:[#allocation8 + $0x1018] sm:$0xff] }
 0x2bd   :  { %v4513_v17 = vpop.f32.mrb[1].mxu1  ;;  %v4618_v18 = vpop.f32.mrb[19].mxu0  ;;  %v6420_v54 = vpack.c.bf16 %v2577_v9, %v2576_v8  ;;  %v2014_v40 = vld [vmem:[#allocation8 + $0xe60] sm:$0xff]  ;;  %v2033_v8 = vld [vmem:[#allocation8 + $0xef8] sm:$0xff]  ;;  %v6322_v31 = vpack.c.bf16 %v2229_v58, %v2228_v50 }
 0x2be   :  { %v7369_v21 = vadd.f32 %v4513_v17, %v4512_v16  ;;  %v7371_v22 = vadd.f32 %v4618_v18, %v4617_v56  ;;  %6211 = vmatpush3.bf16.msra.mxu1 %v6210_v13  ;;  %v2006_v13 = vld [vmem:[#allocation8 + $0xe20] sm:$0xff]  ;;  %v2025_v16 = vld [vmem:[#allocation8 + $0xeb8] sm:$0xff]  ;;  %v2578_v56 = vld [vmem:[#allocation8 + $0x13b0] sm:$0xff] }
 0x2bf   :  { %6371 = vmatpush3.bf16.msra.mxu0 %v6370_v53  ;;  %6213 = vmatprep.subr.bf16.mxu1 %v6212_v14  ;;  %v2007_v53 = vld [vmem:[#allocation8 + $0xe28] sm:$0xff]  ;;  %v2560_v14 = vld [vmem:[#allocation8 + $0x1320] sm:$0xff]  ;;  %v6264_v38 = vpack.c.bf16 %v2025_v16, %v2024_v55  ;;  %v2008_v17 = vld [vmem:[#allocation8 + $0xe30] sm:$0xff] }
 0x2c0   :  { %6373 = vmatprep.subr.bf16.mxu0 %v6372_v59  ;;  %v2579_v59 = vld [vmem:[#allocation8 + $0x13b8] sm:$0xff]  ;;  %v6262_v60 = vpack.c.bf16 %v2007_v53, %v2006_v13  ;;  %v6422_v61 = vpack.c.bf16 %v2561_v15, %v2560_v14  ;;  %v2016_v15 = vld [vmem:[#allocation8 + $0xe70] sm:$0xff] }
 0x2c1   :  { %v2009_v18 = vld [vmem:[#allocation8 + $0xe38] sm:$0xff]  ;;  %v6424_v20 = vpack.c.bf16 %v2579_v59, %v2578_v56  ;;  %v2570_v16 = vld [vmem:[#allocation8 + $0x1370] sm:$0xff] }
 0x2c2   :  { %6215 = vmatpush3.bf16.msra.mxu1 %v6214_v23  ;;  %v2563_v23 = vld [vmem:[#allocation8 + $0x1338] sm:$0xff]  ;;  %v6266_v28 = vpack.c.bf16 %v2009_v18, %v2008_v17  ;;  %v2790_v17 = vld [vmem:[#allocation8 + $0x1580] sm:$0xff]  ;;  %v2791_v18 = vld [vmem:[#allocation8 + $0x1588] sm:$0xff] }
 0x2c3   :  { %6375 = vmatpush3.bf16.msra.mxu0 %v6374_v24  ;;  %6217 = vmatprep.subr.bf16.mxu1 %v6216_v25  ;;  %v2026_v24 = vld [vmem:[#allocation8 + $0xec0] sm:$0xff]  ;;  %v2027_v25 = vld [vmem:[#allocation8 + $0xec8] sm:$0xff]  ;;  %v2017_v55 = vld [vmem:[#allocation8 + $0xe78] sm:$0xff]  ;;  %v6476_v27 = vpack.c.bf16 %v2791_v18, %v2790_v17 }
 0x2c4   :  { %6377 = vmatprep.subr.bf16.mxu0 %v6376_v29  ;;  %v6426_v29 = vpack.c.bf16 %v2563_v23, %v2562_v19  ;;  %v6268_v30 = vpack.c.bf16 %v2027_v25, %v2026_v24  ;;  %v6282_v19 = vpack.c.bf16 %v2017_v55, %v2016_v15  ;;  %v2226_v24 = vld [vmem:[#allocation8 + $0x1000] sm:$0xff]  ;;  %v2227_v25 = vld [vmem:[#allocation8 + $0x1008] sm:$0xff] }
 0x2c5   :  { %v6318_v34 = vpack.c.bf16 %v2227_v25, %v2226_v24  ;;  %v2251_v15 = vld [vmem:[#allocation8 + $0x10c8] sm:$0xff]  ;;  %v2798_v55 = vld [vmem:[#allocation8 + $0x15c0] sm:$0xff]  ;;  %v2253_v24 = vld [vmem:[#allocation8 + $0x10d8] sm:$0xff] }
 0x2c6   :  { %6219 = vmatpush3.bf16.msra.mxu1 %v6218_v36  ;;  %v2565_v36 = vld [vmem:[#allocation8 + $0x1348] sm:$0xff]  ;;  %v2782_v18 = vld [vmem:[#allocation8 + $0x1540] sm:$0xff]  ;;  %v2800_v25 = vld [vmem:[#allocation8 + $0x15d0] sm:$0xff] }
 0x2c7   :  { %6379 = vmatpush3.bf16.msra.mxu0 %v6378_v43  ;;  %6253 = vmatprep.subr.bf16.mxu1 %v6252_v49  ;;  %v2028_v43 = vld [vmem:[#allocation8 + $0xed0] sm:$0xff]  ;;  %v2029_v49 = vld [vmem:[#allocation8 + $0xed8] sm:$0xff]  ;;  %v2235_v17 = vld [vmem:[#allocation8 + $0x1048] sm:$0xff] }
 0x2c8   :  { %6413 = vmatprep.subr.bf16.mxu0 %v6412_v45  ;;  %v6430_v45 = vpack.c.bf16 %v2565_v36, %v2564_v37  ;;  %v6272_v51 = vpack.c.bf16 %v2029_v49, %v2028_v43  ;;  %v2772_v37 = vld [vmem:[#allocation2 + $0x58] sm:$0xc]  ;;  %v2793_v36 = vld [vmem:[#allocation8 + $0x1598] sm:$0xff]  ;;  %v2036_v43 = vrot.slane %v1999_v26, 4 }
 0x2c9   :  { %1881 = vmatmul.mubr.f32.vlgmr.msra.gmra.mrb[14].mxu1 %v1781_v1  ;;  %v2567_v1 = vld [vmem:[#allocation8 + $0x1358] sm:$0xff]  ;;  %v2809_v4 = vrot.slane %v2772_v37, 2 }
 0x2ca   :  { %2435 = vmatmul.mubr.f32.vlgmr.msra.gmra.mrb[32].mxu0 %v2366_v7  ;;  %6255 = vmatpush3.bf16.msra.mxu1 %v6254_v2  ;;  %v2030_v2 = vld [vmem:[#allocation8 + $0xee0] sm:$0xff]  ;;  %v6434_v33 = vpack.c.bf16 %v2567_v1, %v2566_v63  ;;  %v2015_v7 = vld [vmem:[#allocation8 + $0xe68] sm:$0xff]  ;;  %v2801_v26 = vld [vmem:[#allocation8 + $0x15d8] sm:$0xff] }
 0x2cb   :  { %2104 = vmatprep.mubr.f32.mxu1 %v2037_v47  ;;  %6415 = vmatpush3.bf16.msra.mxu0 %v6414_v5  ;;  %v6274_v5 = vpack.c.bf16 %v2013_v62, %v2012_v57  ;;  %v6276_v6 = vpack.c.bf16 %v2031_v3, %v2030_v2  ;;  %v2569_v47 = vld [vmem:[#allocation8 + $0x1368] sm:$0xff]  ;;  %v6278_v53 = vpack.c.bf16 %v2015_v7, %v2014_v40  ;;  %v2777_v57 = vld [vmem:[#allocation8 + $0x1518] sm:$0xff]  ;;  %v2246_v62 = vld [vmem:[#allocation8 + $0x10a0] sm:$0xff] }
 0x2cc   :  { %2658 = vmatprep.mubr.f32.mxu0 %v2591_v10  ;;  %6257 = vmatprep.subr.bf16.mxu1 %v6256_v41  ;;  %v2568_v41 = vld [vmem:[#allocation8 + $0x1360] sm:$0xff]  ;;  %v2247_v63 = vld [vmem:[#allocation8 + $0x10a8] sm:$0xff]  ;;  %v2224_v3 = vld [vmem:[#allocation2 + $0x48] sm:$0x3] }
 0x2cd   :  { %6417 = vmatprep.subr.bf16.mxu0 %v6416_v48  ;;  %v2032_v48 = vld [vmem:[#allocation8 + $0xef0] sm:$0xff]  ;;  %v6438_v14 = vpack.c.bf16 %v2569_v47, %v2568_v41  ;;  %v2794_v1 = vld [vmem:[#allocation8 + $0x15a0] sm:$0xff]  ;;  %v2795_v2 = vld [vmem:[#allocation8 + $0x15a8] sm:$0xff] }
 0x2ce   :  { %6259 = vmatpush3.bf16.msra.mxu1 %v6258_v11  ;;  %v2586_v11 = vld [vmem:[#allocation8 + $0x13f0] sm:$0xff]  ;;  %v2231_v40 = vld [vmem:[#allocation8 + $0x1028] sm:$0xff]  ;;  %v2778_v7 = vld [vmem:[#allocation8 + $0x1520] sm:$0xff]  ;;  %v6484_v41 = vpack.c.bf16 %v2795_v2, %v2794_v1 }
 0x2cf   :  { %6419 = vmatpush3.bf16.msra.mxu0 %v6418_v12  ;;  %6261 = vmatprep.subr.bf16.mxu1 %v6260_v52  ;;  %v2587_v12 = vld [vmem:[#allocation8 + $0x13f8] sm:$0xff]  ;;  %v2796_v47 = vld [vmem:[#allocation8 + $0x15b0] sm:$0xff] }
 0x2d0   :  { %6421 = vmatprep.subr.bf16.mxu0 %v6420_v54  ;;  %v6280_v54 = vpack.c.bf16 %v2033_v8, %v2032_v48  ;;  %v6440_v59 = vpack.c.bf16 %v2587_v12, %v2586_v11  ;;  %v2797_v48 = vld [vmem:[#allocation8 + $0x15b8] sm:$0xff]  ;;  %v2232_v11 = vld [vmem:[#allocation8 + $0x1030] sm:$0xff] }
 0x2d1   :  { %v2233_v12 = vld [vmem:[#allocation8 + $0x1038] sm:$0xff]  ;;  %v2256_v1 = vld [vmem:[#allocation8 + $0x10f0] sm:$0xff] }
 0x2d2   :  { %6263 = vmatpush3.bf16.msra.mxu1 %v6262_v60  ;;  %v2571_v60 = vld [vmem:[#allocation8 + $0x1378] sm:$0xff] }
 0x2d3   :  { %6423 = vmatpush3.bf16.msra.mxu0 %v6422_v61  ;;  %6265 = vmatprep.subr.bf16.mxu1 %v6264_v38  ;;  %v2242_v61 = vld [vmem:[#allocation8 + $0x1080] sm:$0xff]  ;;  %v2243_v38 = vld [vmem:[#allocation8 + $0x1088] sm:$0xff]  ;;  %v2785_v37 = vld [vmem:[#allocation8 + $0x1558] sm:$0xff] }
 0x2d4   :  { %6425 = vmatprep.subr.bf16.mxu0 %v6424_v20  ;;  %v6442_v20 = vpack.c.bf16 %v2571_v60, %v2570_v16  ;;  %v6316_v23 = vpack.c.bf16 %v2243_v38, %v2242_v61  ;;  %v2799_v16 = vld [vmem:[#allocation8 + $0x15c8] sm:$0xff]  ;;  %v2234_v38 = vld [vmem:[#allocation8 + $0x1040] sm:$0xff]  ;;  %v2257_v2 = vld [vmem:[#allocation8 + $0x10f8] sm:$0xff] }
 0x2d6   :  { %6267 = vmatpush3.bf16.msra.mxu1 %v6266_v28  ;;  %v2775_v28 = vld [vmem:[#allocation8 + $0x1508] sm:$0xff] }
 0x2d7   :  { %6427 = vmatpush3.bf16.msra.mxu0 %v6426_v29  ;;  %6269 = vmatprep.subr.bf16.mxu1 %v6268_v30  ;;  %v2553_v29 = vld [vmem:[#allocation2 + $0x40] sm:$0xc0] }
 0x2d8   :  { %6429 = vmatprep.subr.bf16.mxu0 %v6428_v35  ;;  %v2244_v30 = vld [vmem:[#allocation8 + $0x1090] sm:$0xff] }
 0x2d9   :  { %v2792_v35 = vld [vmem:[#allocation8 + $0x1590] sm:$0xff] }
 0x2da   :  { %6271 = vmatpush3.bf16.msra.mxu1 %v6270_v39  ;;  %v2776_v39 = vld [vmem:[#allocation8 + $0x1510] sm:$0xff] }
 0x2db   :  { %6431 = vmatpush3.bf16.msra.mxu0 %v6430_v45  ;;  %6273 = vmatprep.subr.bf16.mxu1 %v6272_v51  ;;  %v2590_v45 = vrot.slane %v2553_v29, 6  ;;  %v6320_v51 = vpack.c.bf16 %v2245_v32, %v2244_v30  ;;  %v2236_v29 = vld [vmem:[#allocation8 + $0x1050] sm:$0xff]  ;;  %v2237_v30 = vld [vmem:[#allocation8 + $0x1058] sm:$0xff] }
 0x2dc   :  { %v4547_v42 = vpop.f32.mrb[2].mxu1  ;;  %v4687_v44 = vpop.f32.mrb[20].mxu0  ;;  %6433 = vmatprep.subr.bf16.mxu0 %v6432_v0  ;;  %v6480_v0 = vpack.c.bf16 %v2793_v36, %v2792_v35  ;;  %v2784_v32 = vld [vmem:[#allocation8 + $0x1550] sm:$0xff]  ;;  %v2254_v35 = vld [vmem:[#allocation8 + $0x10e0] sm:$0xff]  ;;  %v2255_v36 = vld [vmem:[#allocation8 + $0x10e8] sm:$0xff]  ;;  %v6338_v50 = vpack.c.bf16 %v2237_v30, %v2236_v29 }
 0x2dd   :  { %v4548_v9 = vpop.f32.mrb[3].mxu1  ;;  %v4688_v10 = vpop.f32.mrb[21].mxu0  ;;  %v6498_v58 = vpack.c.bf16 %v2785_v37, %v2784_v32  ;;  %v3001_v30 = vld [vmem:[#allocation8 + $0x1718] sm:$0xff]  ;;  %v2464_v32 = vld [vmem:[#allocation8 + $0x12a0] sm:$0xff] }
 0x2de   :  { %v4549_v52 = vadd.f32 %v4548_v9, %v4547_v42  ;;  %v7373_v13 = vadd.f32 %v4688_v10, %v4687_v44  ;;  %6275 = vmatpush3.bf16.msra.mxu1 %v6274_v5  ;;  %v6482_v5 = vpack.c.bf16 %v2777_v57, %v2776_v39  ;;  %v2779_v42 = vld [vmem:[#allocation8 + $0x1528] sm:$0xff]  ;;  %v2248_v44 = vld [vmem:[#allocation8 + $0x10b0] sm:$0xff]  ;;  %v6340_v39 = vpack.c.bf16 %v2255_v36, %v2254_v35  ;;  %v2786_v57 = vld [vmem:[#allocation8 + $0x1560] sm:$0xff] }
 0x2df   :  { %6435 = vmatpush3.bf16.msra.mxu0 %v6434_v33  ;;  %6277 = vmatprep.subr.bf16.mxu1 %v6276_v6  ;;  %v6324_v33 = vpack.c.bf16 %v2247_v63, %v2246_v62  ;;  %v2230_v6 = vld [vmem:[#allocation8 + $0x1020] sm:$0xff]  ;;  %v6486_v9 = vpack.c.bf16 %v2779_v42, %v2778_v7  ;;  %v6344_v42 = vpack.c.bf16 %v2257_v2, %v2256_v1  ;;  %v2467_v1 = vld [vmem:[#allocation8 + $0x12b8] sm:$0xff]  ;;  %v3020_v2 = vld [vmem:[#allocation8 + $0x17b0] sm:$0xff] }
 0x2e0   :  { %v7376_v56 = vadd.f32 %v4549_v52, %v7369_v21  ;;  %6437 = vmatprep.subr.bf16.mxu0 %v6436_v46  ;;  %v2774_v21 = vld [vmem:[#allocation8 + $0x1500] sm:$0xff]  ;;  %v2249_v46 = vld [vmem:[#allocation8 + $0x10b8] sm:$0xff]  ;;  %v6326_v8 = vpack.c.bf16 %v2231_v40, %v2230_v6  ;;  %v2780_v52 = vld [vmem:[#allocation8 + $0x1530] sm:$0xff] }
 0x2e1   :  { %v6478_v49 = vpack.c.bf16 %v2775_v28, %v2774_v21  ;;  %v6328_v10 = vpack.c.bf16 %v2249_v46, %v2248_v44  ;;  %v2240_v44 = vld [vmem:[#allocation8 + $0x1070] sm:$0xff]  ;;  %v2241_v46 = vld [vmem:[#allocation8 + $0x1078] sm:$0xff]  ;;  %v3018_v36 = vld [vmem:[#allocation8 + $0x17a0] sm:$0xff] }
 0x2e2   :  { %6279 = vmatpush3.bf16.msra.mxu1 %v6278_v53  ;;  %v6488_v53 = vpack.c.bf16 %v2797_v48, %v2796_v47  ;;  %v2788_v47 = vld [vmem:[#allocation8 + $0x1570] sm:$0xff] }
 0x2e3   :  { %6439 = vmatpush3.bf16.msra.mxu0 %v6438_v14  ;;  %6281 = vmatprep.subr.bf16.mxu1 %v6280_v54  ;;  %v2781_v14 = vld [vmem:[#allocation8 + $0x1538] sm:$0xff]  ;;  %v2250_v54 = vld [vmem:[#allocation8 + $0x10c0] sm:$0xff] }
 0x2e4   :  { %6441 = vmatprep.subr.bf16.mxu0 %v6440_v59  ;;  %v6330_v59 = vpack.c.bf16 %v2233_v12, %v2232_v11  ;;  %v6490_v60 = vpack.c.bf16 %v2781_v14, %v2780_v52  ;;  %v6332_v61 = vpack.c.bf16 %v2251_v15, %v2250_v54  ;;  %v2461_v11 = vld [vmem:[#allocation8 + $0x1288] sm:$0xff]  ;;  %v3014_v12 = vld [vmem:[#allocation8 + $0x1780] sm:$0xff] }
 0x2e5   :  { %v3015_v52 = vld [vmem:[#allocation8 + $0x1788] sm:$0xff] }
 0x2e6   :  { %6283 = vmatpush3.bf16.msra.mxu1 %v6282_v19  ;;  %v6492_v19 = vpack.c.bf16 %v2799_v16, %v2798_v55  ;;  %v2444_v55 = vld [vmem:[#allocation8 + $0x1200] sm:$0xff]  ;;  %v2445_v16 = vld [vmem:[#allocation8 + $0x1208] sm:$0xff] }
 0x2e7   :  { %6443 = vmatpush3.bf16.msra.mxu0 %v6442_v20  ;;  %6317 = vmatprep.subr.bf16.mxu1 %v6316_v23  ;;  %v2783_v20 = vld [vmem:[#allocation8 + $0x1548] sm:$0xff]  ;;  %v2252_v23 = vld [vmem:[#allocation8 + $0x10d0] sm:$0xff] }
 0x2e8   :  { %6477 = vmatprep.subr.bf16.mxu0 %v6476_v27  ;;  %v6334_v27 = vpack.c.bf16 %v2235_v17, %v2234_v38  ;;  %v6494_v21 = vpack.c.bf16 %v2783_v20, %v2782_v18  ;;  %v6336_v28 = vpack.c.bf16 %v2253_v24, %v2252_v23  ;;  %v2442_v38 = vld [vmem:[#allocation2 + $0x48] sm:$0x30]  ;;  %v2462_v17 = vld [vmem:[#allocation8 + $0x1290] sm:$0xff]  ;;  %v6382_v20 = vpack.c.bf16 %v2445_v16, %v2444_v55  ;;  %v2996_v23 = vld [vmem:[#allocation2 + $0x58] sm:$0xc0] }
 0x2e9   :  { %2105 = vmatmul.mubr.f32.vlgmr.msra.gmra.mrb[16].mxu1 %v2036_v43  ;;  %v2802_v43 = vld [vmem:[#allocation8 + $0x15e0] sm:$0xff]  ;;  %v2463_v18 = vld [vmem:[#allocation8 + $0x1298] sm:$0xff]  ;;  %v2479_v37 = vrot.slane %v2442_v38, 4  ;;  %v3024_v16 = vld [vmem:[#allocation8 + $0x17d0] sm:$0xff] }
 0x2ea   :  { %2659 = vmatmul.mubr.f32.vlgmr.msra.gmra.mrb[34].mxu0 %v2590_v45  ;;  %6319 = vmatpush3.bf16.msra.mxu1 %v6318_v34  ;;  %v6496_v34 = vpack.c.bf16 %v2801_v26, %v2800_v25  ;;  %v2238_v45 = vld [vmem:[#allocation8 + $0x1060] sm:$0xff]  ;;  %v3017_v24 = vld [vmem:[#allocation8 + $0x1798] sm:$0xff]  ;;  %v2446_v26 = vld [vmem:[#allocation8 + $0x1210] sm:$0xff]  ;;  %v6384_v29 = vpack.c.bf16 %v2463_v18, %v2462_v17 }
 0x2eb   :  { %2322 = vmatprep.mubr.f32.mxu1 %v2224_v3  ;;  %6479 = vmatpush3.bf16.msra.mxu0 %v6478_v49  ;;  %v2803_v49 = vld [vmem:[#allocation8 + $0x15e8] sm:$0xff]  ;;  %v2471_v55 = vld [vmem:[#allocation8 + $0x12d8] sm:$0xff]  ;;  %v2454_v38 = vld [vmem:[#allocation8 + $0x1250] sm:$0xff] }
 0x2ec   :  { %2876 = vmatprep.mubr.f32.mxu0 %v2809_v4  ;;  %6321 = vmatprep.subr.bf16.mxu1 %v6320_v51  ;;  %v2239_v51 = vld [vmem:[#allocation8 + $0x1068] sm:$0xff]  ;;  %v6500_v63 = vpack.c.bf16 %v2803_v49, %v2802_v43  ;;  %v3033_v49 = vrot.slane %v2996_v23, 6  ;;  %v2455_v17 = vld [vmem:[#allocation8 + $0x1258] sm:$0xff]  ;;  %v3008_v18 = vld [vmem:[#allocation8 + $0x1750] sm:$0xff] }
 0x2ed   :  { %6481 = vmatprep.subr.bf16.mxu0 %v6480_v0  ;;  %v2787_v0 = vld [vmem:[#allocation8 + $0x1568] sm:$0xff]  ;;  %v6342_v40 = vpack.c.bf16 %v2239_v51, %v2238_v45  ;;  %v2448_v45 = vld [vmem:[#allocation8 + $0x1220] sm:$0xff] }
 0x2ee   :  { %6323 = vmatpush3.bf16.msra.mxu1 %v6322_v31  ;;  %v2804_v31 = vld [vmem:[#allocation8 + $0x15f0] sm:$0xff]  ;;  %v3019_v43 = vld [vmem:[#allocation8 + $0x17a8] sm:$0xff]  ;;  %v2472_v23 = vld [vmem:[#allocation8 + $0x12e0] sm:$0xff] }
 0x2ef   :  { %6483 = vmatpush3.bf16.msra.mxu0 %v6482_v5  ;;  %6325 = vmatprep.subr.bf16.mxu1 %v6324_v33  ;;  %v2805_v5 = vld [vmem:[#allocation8 + $0x15f8] sm:$0xff]  ;;  %v2449_v51 = vld [vmem:[#allocation8 + $0x1228] sm:$0xff] }
 0x2f0   :  { %6485 = vmatprep.subr.bf16.mxu0 %v6484_v41  ;;  %v6502_v41 = vpack.c.bf16 %v2787_v0, %v2786_v57  ;;  %v3002_v57 = vld [vmem:[#allocation8 + $0x1720] sm:$0xff]  ;;  %v2466_v0 = vld [vmem:[#allocation8 + $0x12b0] sm:$0xff] }
 0x2f2   :  { %6327 = vmatpush3.bf16.msra.mxu1 %v6326_v8  ;;  %v6504_v8 = vpack.c.bf16 %v2805_v5, %v2804_v31  ;;  %v6392_v5 = vpack.c.bf16 %v2467_v1, %v2466_v0  ;;  %v2458_v0 = vld [vmem:[#allocation8 + $0x1270] sm:$0xff]  ;;  %v2459_v1 = vld [vmem:[#allocation8 + $0x1278] sm:$0xff] }
 0x2f3   :  { %6487 = vmatpush3.bf16.msra.mxu0 %v6486_v9  ;;  %6329 = vmatprep.subr.bf16.mxu1 %v6328_v10  ;;  %v2789_v9 = vld [vmem:[#allocation8 + $0x1578] sm:$0xff]  ;;  %v2460_v10 = vld [vmem:[#allocation8 + $0x1280] sm:$0xff] }
 0x2f4   :  { %6489 = vmatprep.subr.bf16.mxu0 %v6488_v53  ;;  %v6346_v53 = vpack.c.bf16 %v2241_v46, %v2240_v44  ;;  %v6506_v54 = vpack.c.bf16 %v2789_v9, %v2788_v47  ;;  %v6380_v15 = vpack.c.bf16 %v2461_v11, %v2460_v10  ;;  %v2468_v44 = vld [vmem:[#allocation8 + $0x12c0] sm:$0xff]  ;;  %v2469_v46 = vld [vmem:[#allocation8 + $0x12c8] sm:$0xff] }
 0x2f5   :  { %v3022_v47 = vld [vmem:[#allocation8 + $0x17c0] sm:$0xff]  ;;  %v6396_v10 = vpack.c.bf16 %v2469_v46, %v2468_v44 }
 0x2f6   :  { %6331 = vmatpush3.bf16.msra.mxu1 %v6330_v59  ;;  %v6540_v59 = vpack.c.bf16 %v3015_v52, %v3014_v12  ;;  %v2452_v11 = vld [vmem:[#allocation8 + $0x1240] sm:$0xff]  ;;  %v2453_v12 = vld [vmem:[#allocation8 + $0x1248] sm:$0xff] }
 0x2f7   :  { %6491 = vmatpush3.bf16.msra.mxu0 %v6490_v60  ;;  %6333 = vmatprep.subr.bf16.mxu1 %v6332_v61  ;;  %v2998_v60 = vld [vmem:[#allocation8 + $0x1700] sm:$0xff]  ;;  %v2999_v61 = vld [vmem:[#allocation8 + $0x1708] sm:$0xff] }
 0x2f8   :  { %6493 = vmatprep.subr.bf16.mxu0 %v6492_v19  ;;  %v2223_v19 = vld [vmem:[#allocation2 + $0x40] sm:$0x3]  ;;  %v6542_v25 = vpack.c.bf16 %v2999_v61, %v2998_v60  ;;  %v3006_v52 = vld [vmem:[#allocation8 + $0x1740] sm:$0xff] }
 0x2fa   :  { %6335 = vmatpush3.bf16.msra.mxu1 %v6334_v27  ;;  %v2447_v27 = vld [vmem:[#allocation8 + $0x1218] sm:$0xff] }
 0x2fb   :  { %6495 = vmatpush3.bf16.msra.mxu0 %v6494_v21  ;;  %6337 = vmatprep.subr.bf16.mxu1 %v6336_v28  ;;  %v3000_v21 = vld [vmem:[#allocation8 + $0x1710] sm:$0xff] }
 0x2fc   :  { %v4582_v62 = vpop.f32.mrb[4].mxu1  ;;  %6497 = vmatprep.subr.bf16.mxu0 %v6496_v34  ;;  %v2465_v34 = vld [vmem:[#allocation8 + $0x12a8] sm:$0xff] }
 0x2fd   :  { %v4757_v3 = vpop.f32.mrb[22].mxu0  ;;  %v4583_v4 = vpop.f32.mrb[5].mxu1 }
 0x2fe   :  { %v4584_v33 = vadd.f32 %v4583_v4, %v4582_v62  ;;  %v4758_v6 = vpop.f32.mrb[23].mxu0  ;;  %6339 = vmatpush3.bf16.msra.mxu1 %v6338_v50  ;;  %v6386_v50 = vpack.c.bf16 %v2447_v27, %v2446_v26  ;;  %v6548_v62 = vpack.c.bf16 %v3019_v43, %v3018_v36  ;;  %v6390_v4 = vpack.c.bf16 %v2449_v51, %v2448_v45  ;;  %v2475_v36 = vld [vmem:[#allocation8 + $0x12f8] sm:$0xff] }
 0x2ff   :  { %v7378_v7 = vadd.f32 %v4758_v6, %v4757_v3  ;;  %6499 = vmatpush3.bf16.msra.mxu0 %v6498_v58  ;;  %6341 = vmatprep.subr.bf16.mxu1 %v6340_v39  ;;  %v6546_v58 = vpack.c.bf16 %v3001_v30, %v3000_v21  ;;  %v6388_v39 = vpack.c.bf16 %v2465_v34, %v2464_v32  ;;  %v3021_v3 = vld [vmem:[#allocation8 + $0x17b8] sm:$0xff]  ;;  %v3010_v30 = vld [vmem:[#allocation8 + $0x1760] sm:$0xff] }
 0x300   :  { %v784_v48 = vadd.f32 %v4584_v33, %v7376_v56  ;;  %6501 = vmatprep.subr.bf16.mxu0 %v6500_v63  ;;  %v2771_v56 = vld [vmem:[#allocation2 + $0x50] sm:$0xc]  ;;  %v3003_v63 = vld [vmem:[#allocation8 + $0x1728] sm:$0xff]  ;;  %v2450_v33 = vld [vmem:[#allocation8 + $0x1230] sm:$0xff]  ;;  %v6402_v26 = vpack.c.bf16 %v2455_v17, %v2454_v38 }
 0x301   :  { %v2808_v28 = vrot.slane %v2771_v56, 2  ;;  %v6550_v31 = vpack.c.bf16 %v3003_v63, %v3002_v57  ;;  %v2451_v6 = vld [vmem:[#allocation8 + $0x1238] sm:$0xff] }
 0x302   :  { %6343 = vmatpush3.bf16.msra.mxu1 %v6342_v40  ;;  %v7382_v14 = vadd.f32 %v7371_v22, %v784_v48  ;;  %v3016_v22 = vld [vmem:[#allocation8 + $0x1790] sm:$0xff]  ;;  %v3023_v48 = vld [vmem:[#allocation8 + $0x17c8] sm:$0xff]  ;;  %v3025_v56 = vld [vmem:[#allocation8 + $0x17d8] sm:$0xff] }
 0x303   :  { %6503 = vmatpush3.bf16.msra.mxu0 %v6502_v41  ;;  %6345 = vmatprep.subr.bf16.mxu1 %v6344_v42  ;;  %v6544_v35 = vpack.c.bf16 %v3017_v24, %v3016_v22  ;;  %v3004_v40 = vld [vmem:[#allocation8 + $0x1730] sm:$0xff]  ;;  %v6552_v41 = vpack.c.bf16 %v3021_v3, %v3020_v2  ;;  %v3005_v42 = vld [vmem:[#allocation8 + $0x1738] sm:$0xff]  ;;  %v2473_v22 = vld [vmem:[#allocation8 + $0x12e8] sm:$0xff] }
 0x304   :  { %6505 = vmatprep.subr.bf16.mxu0 %v6504_v8  ;;  %v6394_v8 = vpack.c.bf16 %v2451_v6, %v2450_v33  ;;  %v6554_v9 = vpack.c.bf16 %v3005_v42, %v3004_v40  ;;  %v3026_v24 = vld [vmem:[#allocation8 + $0x17e0] sm:$0xff]  ;;  %v6404_v21 = vpack.c.bf16 %v2473_v22, %v2472_v23  ;;  %v3012_v2 = vld [vmem:[#allocation8 + $0x1770] sm:$0xff]  ;;  %v2685_v33 = vld [vmem:[#allocation8 + $0x1488] sm:$0xff] }
 0x305   :  { %v3232_v6 = vld [vmem:[#allocation8 + $0x1980] sm:$0xff]  ;;  %v3233_v40 = vld [vmem:[#allocation8 + $0x1988] sm:$0xff]  ;;  %v3219_v17 = vld [vmem:[#allocation8 + $0x1918] sm:$0xff] }
 0x306   :  { %6347 = vmatpush3.bf16.msra.mxu1 %v6346_v53  ;;  %v6556_v53 = vpack.c.bf16 %v3023_v48, %v3022_v47  ;;  %v2668_v47 = vld [vmem:[#allocation8 + $0x1400] sm:$0xff]  ;;  %v2669_v48 = vld [vmem:[#allocation8 + $0x1408] sm:$0xff] }
 0x307   :  { %6507 = vmatpush3.bf16.msra.mxu0 %v6506_v54  ;;  %6381 = vmatprep.subr.bf16.mxu1 %v6380_v15  ;;  %v3007_v54 = vld [vmem:[#allocation8 + $0x1748] sm:$0xff]  ;;  %v2470_v15 = vld [vmem:[#allocation8 + $0x12d0] sm:$0xff]  ;;  %v3236_v23 = vld [vmem:[#allocation8 + $0x19a0] sm:$0xff] }
 0x308   :  { %6541 = vmatprep.subr.bf16.mxu0 %v6540_v59  ;;  %v6398_v59 = vpack.c.bf16 %v2453_v12, %v2452_v11  ;;  %v6558_v60 = vpack.c.bf16 %v3007_v54, %v3006_v52  ;;  %v6400_v61 = vpack.c.bf16 %v2471_v55, %v2470_v15  ;;  %v2995_v11 = vld [vmem:[#allocation2 + $0x50] sm:$0xc0]  ;;  %v2686_v12 = vld [vmem:[#allocation8 + $0x1490] sm:$0xff]  ;;  %v2687_v52 = vld [vmem:[#allocation8 + $0x1498] sm:$0xff] }
 0x309   :  { %2323 = vmatmul.mubr.f32.vlgmr.msra.gmra.mrb[18].mxu1 %v2223_v19  ;;  %v6560_v19 = vpack.c.bf16 %v3025_v56, %v3024_v16  ;;  %v3214_v54 = vld [vmem:[#allocation2 + $0x68] sm:$0xc]  ;;  %v6448_v38 = vpack.c.bf16 %v2687_v52, %v2686_v12  ;;  %v3237_v22 = vld [vmem:[#allocation8 + $0x19a8] sm:$0xff] }
 0x30a   :  { %2877 = vmatmul.mubr.f32.vlgmr.msra.gmra.mrb[36].mxu0 %v2808_v28  ;;  %6383 = vmatpush3.bf16.msra.mxu1 %v6382_v20  ;;  %v3009_v20 = vld [vmem:[#allocation8 + $0x1758] sm:$0xff]  ;;  %v2456_v28 = vld [vmem:[#allocation8 + $0x1260] sm:$0xff]  ;;  %v3234_v15 = vld [vmem:[#allocation8 + $0x1990] sm:$0xff] }
 0x30b   :  { %2546 = vmatprep.mubr.f32.mxu1 %v2479_v37  ;;  %6543 = vmatpush3.bf16.msra.mxu0 %v6542_v25  ;;  %v3027_v25 = vld [vmem:[#allocation8 + $0x17e8] sm:$0xff]  ;;  %v6562_v27 = vpack.c.bf16 %v3009_v20, %v3008_v18  ;;  %v2670_v56 = vld [vmem:[#allocation8 + $0x1410] sm:$0xff]  ;;  %v2688_v18 = vld [vmem:[#allocation8 + $0x14a0] sm:$0xff] }
 0x30c   :  { %3100 = vmatprep.mubr.f32.mxu0 %v3033_v49  ;;  %6385 = vmatprep.subr.bf16.mxu1 %v6384_v29  ;;  %v2457_v29 = vld [vmem:[#allocation8 + $0x1268] sm:$0xff]  ;;  %v6564_v34 = vpack.c.bf16 %v3027_v25, %v3026_v24  ;;  %v2666_v24 = vld [vmem:[#allocation2 + $0x58] sm:$0x3]  ;;  %v3251_v25 = vrot.slane %v3214_v54, 2  ;;  %v2679_v12 = vld [vmem:[#allocation8 + $0x1458] sm:$0xff] }
 0x30d   :  { %6545 = vmatprep.subr.bf16.mxu0 %v6544_v35  ;;  %v3011_v37 = vld [vmem:[#allocation8 + $0x1768] sm:$0xff]  ;;  %v2474_v35 = vld [vmem:[#allocation8 + $0x12f0] sm:$0xff]  ;;  %v6406_v51 = vpack.c.bf16 %v2457_v29, %v2456_v28  ;;  %v2672_v28 = vld [vmem:[#allocation8 + $0x1420] sm:$0xff] }
 0x30e   :  { %6387 = vmatpush3.bf16.msra.mxu1 %v6386_v50  ;;  %v3028_v50 = vld [vmem:[#allocation8 + $0x17f0] sm:$0xff]  ;;  %v6408_v63 = vpack.c.bf16 %v2475_v36, %v2474_v35  ;;  %v2673_v29 = vld [vmem:[#allocation8 + $0x1428] sm:$0xff]  ;;  %v2691_v35 = vld [vmem:[#allocation8 + $0x14b8] sm:$0xff] }
 0x30f   :  { %6547 = vmatpush3.bf16.msra.mxu0 %v6546_v58  ;;  %6389 = vmatprep.subr.bf16.mxu1 %v6388_v39  ;;  %v3029_v58 = vld [vmem:[#allocation8 + $0x17f8] sm:$0xff]  ;;  %v3238_v36 = vld [vmem:[#allocation8 + $0x19b0] sm:$0xff] }
 0x310   :  { %6549 = vmatprep.subr.bf16.mxu0 %v6548_v62  ;;  %v6566_v62 = vpack.c.bf16 %v3011_v37, %v3010_v30  ;;  %v3220_v30 = vld [vmem:[#allocation8 + $0x1920] sm:$0xff]  ;;  %v2690_v37 = vld [vmem:[#allocation8 + $0x14b0] sm:$0xff]  ;;  %v3227_v54 = vld [vmem:[#allocation8 + $0x1958] sm:$0xff] }
 0x311   :  { %v3226_v52 = vld [vmem:[#allocation8 + $0x1950] sm:$0xff] }
 0x312   :  { %6391 = vmatpush3.bf16.msra.mxu1 %v6390_v4  ;;  %v6568_v4 = vpack.c.bf16 %v3029_v58, %v3028_v50  ;;  %v6456_v58 = vpack.c.bf16 %v2691_v35, %v2690_v37  ;;  %v2682_v37 = vld [vmem:[#allocation8 + $0x1470] sm:$0xff]  ;;  %v2683_v35 = vld [vmem:[#allocation8 + $0x1478] sm:$0xff] }
 0x313   :  { %6551 = vmatpush3.bf16.msra.mxu0 %v6550_v31  ;;  %6393 = vmatprep.subr.bf16.mxu1 %v6392_v5  ;;  %v3013_v31 = vld [vmem:[#allocation8 + $0x1778] sm:$0xff]  ;;  %v2684_v5 = vld [vmem:[#allocation8 + $0x1480] sm:$0xff] }
 0x314   :  { %6553 = vmatprep.subr.bf16.mxu0 %v6552_v41  ;;  %v6410_v41 = vpack.c.bf16 %v2459_v1, %v2458_v0  ;;  %v6570_v44 = vpack.c.bf16 %v3013_v31, %v3012_v2  ;;  %v6444_v46 = vpack.c.bf16 %v2685_v33, %v2684_v5  ;;  %v2692_v0 = vld [vmem:[#allocation8 + $0x14c0] sm:$0xff]  ;;  %v2693_v1 = vld [vmem:[#allocation8 + $0x14c8] sm:$0xff] }
 0x315   :  { %v3240_v2 = vld [vmem:[#allocation8 + $0x19c0] sm:$0xff]  ;;  %v6460_v5 = vpack.c.bf16 %v2693_v1, %v2692_v0 }
 0x316   :  { %6395 = vmatpush3.bf16.msra.mxu1 %v6394_v8  ;;  %v6604_v8 = vpack.c.bf16 %v3233_v40, %v3232_v6  ;;  %v2676_v33 = vld [vmem:[#allocation8 + $0x1440] sm:$0xff]  ;;  %v2677_v6 = vld [vmem:[#allocation8 + $0x1448] sm:$0xff] }
 0x317   :  { %6555 = vmatpush3.bf16.msra.mxu0 %v6554_v9  ;;  %6397 = vmatprep.subr.bf16.mxu1 %v6396_v10  ;;  %v3216_v9 = vld [vmem:[#allocation8 + $0x1900] sm:$0xff]  ;;  %v3217_v10 = vld [vmem:[#allocation8 + $0x1908] sm:$0xff] }
 0x318   :  { %6557 = vmatprep.subr.bf16.mxu0 %v6556_v53  ;;  %v6446_v53 = vpack.c.bf16 %v2669_v48, %v2668_v47  ;;  %v6606_v16 = vpack.c.bf16 %v3217_v10, %v3216_v9  ;;  %v3224_v40 = vld [vmem:[#allocation8 + $0x1940] sm:$0xff]  ;;  %v2695_v47 = vld [vmem:[#allocation8 + $0x14d8] sm:$0xff]  ;;  %v3242_v48 = vld [vmem:[#allocation8 + $0x19d0] sm:$0xff] }
 0x31a   :  { %6399 = vmatpush3.bf16.msra.mxu1 %v6398_v59  ;;  %v2671_v59 = vld [vmem:[#allocation8 + $0x1418] sm:$0xff] }
 0x31b   :  { %6559 = vmatpush3.bf16.msra.mxu0 %v6558_v60  ;;  %6401 = vmatprep.subr.bf16.mxu1 %v6400_v61  ;;  %v3218_v60 = vld [vmem:[#allocation8 + $0x1910] sm:$0xff]  ;;  %v3032_v61 = vrot.slane %v2995_v11, 6 }
 0x31c   :  { %v4652_v32 = vpop.f32.mrb[6].mxu1  ;;  %6561 = vmatprep.subr.bf16.mxu0 %v6560_v19  ;;  %v2689_v19 = vld [vmem:[#allocation8 + $0x14a8] sm:$0xff]  ;;  %v2678_v11 = vld [vmem:[#allocation8 + $0x1450] sm:$0xff] }
 0x31d   :  { %v4827_v43 = vpop.f32.mrb[24].mxu0  ;;  %v4653_v49 = vpop.f32.mrb[7].mxu1 }
 0x31e   :  { %v4654_v39 = vadd.f32 %v4653_v49, %v4652_v32  ;;  %v4828_v45 = vpop.f32.mrb[25].mxu0  ;;  %6403 = vmatpush3.bf16.msra.mxu1 %v6402_v26  ;;  %v6450_v26 = vpack.c.bf16 %v2671_v59, %v2670_v56  ;;  %v6612_v32 = vpack.c.bf16 %v3237_v22, %v3236_v23  ;;  %v6454_v49 = vpack.c.bf16 %v2673_v29, %v2672_v28  ;;  %v2698_v23 = vld [vmem:[#allocation8 + $0x14f0] sm:$0xff]  ;;  %v2699_v22 = vld [vmem:[#allocation8 + $0x14f8] sm:$0xff] }
 0x31f   :  { %v7384_v57 = vadd.f32 %v4828_v45, %v4827_v43  ;;  %6563 = vmatpush3.bf16.msra.mxu0 %v6562_v27  ;;  %6405 = vmatprep.subr.bf16.mxu1 %v6404_v21  ;;  %v6610_v27 = vpack.c.bf16 %v3219_v17, %v3218_v60  ;;  %v6452_v21 = vpack.c.bf16 %v2689_v19, %v2688_v18  ;;  %v3239_v43 = vld [vmem:[#allocation8 + $0x19b8] sm:$0xff]  ;;  %v3228_v17 = vld [vmem:[#allocation8 + $0x1960] sm:$0xff] }
 0x320   :  { %v1002_v3 = vadd.f32 %v4654_v39, %v7382_v14  ;;  %6565 = vmatprep.subr.bf16.mxu0 %v6564_v34  ;;  %v2441_v14 = vld [vmem:[#allocation2 + $0x40] sm:$0x30]  ;;  %v3221_v34 = vld [vmem:[#allocation8 + $0x1928] sm:$0xff]  ;;  %v2675_v45 = vld [vmem:[#allocation8 + $0x1438] sm:$0xff]  ;;  %v6466_v56 = vpack.c.bf16 %v2679_v12, %v2678_v11  ;;  %v6626_v59 = vpack.c.bf16 %v3227_v54, %v3226_v52 }
 0x321   :  { %v2478_v55 = vrot.slane %v2441_v14, 4  ;;  %v6614_v50 = vpack.c.bf16 %v3221_v34, %v3220_v30  ;;  %v2674_v39 = vld [vmem:[#allocation8 + $0x1430] sm:$0xff]  ;;  %v3243_v14 = vld [vmem:[#allocation8 + $0x19d8] sm:$0xff]  ;;  %v6472_v34 = vpack.c.bf16 %v2699_v22, %v2698_v23  ;;  %v2906_v52 = vld [vmem:[#allocation8 + $0x16a0] sm:$0xff] }
 0x322   :  { %6407 = vmatpush3.bf16.msra.mxu1 %v6406_v51  ;;  %v7388_v42 = vadd.f32 %v7373_v13, %v1002_v3  ;;  %v3235_v13 = vld [vmem:[#allocation8 + $0x1998] sm:$0xff]  ;;  %v3222_v51 = vld [vmem:[#allocation8 + $0x1930] sm:$0xff]  ;;  %v3241_v3 = vld [vmem:[#allocation8 + $0x19c8] sm:$0xff] }
 0x323   :  { %6567 = vmatpush3.bf16.msra.mxu0 %v6566_v62  ;;  %6409 = vmatprep.subr.bf16.mxu1 %v6408_v63  ;;  %v6608_v20 = vpack.c.bf16 %v3235_v13, %v3234_v15  ;;  %v6616_v62 = vpack.c.bf16 %v3239_v43, %v3238_v36  ;;  %v3223_v63 = vld [vmem:[#allocation8 + $0x1938] sm:$0xff]  ;;  %v2696_v15 = vld [vmem:[#allocation8 + $0x14e0] sm:$0xff]  ;;  %v2697_v13 = vld [vmem:[#allocation8 + $0x14e8] sm:$0xff] }
 0x324   :  { %6569 = vmatprep.subr.bf16.mxu0 %v6568_v4  ;;  %v6458_v4 = vpack.c.bf16 %v2675_v45, %v2674_v39  ;;  %v6618_v31 = vpack.c.bf16 %v3223_v63, %v3222_v51  ;;  %v6468_v60 = vpack.c.bf16 %v2697_v13, %v2696_v15  ;;  %v3230_v36 = vld [vmem:[#allocation8 + $0x1970] sm:$0xff]  ;;  %v2903_v39 = vld [vmem:[#allocation8 + $0x1688] sm:$0xff]  ;;  %v3456_v45 = vld [vmem:[#allocation8 + $0x1b80] sm:$0xff] }
 0x325   :  { %v3457_v51 = vld [vmem:[#allocation8 + $0x1b88] sm:$0xff]  ;;  %v3443_v12 = vld [vmem:[#allocation8 + $0x1b18] sm:$0xff]  ;;  %v3460_v13 = vld [vmem:[#allocation8 + $0x1ba0] sm:$0xff] }
 0x326   :  { %6411 = vmatpush3.bf16.msra.mxu1 %v6410_v41  ;;  %v6620_v41 = vpack.c.bf16 %v3241_v3, %v3240_v2  ;;  %v2886_v2 = vld [vmem:[#allocation8 + $0x1600] sm:$0xff]  ;;  %v2887_v3 = vld [vmem:[#allocation8 + $0x1608] sm:$0xff]  ;;  %v2909_v23 = vld [vmem:[#allocation8 + $0x16b8] sm:$0xff] }
 0x327   :  { %6571 = vmatpush3.bf16.msra.mxu0 %v6570_v44  ;;  %6445 = vmatprep.subr.bf16.mxu1 %v6444_v46  ;;  %v3225_v44 = vld [vmem:[#allocation8 + $0x1948] sm:$0xff]  ;;  %v2694_v46 = vld [vmem:[#allocation8 + $0x14d0] sm:$0xff] }
 0x328   :  { %6605 = vmatprep.subr.bf16.mxu0 %v6604_v8  ;;  %v6462_v8 = vpack.c.bf16 %v2677_v6, %v2676_v33  ;;  %v6622_v9 = vpack.c.bf16 %v3225_v44, %v3224_v40  ;;  %v6464_v10 = vpack.c.bf16 %v2695_v47, %v2694_v46  ;;  %v2884_v33 = vld [vmem:[#allocation2 + $0x58] sm:$0x30]  ;;  %v2904_v6 = vld [vmem:[#allocation8 + $0x1690] sm:$0xff]  ;;  %v2905_v40 = vld [vmem:[#allocation8 + $0x1698] sm:$0xff]  ;;  %v6510_v44 = vpack.c.bf16 %v2887_v3, %v2886_v2 }
 0x329   :  { %2547 = vmatmul.mubr.f32.vlgmr.msra.gmra.mrb[20].mxu1 %v2478_v55  ;;  %v3244_v55 = vld [vmem:[#allocation8 + $0x19e0] sm:$0xff]  ;;  %v3438_v46 = vld [vmem:[#allocation2 + $0x68] sm:$0xc0]  ;;  %v6512_v11 = vpack.c.bf16 %v2905_v40, %v2904_v6  ;;  %v2921_v54 = vrot.slane %v2884_v33, 4  ;;  %v3462_v22 = vld [vmem:[#allocation8 + $0x1bb0] sm:$0xff] }
 0x32a   :  { %3101 = vmatmul.mubr.f32.vlgmr.msra.gmra.mrb[38].mxu0 %v3032_v61  ;;  %6447 = vmatpush3.bf16.msra.mxu1 %v6446_v53  ;;  %v6624_v53 = vpack.c.bf16 %v3243_v14, %v3242_v48  ;;  %v2680_v61 = vld [vmem:[#allocation8 + $0x1460] sm:$0xff]  ;;  %v3459_v47 = vld [vmem:[#allocation8 + $0x1b98] sm:$0xff]  ;;  %v2888_v14 = vld [vmem:[#allocation8 + $0x1610] sm:$0xff] }
 0x32b   :  { %2764 = vmatprep.mubr.f32.mxu1 %v2666_v24  ;;  %6607 = vmatpush3.bf16.msra.mxu0 %v6606_v16  ;;  %v3245_v16 = vld [vmem:[#allocation8 + $0x19e8] sm:$0xff]  ;;  %v2913_v2 = vld [vmem:[#allocation8 + $0x16d8] sm:$0xff]  ;;  %v3466_v3 = vld [vmem:[#allocation8 + $0x1bd0] sm:$0xff] }
 0x32c   :  { %3318 = vmatprep.mubr.f32.mxu0 %v3251_v25  ;;  %6449 = vmatprep.subr.bf16.mxu1 %v6448_v38  ;;  %v2681_v38 = vld [vmem:[#allocation8 + $0x1468] sm:$0xff]  ;;  %v6628_v19 = vpack.c.bf16 %v3245_v16, %v3244_v55  ;;  %v3475_v16 = vrot.slane %v3438_v46, 6  ;;  %v2896_v33 = vld [vmem:[#allocation8 + $0x1650] sm:$0xff]  ;;  %v2897_v6 = vld [vmem:[#allocation8 + $0x1658] sm:$0xff] }
 0x32d   :  { %6609 = vmatprep.subr.bf16.mxu0 %v6608_v20  ;;  %v3229_v20 = vld [vmem:[#allocation8 + $0x1968] sm:$0xff]  ;;  %v6470_v29 = vpack.c.bf16 %v2681_v38, %v2680_v61  ;;  %v2890_v61 = vld [vmem:[#allocation8 + $0x1620] sm:$0xff]  ;;  %v3450_v40 = vld [vmem:[#allocation8 + $0x1b50] sm:$0xff] }
 0x32e   :  { %6451 = vmatpush3.bf16.msra.mxu1 %v6450_v26  ;;  %v3246_v26 = vld [vmem:[#allocation8 + $0x19f0] sm:$0xff]  ;;  %v3461_v55 = vld [vmem:[#allocation8 + $0x1ba8] sm:$0xff]  ;;  %v2914_v46 = vld [vmem:[#allocation8 + $0x16e0] sm:$0xff] }
 0x32f   :  { %6611 = vmatpush3.bf16.msra.mxu0 %v6610_v27  ;;  %6453 = vmatprep.subr.bf16.mxu1 %v6452_v21  ;;  %v3247_v27 = vld [vmem:[#allocation8 + $0x19f8] sm:$0xff]  ;;  %v2891_v38 = vld [vmem:[#allocation8 + $0x1628] sm:$0xff] }
 0x330   :  { %6613 = vmatprep.subr.bf16.mxu0 %v6612_v32  ;;  %v6630_v32 = vpack.c.bf16 %v3229_v20, %v3228_v17  ;;  %v3444_v17 = vld [vmem:[#allocation8 + $0x1b20] sm:$0xff]  ;;  %v2908_v20 = vld [vmem:[#allocation8 + $0x16b0] sm:$0xff] }
 0x332   :  { %6455 = vmatpush3.bf16.msra.mxu1 %v6454_v49  ;;  %v6632_v49 = vpack.c.bf16 %v3247_v27, %v3246_v26  ;;  %v6520_v27 = vpack.c.bf16 %v2909_v23, %v2908_v20  ;;  %v2900_v20 = vld [vmem:[#allocation8 + $0x1670] sm:$0xff]  ;;  %v2901_v23 = vld [vmem:[#allocation8 + $0x1678] sm:$0xff] }
 0x333   :  { %6615 = vmatpush3.bf16.msra.mxu0 %v6614_v50  ;;  %6457 = vmatprep.subr.bf16.mxu1 %v6456_v58  ;;  %v3231_v50 = vld [vmem:[#allocation8 + $0x1978] sm:$0xff]  ;;  %v2902_v58 = vld [vmem:[#allocation8 + $0x1680] sm:$0xff] }
 0x334   :  { %6617 = vmatprep.subr.bf16.mxu0 %v6616_v62  ;;  %v6474_v62 = vpack.c.bf16 %v2683_v35, %v2682_v37  ;;  %v6634_v0 = vpack.c.bf16 %v3231_v50, %v3230_v36  ;;  %v6508_v1 = vpack.c.bf16 %v2903_v39, %v2902_v58  ;;  %v2910_v37 = vld [vmem:[#allocation8 + $0x16c0] sm:$0xff]  ;;  %v2911_v35 = vld [vmem:[#allocation8 + $0x16c8] sm:$0xff] }
 0x335   :  { %v3464_v36 = vld [vmem:[#allocation8 + $0x1bc0] sm:$0xff]  ;;  %v6524_v58 = vpack.c.bf16 %v2911_v35, %v2910_v37 }
 0x336   :  { %6459 = vmatpush3.bf16.msra.mxu1 %v6458_v4  ;;  %v6668_v4 = vpack.c.bf16 %v3457_v51, %v3456_v45  ;;  %v2894_v39 = vld [vmem:[#allocation8 + $0x1640] sm:$0xff]  ;;  %v2895_v45 = vld [vmem:[#allocation8 + $0x1648] sm:$0xff] }
 0x337   :  { %6619 = vmatpush3.bf16.msra.mxu0 %v6618_v31  ;;  %6461 = vmatprep.subr.bf16.mxu1 %v6460_v5  ;;  %v3440_v31 = vld [vmem:[#allocation8 + $0x1b00] sm:$0xff]  ;;  %v3441_v5 = vld [vmem:[#allocation8 + $0x1b08] sm:$0xff] }
 0x338   :  { %6621 = vmatprep.subr.bf16.mxu0 %v6620_v41  ;;  %v2665_v41 = vld [vmem:[#allocation2 + $0x50] sm:$0x3]  ;;  %v6670_v48 = vpack.c.bf16 %v3441_v5, %v3440_v31  ;;  %v3448_v51 = vld [vmem:[#allocation8 + $0x1b40] sm:$0xff] }
 0x33a   :  { %6463 = vmatpush3.bf16.msra.mxu1 %v6462_v8  ;;  %v2889_v8 = vld [vmem:[#allocation8 + $0x1618] sm:$0xff] }
 0x33b   :  { %6623 = vmatpush3.bf16.msra.mxu0 %v6622_v9  ;;  %6465 = vmatprep.subr.bf16.mxu1 %v6464_v10  ;;  %v3442_v9 = vld [vmem:[#allocation8 + $0x1b10] sm:$0xff] }
 0x33c   :  { %v4722_v18 = vpop.f32.mrb[8].mxu1  ;;  %6625 = vmatprep.subr.bf16.mxu0 %v6624_v53  ;;  %v2907_v53 = vld [vmem:[#allocation8 + $0x16a8] sm:$0xff] }
 0x33d   :  { %v4897_v24 = vpop.f32.mrb[26].mxu0  ;;  %v4723_v25 = vpop.f32.mrb[9].mxu1 }
 0x33e   :  { %v4724_v21 = vadd.f32 %v4723_v25, %v4722_v18  ;;  %v4898_v28 = vpop.f32.mrb[27].mxu0  ;;  %6467 = vmatpush3.bf16.msra.mxu1 %v6466_v56  ;;  %v6514_v56 = vpack.c.bf16 %v2889_v8, %v2888_v14  ;;  %v6676_v18 = vpack.c.bf16 %v3461_v55, %v3460_v13  ;;  %v6518_v25 = vpack.c.bf16 %v2891_v38, %v2890_v61  ;;  %v2917_v13 = vld [vmem:[#allocation8 + $0x16f8] sm:$0xff] }
 0x33f   :  { %v7390_v30 = vadd.f32 %v4898_v28, %v4897_v24  ;;  %6627 = vmatpush3.bf16.msra.mxu0 %v6626_v59  ;;  %6469 = vmatprep.subr.bf16.mxu1 %v6468_v60  ;;  %v6674_v59 = vpack.c.bf16 %v3443_v12, %v3442_v9  ;;  %v6516_v60 = vpack.c.bf16 %v2907_v53, %v2906_v52  ;;  %v3463_v24 = vld [vmem:[#allocation8 + $0x1bb8] sm:$0xff]  ;;  %v3452_v12 = vld [vmem:[#allocation8 + $0x1b60] sm:$0xff] }
 0x340   :  { %v1226_v43 = vadd.f32 %v4724_v21, %v7388_v42  ;;  %6629 = vmatprep.subr.bf16.mxu0 %v6628_v19  ;;  %v3213_v42 = vld [vmem:[#allocation2 + $0x60] sm:$0xc]  ;;  %v2893_v28 = vld [vmem:[#allocation8 + $0x1638] sm:$0xff]  ;;  %v6530_v14 = vpack.c.bf16 %v2897_v6, %v2896_v33 }
 0x341   :  { %v3250_v10 = vrot.slane %v3213_v42, 2  ;;  %v3445_v19 = vld [vmem:[#allocation8 + $0x1b28] sm:$0xff]  ;;  %v2892_v21 = vld [vmem:[#allocation8 + $0x1630] sm:$0xff]  ;;  %v3467_v42 = vld [vmem:[#allocation8 + $0x1bd8] sm:$0xff] }
 0x342   :  { %6471 = vmatpush3.bf16.msra.mxu1 %v6470_v29  ;;  %v7394_v63 = vadd.f32 %v7378_v7, %v1226_v43  ;;  %v3458_v7 = vld [vmem:[#allocation8 + $0x1b90] sm:$0xff]  ;;  %v6678_v26 = vpack.c.bf16 %v3445_v19, %v3444_v17  ;;  %v3465_v43 = vld [vmem:[#allocation8 + $0x1bc8] sm:$0xff]  ;;  %v3661_v6 = vld [vmem:[#allocation8 + $0x1d18] sm:$0xff] }
 0x343   :  { %6631 = vmatpush3.bf16.msra.mxu0 %v6630_v32  ;;  %6473 = vmatprep.subr.bf16.mxu1 %v6472_v34  ;;  %v6672_v15 = vpack.c.bf16 %v3459_v47, %v3458_v7  ;;  %v3446_v29 = vld [vmem:[#allocation8 + $0x1b30] sm:$0xff]  ;;  %v6680_v32 = vpack.c.bf16 %v3463_v24, %v3462_v22  ;;  %v3447_v34 = vld [vmem:[#allocation8 + $0x1b38] sm:$0xff]  ;;  %v2915_v7 = vld [vmem:[#allocation8 + $0x16e8] sm:$0xff] }
 0x344   :  { %6633 = vmatprep.subr.bf16.mxu0 %v6632_v49  ;;  %v6522_v49 = vpack.c.bf16 %v2893_v28, %v2892_v21  ;;  %v6682_v50 = vpack.c.bf16 %v3447_v34, %v3446_v29  ;;  %v3468_v47 = vld [vmem:[#allocation8 + $0x1be0] sm:$0xff]  ;;  %v6532_v9 = vpack.c.bf16 %v2915_v7, %v2914_v46  ;;  %v3454_v22 = vld [vmem:[#allocation8 + $0x1b70] sm:$0xff]  ;;  %v3127_v21 = vld [vmem:[#allocation8 + $0x1888] sm:$0xff] }
 0x345   :  { %v3674_v28 = vld [vmem:[#allocation8 + $0x1d80] sm:$0xff]  ;;  %v3675_v29 = vld [vmem:[#allocation8 + $0x1d88] sm:$0xff] }
 0x346   :  { %6475 = vmatpush3.bf16.msra.mxu1 %v6474_v62  ;;  %v6684_v62 = vpack.c.bf16 %v3465_v43, %v3464_v36  ;;  %v3110_v36 = vld [vmem:[#allocation8 + $0x1800] sm:$0xff]  ;;  %v3111_v43 = vld [vmem:[#allocation8 + $0x1808] sm:$0xff] }
 0x347   :  { %6635 = vmatpush3.bf16.msra.mxu0 %v6634_v0  ;;  %6509 = vmatprep.subr.bf16.mxu1 %v6508_v1  ;;  %v3449_v0 = vld [vmem:[#allocation8 + $0x1b48] sm:$0xff]  ;;  %v2912_v1 = vld [vmem:[#allocation8 + $0x16d0] sm:$0xff]  ;;  %v3678_v46 = vld [vmem:[#allocation8 + $0x1da0] sm:$0xff] }
 0x348   :  { %6669 = vmatprep.subr.bf16.mxu0 %v6668_v4  ;;  %v6526_v4 = vpack.c.bf16 %v2895_v45, %v2894_v39  ;;  %v6686_v31 = vpack.c.bf16 %v3449_v0, %v3448_v51  ;;  %v6528_v5 = vpack.c.bf16 %v2913_v2, %v2912_v1  ;;  %v3437_v39 = vld [vmem:[#allocation2 + $0x60] sm:$0xc0]  ;;  %v3129_v51 = vld [vmem:[#allocation8 + $0x1898] sm:$0xff]  ;;  %v3656_v0 = vld [vmem:[#allocation2 + $0x78] sm:$0xc] }
 0x349   :  { %2765 = vmatmul.mubr.f32.vlgmr.msra.gmra.mrb[22].mxu1 %v2665_v41  ;;  %v6688_v41 = vpack.c.bf16 %v3467_v42, %v3466_v3  ;;  %v3128_v45 = vld [vmem:[#allocation8 + $0x1890] sm:$0xff]  ;;  %v3679_v7 = vld [vmem:[#allocation8 + $0x1da8] sm:$0xff] }
 0x34a   :  { %3319 = vmatmul.mubr.f32.vlgmr.msra.gmra.mrb[40].mxu0 %v3250_v10  ;;  %6511 = vmatpush3.bf16.msra.mxu1 %v6510_v44  ;;  %v3451_v44 = vld [vmem:[#allocation8 + $0x1b58] sm:$0xff]  ;;  %v2898_v10 = vld [vmem:[#allocation8 + $0x1660] sm:$0xff]  ;;  %v3676_v1 = vld [vmem:[#allocation8 + $0x1d90] sm:$0xff]  ;;  %v6576_v33 = vpack.c.bf16 %v3129_v51, %v3128_v45 }
 0x34b   :  { %2988 = vmatprep.mubr.f32.mxu1 %v2921_v54  ;;  %6671 = vmatpush3.bf16.msra.mxu0 %v6670_v48  ;;  %v3469_v48 = vld [vmem:[#allocation8 + $0x1be8] sm:$0xff]  ;;  %v6690_v8 = vpack.c.bf16 %v3451_v44, %v3450_v40  ;;  %v3112_v42 = vld [vmem:[#allocation8 + $0x1810] sm:$0xff]  ;;  %v3130_v40 = vld [vmem:[#allocation8 + $0x18a0] sm:$0xff] }
 0x34c   :  { %3542 = vmatprep.mubr.f32.mxu0 %v3475_v16  ;;  %6513 = vmatprep.subr.bf16.mxu1 %v6512_v11  ;;  %v2899_v11 = vld [vmem:[#allocation8 + $0x1668] sm:$0xff]  ;;  %v6692_v53 = vpack.c.bf16 %v3469_v48, %v3468_v47  ;;  %v3108_v47 = vld [vmem:[#allocation2 + $0x68] sm:$0x3]  ;;  %v3693_v48 = vrot.slane %v3656_v0, 2  ;;  %v3121_v45 = vld [vmem:[#allocation8 + $0x1858] sm:$0xff] }
 0x34d   :  { %6673 = vmatprep.subr.bf16.mxu0 %v6672_v15  ;;  %v3453_v54 = vld [vmem:[#allocation8 + $0x1b68] sm:$0xff]  ;;  %v2916_v15 = vld [vmem:[#allocation8 + $0x16f0] sm:$0xff]  ;;  %v6534_v38 = vpack.c.bf16 %v2899_v11, %v2898_v10  ;;  %v3114_v10 = vld [vmem:[#allocation8 + $0x1820] sm:$0xff] }
 0x34e   :  { %6515 = vmatpush3.bf16.msra.mxu1 %v6514_v56  ;;  %v3470_v56 = vld [vmem:[#allocation8 + $0x1bf0] sm:$0xff]  ;;  %v6536_v19 = vpack.c.bf16 %v2917_v13, %v2916_v15  ;;  %v3115_v11 = vld [vmem:[#allocation8 + $0x1828] sm:$0xff]  ;;  %v3133_v15 = vld [vmem:[#allocation8 + $0x18b8] sm:$0xff] }
 0x34f   :  { %6675 = vmatpush3.bf16.msra.mxu0 %v6674_v59  ;;  %6517 = vmatprep.subr.bf16.mxu1 %v6516_v60  ;;  %v3471_v59 = vld [vmem:[#allocation8 + $0x1bf8] sm:$0xff]  ;;  %v3680_v13 = vld [vmem:[#allocation8 + $0x1db0] sm:$0xff] }
 0x350   :  { %6677 = vmatprep.subr.bf16.mxu0 %v6676_v18  ;;  %v6694_v18 = vpack.c.bf16 %v3453_v54, %v3452_v12  ;;  %v3662_v12 = vld [vmem:[#allocation8 + $0x1d20] sm:$0xff]  ;;  %v3132_v54 = vld [vmem:[#allocation8 + $0x18b0] sm:$0xff]  ;;  %v3669_v0 = vld [vmem:[#allocation8 + $0x1d58] sm:$0xff] }
 0x351   :  { %v3668_v51 = vld [vmem:[#allocation8 + $0x1d50] sm:$0xff] }
 0x352   :  { %6519 = vmatpush3.bf16.msra.mxu1 %v6518_v25  ;;  %v6696_v25 = vpack.c.bf16 %v3471_v59, %v3470_v56  ;;  %v6584_v59 = vpack.c.bf16 %v3133_v15, %v3132_v54  ;;  %v3124_v54 = vld [vmem:[#allocation8 + $0x1870] sm:$0xff]  ;;  %v3125_v15 = vld [vmem:[#allocation8 + $0x1878] sm:$0xff] }
 0x353   :  { %6679 = vmatpush3.bf16.msra.mxu0 %v6678_v26  ;;  %6521 = vmatprep.subr.bf16.mxu1 %v6520_v27  ;;  %v3455_v26 = vld [vmem:[#allocation8 + $0x1b78] sm:$0xff]  ;;  %v3126_v27 = vld [vmem:[#allocation8 + $0x1880] sm:$0xff] }
 0x354   :  { %6681 = vmatprep.subr.bf16.mxu0 %v6680_v32  ;;  %v6538_v32 = vpack.c.bf16 %v2901_v23, %v2900_v20  ;;  %v6698_v37 = vpack.c.bf16 %v3455_v26, %v3454_v22  ;;  %v6572_v35 = vpack.c.bf16 %v3127_v21, %v3126_v27  ;;  %v3134_v20 = vld [vmem:[#allocation8 + $0x18c0] sm:$0xff]  ;;  %v3135_v23 = vld [vmem:[#allocation8 + $0x18c8] sm:$0xff] }
 0x355   :  { %v3682_v22 = vld [vmem:[#allocation8 + $0x1dc0] sm:$0xff]  ;;  %v6588_v27 = vpack.c.bf16 %v3135_v23, %v3134_v20 }
 0x356   :  { %6523 = vmatpush3.bf16.msra.mxu1 %v6522_v49  ;;  %v6732_v49 = vpack.c.bf16 %v3675_v29, %v3674_v28  ;;  %v3118_v21 = vld [vmem:[#allocation8 + $0x1840] sm:$0xff]  ;;  %v3119_v28 = vld [vmem:[#allocation8 + $0x1848] sm:$0xff] }
 0x357   :  { %6683 = vmatpush3.bf16.msra.mxu0 %v6682_v50  ;;  %6525 = vmatprep.subr.bf16.mxu1 %v6524_v58  ;;  %v3658_v50 = vld [vmem:[#allocation8 + $0x1d00] sm:$0xff]  ;;  %v3659_v58 = vld [vmem:[#allocation8 + $0x1d08] sm:$0xff] }
 0x358   :  { %6685 = vmatprep.subr.bf16.mxu0 %v6684_v62  ;;  %v6574_v62 = vpack.c.bf16 %v3111_v43, %v3110_v36  ;;  %v6734_v3 = vpack.c.bf16 %v3659_v58, %v3658_v50  ;;  %v3666_v29 = vld [vmem:[#allocation8 + $0x1d40] sm:$0xff]  ;;  %v3137_v36 = vld [vmem:[#allocation8 + $0x18d8] sm:$0xff]  ;;  %v3684_v43 = vld [vmem:[#allocation8 + $0x1dd0] sm:$0xff] }
 0x35a   :  { %6527 = vmatpush3.bf16.msra.mxu1 %v6526_v4  ;;  %v3113_v4 = vld [vmem:[#allocation8 + $0x1818] sm:$0xff] }
 0x35b   :  { %6687 = vmatpush3.bf16.msra.mxu0 %v6686_v31  ;;  %6529 = vmatprep.subr.bf16.mxu1 %v6528_v5  ;;  %v3660_v31 = vld [vmem:[#allocation8 + $0x1d10] sm:$0xff]  ;;  %v3474_v5 = vrot.slane %v3437_v39, 6 }
 0x35c   :  { %v4792_v52 = vpop.f32.mrb[10].mxu1  ;;  %6689 = vmatprep.subr.bf16.mxu0 %v6688_v41  ;;  %v3131_v41 = vld [vmem:[#allocation8 + $0x18a8] sm:$0xff]  ;;  %v3120_v39 = vld [vmem:[#allocation8 + $0x1850] sm:$0xff] }
 0x35d   :  { %v4967_v55 = vpop.f32.mrb[28].mxu0  ;;  %v4793_v16 = vpop.f32.mrb[11].mxu1 }
 0x35e   :  { %v4794_v60 = vadd.f32 %v4793_v16, %v4792_v52  ;;  %v4968_v61 = vpop.f32.mrb[29].mxu0  ;;  %6531 = vmatpush3.bf16.msra.mxu1 %v6530_v14  ;;  %v6578_v14 = vpack.c.bf16 %v3113_v4, %v3112_v42  ;;  %v6740_v52 = vpack.c.bf16 %v3679_v7, %v3678_v46  ;;  %v6582_v16 = vpack.c.bf16 %v3115_v11, %v3114_v10  ;;  %v3140_v46 = vld [vmem:[#allocation8 + $0x18f0] sm:$0xff]  ;;  %v3141_v7 = vld [vmem:[#allocation8 + $0x18f8] sm:$0xff] }
 0x35f   :  { %v7396_v17 = vadd.f32 %v4968_v61, %v4967_v55  ;;  %6691 = vmatpush3.bf16.msra.mxu0 %v6690_v8  ;;  %6533 = vmatprep.subr.bf16.mxu1 %v6532_v9  ;;  %v6738_v8 = vpack.c.bf16 %v3661_v6, %v3660_v31  ;;  %v6580_v9 = vpack.c.bf16 %v3131_v41, %v3130_v40  ;;  %v3681_v55 = vld [vmem:[#allocation8 + $0x1db8] sm:$0xff]  ;;  %v3670_v6 = vld [vmem:[#allocation8 + $0x1d60] sm:$0xff] }
 0x360   :  { %v1444_v24 = vadd.f32 %v4794_v60, %v7394_v63  ;;  %6693 = vmatprep.subr.bf16.mxu0 %v6692_v53  ;;  %v2883_v63 = vld [vmem:[#allocation2 + $0x50] sm:$0x30]  ;;  %v3663_v53 = vld [vmem:[#allocation8 + $0x1d28] sm:$0xff]  ;;  %v3116_v60 = vld [vmem:[#allocation8 + $0x1830] sm:$0xff]  ;;  %v6594_v42 = vpack.c.bf16 %v3121_v45, %v3120_v39  ;;  %v6754_v4 = vpack.c.bf16 %v3669_v0, %v3668_v51 }
 0x361   :  { %v2920_v2 = vrot.slane %v2883_v63, 4  ;;  %v6742_v56 = vpack.c.bf16 %v3663_v53, %v3662_v12  ;;  %v3117_v61 = vld [vmem:[#allocation8 + $0x1838] sm:$0xff]  ;;  %v6600_v53 = vpack.c.bf16 %v3141_v7, %v3140_v46  ;;  %v3348_v51 = vld [vmem:[#allocation8 + $0x1aa0] sm:$0xff]  ;;  %v3904_v7 = vld [vmem:[#allocation8 + $0x1fb0] sm:$0xff] }
 0x362   :  { %6535 = vmatpush3.bf16.msra.mxu1 %v6534_v38  ;;  %v7400_v34 = vadd.f32 %v7384_v57, %v1444_v24  ;;  %v3677_v57 = vld [vmem:[#allocation8 + $0x1d98] sm:$0xff]  ;;  %v3664_v38 = vld [vmem:[#allocation8 + $0x1d30] sm:$0xff]  ;;  %v3683_v24 = vld [vmem:[#allocation8 + $0x1dc8] sm:$0xff] }
 0x363   :  { %6695 = vmatpush3.bf16.msra.mxu0 %v6694_v18  ;;  %6537 = vmatprep.subr.bf16.mxu1 %v6536_v19  ;;  %v6736_v44 = vpack.c.bf16 %v3677_v57, %v3676_v1  ;;  %v6744_v18 = vpack.c.bf16 %v3681_v55, %v3680_v13  ;;  %v3665_v19 = vld [vmem:[#allocation8 + $0x1d38] sm:$0xff]  ;;  %v3138_v1 = vld [vmem:[#allocation8 + $0x18e0] sm:$0xff]  ;;  %v3139_v57 = vld [vmem:[#allocation8 + $0x18e8] sm:$0xff] }
 0x364   :  { %6697 = vmatprep.subr.bf16.mxu0 %v6696_v25  ;;  %v6586_v25 = vpack.c.bf16 %v3117_v61, %v3116_v60  ;;  %v6746_v26 = vpack.c.bf16 %v3665_v19, %v3664_v38  ;;  %v3685_v63 = vld [vmem:[#allocation8 + $0x1dd8] sm:$0xff]  ;;  %v6596_v31 = vpack.c.bf16 %v3139_v57, %v3138_v1  ;;  %v3672_v13 = vld [vmem:[#allocation8 + $0x1d70] sm:$0xff]  ;;  %v3345_v60 = vld [vmem:[#allocation8 + $0x1a88] sm:$0xff] }
 0x365   :  { %v3898_v61 = vld [vmem:[#allocation8 + $0x1f80] sm:$0xff]  ;;  %v3899_v38 = vld [vmem:[#allocation8 + $0x1f88] sm:$0xff]  ;;  %v3885_v45 = vld [vmem:[#allocation8 + $0x1f18] sm:$0xff] }
 0x366   :  { %6539 = vmatpush3.bf16.msra.mxu1 %v6538_v32  ;;  %v6748_v32 = vpack.c.bf16 %v3683_v24, %v3682_v22  ;;  %v3328_v22 = vld [vmem:[#allocation8 + $0x1a00] sm:$0xff]  ;;  %v3329_v24 = vld [vmem:[#allocation8 + $0x1a08] sm:$0xff]  ;;  %v3351_v46 = vld [vmem:[#allocation8 + $0x1ab8] sm:$0xff] }
 0x367   :  { %6699 = vmatpush3.bf16.msra.mxu0 %v6698_v37  ;;  %6573 = vmatprep.subr.bf16.mxu1 %v6572_v35  ;;  %v3667_v37 = vld [vmem:[#allocation8 + $0x1d48] sm:$0xff]  ;;  %v3136_v35 = vld [vmem:[#allocation8 + $0x18d0] sm:$0xff]  ;;  %v3902_v57 = vld [vmem:[#allocation8 + $0x1fa0] sm:$0xff] }
 0x368   :  { %6733 = vmatprep.subr.bf16.mxu0 %v6732_v49  ;;  %v6590_v49 = vpack.c.bf16 %v3119_v28, %v3118_v21  ;;  %v6750_v50 = vpack.c.bf16 %v3667_v37, %v3666_v29  ;;  %v6592_v58 = vpack.c.bf16 %v3137_v36, %v3136_v35  ;;  %v3326_v21 = vld [vmem:[#allocation2 + $0x68] sm:$0x30]  ;;  %v3346_v28 = vld [vmem:[#allocation8 + $0x1a90] sm:$0xff]  ;;  %v6638_v37 = vpack.c.bf16 %v3329_v24, %v3328_v22  ;;  %v3880_v35 = vld [vmem:[#allocation2 + $0x78] sm:$0xc0] }
 0x369   :  { %2989 = vmatmul.mubr.f32.vlgmr.msra.gmra.mrb[24].mxu1 %v2920_v2  ;;  %v3686_v2 = vld [vmem:[#allocation8 + $0x1de0] sm:$0xff]  ;;  %v3347_v29 = vld [vmem:[#allocation8 + $0x1a98] sm:$0xff]  ;;  %v3363_v0 = vrot.slane %v3326_v21, 4  ;;  %v3908_v24 = vld [vmem:[#allocation8 + $0x1fd0] sm:$0xff] }
 0x36a   :  { %3543 = vmatmul.mubr.f32.vlgmr.msra.gmra.mrb[42].mxu0 %v3474_v5  ;;  %6575 = vmatpush3.bf16.msra.mxu1 %v6574_v62  ;;  %v6752_v62 = vpack.c.bf16 %v3685_v63, %v3684_v43  ;;  %v3122_v5 = vld [vmem:[#allocation8 + $0x1860] sm:$0xff]  ;;  %v3901_v36 = vld [vmem:[#allocation8 + $0x1f98] sm:$0xff]  ;;  %v3330_v63 = vld [vmem:[#allocation8 + $0x1a10] sm:$0xff]  ;;  %v6640_v39 = vpack.c.bf16 %v3347_v29, %v3346_v28 }
 0x36b   :  { %3206 = vmatprep.mubr.f32.mxu1 %v3108_v47  ;;  %6735 = vmatpush3.bf16.msra.mxu0 %v6734_v3  ;;  %v3687_v3 = vld [vmem:[#allocation8 + $0x1de8] sm:$0xff]  ;;  %v3355_v22 = vld [vmem:[#allocation8 + $0x1ad8] sm:$0xff]  ;;  %v3338_v21 = vld [vmem:[#allocation8 + $0x1a50] sm:$0xff] }
 0x36c   :  { %3760 = vmatprep.mubr.f32.mxu0 %v3693_v48  ;;  %6577 = vmatprep.subr.bf16.mxu1 %v6576_v33  ;;  %v3123_v33 = vld [vmem:[#allocation8 + $0x1868] sm:$0xff]  ;;  %v6756_v41 = vpack.c.bf16 %v3687_v3, %v3686_v2  ;;  %v3917_v3 = vrot.slane %v3880_v35, 6  ;;  %v3339_v28 = vld [vmem:[#allocation8 + $0x1a58] sm:$0xff]  ;;  %v3892_v29 = vld [vmem:[#allocation8 + $0x1f50] sm:$0xff] }
 0x36d   :  { %6737 = vmatprep.subr.bf16.mxu0 %v6736_v44  ;;  %v3671_v44 = vld [vmem:[#allocation8 + $0x1d68] sm:$0xff]  ;;  %v6598_v11 = vpack.c.bf16 %v3123_v33, %v3122_v5  ;;  %v3332_v5 = vld [vmem:[#allocation8 + $0x1a20] sm:$0xff] }
 0x36e   :  { %6579 = vmatpush3.bf16.msra.mxu1 %v6578_v14  ;;  %v3688_v14 = vld [vmem:[#allocation8 + $0x1df0] sm:$0xff]  ;;  %v3903_v2 = vld [vmem:[#allocation8 + $0x1fa8] sm:$0xff]  ;;  %v3356_v35 = vld [vmem:[#allocation8 + $0x1ae0] sm:$0xff] }
 0x36f   :  { %6739 = vmatpush3.bf16.msra.mxu0 %v6738_v8  ;;  %6581 = vmatprep.subr.bf16.mxu1 %v6580_v9  ;;  %v3689_v8 = vld [vmem:[#allocation8 + $0x1df8] sm:$0xff]  ;;  %v3333_v33 = vld [vmem:[#allocation8 + $0x1a28] sm:$0xff] }
 0x370   :  { %6741 = vmatprep.subr.bf16.mxu0 %v6740_v52  ;;  %v6758_v52 = vpack.c.bf16 %v3671_v44, %v3670_v6  ;;  %v3886_v6 = vld [vmem:[#allocation8 + $0x1f20] sm:$0xff]  ;;  %v3350_v44 = vld [vmem:[#allocation8 + $0x1ab0] sm:$0xff] }
 0x372   :  { %6583 = vmatpush3.bf16.msra.mxu1 %v6582_v16  ;;  %v6760_v16 = vpack.c.bf16 %v3689_v8, %v3688_v14  ;;  %v6648_v8 = vpack.c.bf16 %v3351_v46, %v3350_v44  ;;  %v3342_v44 = vld [vmem:[#allocation8 + $0x1a70] sm:$0xff]  ;;  %v3343_v46 = vld [vmem:[#allocation8 + $0x1a78] sm:$0xff] }
 0x373   :  { %6743 = vmatpush3.bf16.msra.mxu0 %v6742_v56  ;;  %6585 = vmatprep.subr.bf16.mxu1 %v6584_v59  ;;  %v3673_v56 = vld [vmem:[#allocation8 + $0x1d78] sm:$0xff]  ;;  %v3344_v59 = vld [vmem:[#allocation8 + $0x1a80] sm:$0xff] }
 0x374   :  { %6745 = vmatprep.subr.bf16.mxu0 %v6744_v18  ;;  %v6602_v18 = vpack.c.bf16 %v3125_v15, %v3124_v54  ;;  %v6762_v20 = vpack.c.bf16 %v3673_v56, %v3672_v13  ;;  %v6636_v23 = vpack.c.bf16 %v3345_v60, %v3344_v59  ;;  %v3352_v54 = vld [vmem:[#allocation8 + $0x1ac0] sm:$0xff]  ;;  %v3353_v15 = vld [vmem:[#allocation8 + $0x1ac8] sm:$0xff] }
 0x375   :  { %v3906_v13 = vld [vmem:[#allocation8 + $0x1fc0] sm:$0xff]  ;;  %v6652_v59 = vpack.c.bf16 %v3353_v15, %v3352_v54 }
 0x376   :  { %6587 = vmatpush3.bf16.msra.mxu1 %v6586_v25  ;;  %v6796_v25 = vpack.c.bf16 %v3899_v38, %v3898_v61  ;;  %v3336_v60 = vld [vmem:[#allocation8 + $0x1a40] sm:$0xff]  ;;  %v3337_v61 = vld [vmem:[#allocation8 + $0x1a48] sm:$0xff] }
 0x377   :  { %6747 = vmatpush3.bf16.msra.mxu0 %v6746_v26  ;;  %6589 = vmatprep.subr.bf16.mxu1 %v6588_v27  ;;  %v3882_v26 = vld [vmem:[#allocation8 + $0x1f00] sm:$0xff]  ;;  %v3883_v27 = vld [vmem:[#allocation8 + $0x1f08] sm:$0xff] }
 0x378   :  { %6749 = vmatprep.subr.bf16.mxu0 %v6748_v32  ;;  %v3107_v32 = vld [vmem:[#allocation2 + $0x60] sm:$0x3]  ;;  %v6798_v43 = vpack.c.bf16 %v3883_v27, %v3882_v26  ;;  %v3890_v38 = vld [vmem:[#allocation8 + $0x1f40] sm:$0xff] }
 0x37a   :  { %6591 = vmatpush3.bf16.msra.mxu1 %v6590_v49  ;;  %v3331_v49 = vld [vmem:[#allocation8 + $0x1a18] sm:$0xff] }
 0x37b   :  { %6751 = vmatpush3.bf16.msra.mxu0 %v6750_v50  ;;  %6593 = vmatprep.subr.bf16.mxu1 %v6592_v58  ;;  %v3884_v50 = vld [vmem:[#allocation8 + $0x1f10] sm:$0xff] }
 0x37c   :  { %v4862_v40 = vpop.f32.mrb[12].mxu1  ;;  %6753 = vmatprep.subr.bf16.mxu0 %v6752_v62  ;;  %v3349_v62 = vld [vmem:[#allocation8 + $0x1aa8] sm:$0xff] }
 0x37d   :  { %v5037_v47 = vpop.f32.mrb[30].mxu0  ;;  %v4863_v48 = vpop.f32.mrb[13].mxu1 }
 0x37e   :  { %v4864_v9 = vadd.f32 %v4863_v48, %v4862_v40  ;;  %v5038_v10 = vpop.f32.mrb[31].mxu0  ;;  %6595 = vmatpush3.bf16.msra.mxu1 %v6594_v42  ;;  %v6642_v42 = vpack.c.bf16 %v3331_v49, %v3330_v63  ;;  %v6804_v40 = vpack.c.bf16 %v3903_v2, %v3902_v57  ;;  %v6646_v48 = vpack.c.bf16 %v3333_v33, %v3332_v5  ;;  %v3359_v57 = vld [vmem:[#allocation8 + $0x1af8] sm:$0xff] }
 0x37f   :  { %v7402_v12 = vadd.f32 %v5038_v10, %v5037_v47  ;;  %6755 = vmatpush3.bf16.msra.mxu0 %v6754_v4  ;;  %6597 = vmatprep.subr.bf16.mxu1 %v6596_v31  ;;  %v6802_v4 = vpack.c.bf16 %v3885_v45, %v3884_v50  ;;  %v6644_v31 = vpack.c.bf16 %v3349_v62, %v3348_v51  ;;  %v3905_v47 = vld [vmem:[#allocation8 + $0x1fb8] sm:$0xff]  ;;  %v3894_v45 = vld [vmem:[#allocation8 + $0x1f60] sm:$0xff] }
 0x380   :  { %v1668_v55 = vadd.f32 %v4864_v9, %v7400_v34  ;;  %6757 = vmatprep.subr.bf16.mxu0 %v6756_v41  ;;  %v3655_v34 = vld [vmem:[#allocation2 + $0x70] sm:$0xc]  ;;  %v3887_v41 = vld [vmem:[#allocation8 + $0x1f28] sm:$0xff]  ;;  %v3334_v9 = vld [vmem:[#allocation8 + $0x1a30] sm:$0xff]  ;;  %v6658_v63 = vpack.c.bf16 %v3339_v28, %v3338_v21 }
 0x381   :  { %v3692_v58 = vrot.slane %v3655_v34, 2  ;;  %v6806_v14 = vpack.c.bf16 %v3887_v41, %v3886_v6  ;;  %v3335_v10 = vld [vmem:[#allocation8 + $0x1a38] sm:$0xff] }
 0x382   :  { %6599 = vmatpush3.bf16.msra.mxu1 %v6598_v11  ;;  %v7406_v19 = vadd.f32 %v7390_v30, %v1668_v55  ;;  %v3900_v30 = vld [vmem:[#allocation8 + $0x1f90] sm:$0xff]  ;;  %v3907_v55 = vld [vmem:[#allocation8 + $0x1fc8] sm:$0xff]  ;;  %v3909_v34 = vld [vmem:[#allocation8 + $0x1fd8] sm:$0xff] }
 0x383   :  { %6759 = vmatpush3.bf16.msra.mxu0 %v6758_v52  ;;  %6601 = vmatprep.subr.bf16.mxu1 %v6600_v53  ;;  %v6800_v1 = vpack.c.bf16 %v3901_v36, %v3900_v30  ;;  %v3888_v11 = vld [vmem:[#allocation8 + $0x1f30] sm:$0xff]  ;;  %v6808_v52 = vpack.c.bf16 %v3905_v47, %v3904_v7  ;;  %v3889_v53 = vld [vmem:[#allocation8 + $0x1f38] sm:$0xff]  ;;  %v3357_v30 = vld [vmem:[#allocation8 + $0x1ae8] sm:$0xff] }
 0x384   :  { %6761 = vmatprep.subr.bf16.mxu0 %v6760_v16  ;;  %v6650_v16 = vpack.c.bf16 %v3335_v10, %v3334_v9  ;;  %v6810_v56 = vpack.c.bf16 %v3889_v53, %v3888_v11  ;;  %v3910_v36 = vld [vmem:[#allocation8 + $0x1fe0] sm:$0xff]  ;;  %v6660_v50 = vpack.c.bf16 %v3357_v30, %v3356_v35  ;;  %v3896_v7 = vld [vmem:[#allocation8 + $0x1f70] sm:$0xff]  ;;  %v3569_v9 = vld [vmem:[#allocation8 + $0x1c88] sm:$0xff] }
 0x385   :  { %v4116_v10 = vld [vmem:[#allocation8 + $0x2180] sm:$0xff]  ;;  %v4117_v11 = vld [vmem:[#allocation8 + $0x2188] sm:$0xff]  ;;  %v4103_v28 = vld [vmem:[#allocation8 + $0x2118] sm:$0xff] }
 0x386   :  { %6603 = vmatpush3.bf16.msra.mxu1 %v6602_v18  ;;  %v6812_v18 = vpack.c.bf16 %v3907_v55, %v3906_v13  ;;  %v3552_v13 = vld [vmem:[#allocation8 + $0x1c00] sm:$0xff]  ;;  %v3553_v55 = vld [vmem:[#allocation8 + $0x1c08] sm:$0xff] }
 0x387   :  { %6763 = vmatpush3.bf16.msra.mxu0 %v6762_v20  ;;  %6637 = vmatprep.subr.bf16.mxu1 %v6636_v23  ;;  %v3891_v20 = vld [vmem:[#allocation8 + $0x1f48] sm:$0xff]  ;;  %v3354_v23 = vld [vmem:[#allocation8 + $0x1ad0] sm:$0xff]  ;;  %v4120_v35 = vld [vmem:[#allocation8 + $0x21a0] sm:$0xff] }
 0x388   :  { %6797 = vmatprep.subr.bf16.mxu0 %v6796_v25  ;;  %v6654_v25 = vpack.c.bf16 %v3337_v61, %v3336_v60  ;;  %v6814_v26 = vpack.c.bf16 %v3891_v20, %v3890_v38  ;;  %v6656_v27 = vpack.c.bf16 %v3355_v22, %v3354_v23  ;;  %v3879_v60 = vld [vmem:[#allocation2 + $0x70] sm:$0xc0]  ;;  %v3570_v61 = vld [vmem:[#allocation8 + $0x1c90] sm:$0xff]  ;;  %v3571_v38 = vld [vmem:[#allocation8 + $0x1c98] sm:$0xff] }
 0x389   :  { %3207 = vmatmul.mubr.f32.vlgmr.msra.gmra.mrb[26].mxu1 %v3107_v32  ;;  %v6816_v32 = vpack.c.bf16 %v3909_v34, %v3908_v24  ;;  %v4098_v20 = vld [vmem:[#allocation2 + $0x88] sm:$0xc]  ;;  %v6704_v21 = vpack.c.bf16 %v3571_v38, %v3570_v61  ;;  %v4121_v30 = vld [vmem:[#allocation8 + $0x21a8] sm:$0xff] }
 0x38a   :  { %3761 = vmatmul.mubr.f32.vlgmr.msra.gmra.mrb[44].mxu0 %v3692_v58  ;;  %6639 = vmatpush3.bf16.msra.mxu1 %v6638_v37  ;;  %v3893_v37 = vld [vmem:[#allocation8 + $0x1f58] sm:$0xff]  ;;  %v3340_v58 = vld [vmem:[#allocation8 + $0x1a60] sm:$0xff]  ;;  %v4118_v23 = vld [vmem:[#allocation8 + $0x2190] sm:$0xff] }
 0x38b   :  { %3430 = vmatprep.mubr.f32.mxu1 %v3363_v0  ;;  %6799 = vmatpush3.bf16.msra.mxu0 %v6798_v43  ;;  %v3911_v43 = vld [vmem:[#allocation8 + $0x1fe8] sm:$0xff]  ;;  %v6818_v49 = vpack.c.bf16 %v3893_v37, %v3892_v29  ;;  %v3554_v34 = vld [vmem:[#allocation8 + $0x1c10] sm:$0xff]  ;;  %v3572_v29 = vld [vmem:[#allocation8 + $0x1ca0] sm:$0xff] }
 0x38c   :  { %3984 = vmatprep.mubr.f32.mxu0 %v3917_v3  ;;  %6641 = vmatprep.subr.bf16.mxu1 %v6640_v39  ;;  %v3341_v39 = vld [vmem:[#allocation8 + $0x1a68] sm:$0xff]  ;;  %v6820_v62 = vpack.c.bf16 %v3911_v43, %v3910_v36  ;;  %v3550_v36 = vld [vmem:[#allocation2 + $0x78] sm:$0x3]  ;;  %v4135_v43 = vrot.slane %v4098_v20, 2  ;;  %v3563_v61 = vld [vmem:[#allocation8 + $0x1c58] sm:$0xff] }
 0x38d   :  { %6801 = vmatprep.subr.bf16.mxu0 %v6800_v1  ;;  %v3895_v0 = vld [vmem:[#allocation8 + $0x1f68] sm:$0xff]  ;;  %v3358_v1 = vld [vmem:[#allocation8 + $0x1af0] sm:$0xff]  ;;  %v6662_v33 = vpack.c.bf16 %v3341_v39, %v3340_v58  ;;  %v3556_v58 = vld [vmem:[#allocation8 + $0x1c20] sm:$0xff] }
 0x38e   :  { %6643 = vmatpush3.bf16.msra.mxu1 %v6642_v42  ;;  %v3912_v42 = vld [vmem:[#allocation8 + $0x1ff0] sm:$0xff]  ;;  %v6664_v41 = vpack.c.bf16 %v3359_v57, %v3358_v1  ;;  %v3557_v39 = vld [vmem:[#allocation8 + $0x1c28] sm:$0xff]  ;;  %v3575_v1 = vld [vmem:[#allocation8 + $0x1cb8] sm:$0xff] }
 0x38f   :  { %6803 = vmatpush3.bf16.msra.mxu0 %v6802_v4  ;;  %6645 = vmatprep.subr.bf16.mxu1 %v6644_v31  ;;  %v3913_v4 = vld [vmem:[#allocation8 + $0x1ff8] sm:$0xff]  ;;  %v4122_v57 = vld [vmem:[#allocation8 + $0x21b0] sm:$0xff] }
 0x390   :  { %6805 = vmatprep.subr.bf16.mxu0 %v6804_v40  ;;  %v6822_v40 = vpack.c.bf16 %v3895_v0, %v3894_v45  ;;  %v4104_v45 = vld [vmem:[#allocation8 + $0x2120] sm:$0xff]  ;;  %v3574_v0 = vld [vmem:[#allocation8 + $0x1cb0] sm:$0xff]  ;;  %v4111_v20 = vld [vmem:[#allocation8 + $0x2158] sm:$0xff] }
 0x391   :  { %v4110_v38 = vld [vmem:[#allocation8 + $0x2150] sm:$0xff] }
 0x392   :  { %6647 = vmatpush3.bf16.msra.mxu1 %v6646_v48  ;;  %v6824_v48 = vpack.c.bf16 %v3913_v4, %v3912_v42  ;;  %v6712_v4 = vpack.c.bf16 %v3575_v1, %v3574_v0  ;;  %v3566_v0 = vld [vmem:[#allocation8 + $0x1c70] sm:$0xff]  ;;  %v3567_v1 = vld [vmem:[#allocation8 + $0x1c78] sm:$0xff] }
 0x393   :  { %6807 = vmatpush3.bf16.msra.mxu0 %v6806_v14  ;;  %6649 = vmatprep.subr.bf16.mxu1 %v6648_v8  ;;  %v3897_v14 = vld [vmem:[#allocation8 + $0x1f78] sm:$0xff]  ;;  %v3568_v8 = vld [vmem:[#allocation8 + $0x1c80] sm:$0xff] }
 0x394   :  { %6809 = vmatprep.subr.bf16.mxu0 %v6808_v52  ;;  %v6666_v52 = vpack.c.bf16 %v3343_v46, %v3342_v44  ;;  %v6826_v54 = vpack.c.bf16 %v3897_v14, %v3896_v7  ;;  %v6700_v15 = vpack.c.bf16 %v3569_v9, %v3568_v8  ;;  %v3576_v44 = vld [vmem:[#allocation8 + $0x1cc0] sm:$0xff]  ;;  %v3577_v46 = vld [vmem:[#allocation8 + $0x1cc8] sm:$0xff] }
 0x395   :  { %v4124_v7 = vld [vmem:[#allocation8 + $0x21c0] sm:$0xff]  ;;  %v6716_v8 = vpack.c.bf16 %v3577_v46, %v3576_v44 }
 0x396   :  { %6651 = vmatpush3.bf16.msra.mxu1 %v6650_v16  ;;  %v6860_v16 = vpack.c.bf16 %v4117_v11, %v4116_v10  ;;  %v3560_v9 = vld [vmem:[#allocation8 + $0x1c40] sm:$0xff]  ;;  %v3561_v10 = vld [vmem:[#allocation8 + $0x1c48] sm:$0xff] }
 0x397   :  { %6811 = vmatpush3.bf16.msra.mxu0 %v6810_v56  ;;  %6653 = vmatprep.subr.bf16.mxu1 %v6652_v59  ;;  %v4100_v56 = vld [vmem:[#allocation8 + $0x2100] sm:$0xff]  ;;  %v4101_v59 = vld [vmem:[#allocation8 + $0x2108] sm:$0xff] }
 0x398   :  { %6813 = vmatprep.subr.bf16.mxu0 %v6812_v18  ;;  %v6702_v18 = vpack.c.bf16 %v3553_v55, %v3552_v13  ;;  %v6862_v24 = vpack.c.bf16 %v4101_v59, %v4100_v56  ;;  %v4108_v11 = vld [vmem:[#allocation8 + $0x2140] sm:$0xff]  ;;  %v3579_v13 = vld [vmem:[#allocation8 + $0x1cd8] sm:$0xff]  ;;  %v4126_v55 = vld [vmem:[#allocation8 + $0x21d0] sm:$0xff] }
 0x39a   :  { %6655 = vmatpush3.bf16.msra.mxu1 %v6654_v25  ;;  %v3555_v25 = vld [vmem:[#allocation8 + $0x1c18] sm:$0xff] }
 0x39b   :  { %6815 = vmatpush3.bf16.msra.mxu0 %v6814_v26  ;;  %6657 = vmatprep.subr.bf16.mxu1 %v6656_v27  ;;  %v4102_v26 = vld [vmem:[#allocation8 + $0x2110] sm:$0xff]  ;;  %v3916_v27 = vrot.slane %v3879_v60, 6 }
 0x39c   :  { %v4932_v51 = vpop.f32.mrb[14].mxu1  ;;  %6817 = vmatprep.subr.bf16.mxu0 %v6816_v32  ;;  %v3573_v32 = vld [vmem:[#allocation8 + $0x1ca8] sm:$0xff]  ;;  %v3562_v60 = vld [vmem:[#allocation8 + $0x1c50] sm:$0xff] }
 0x39d   :  { %v5107_v2 = vpop.f32.mrb[32].mxu0  ;;  %v4933_v3 = vpop.f32.mrb[15].mxu1 }
 0x39e   :  { %v4934_v31 = vadd.f32 %v4933_v3, %v4932_v51  ;;  %v5108_v5 = vpop.f32.mrb[33].mxu0  ;;  %6659 = vmatpush3.bf16.msra.mxu1 %v6658_v63  ;;  %v6706_v63 = vpack.c.bf16 %v3555_v25, %v3554_v34  ;;  %v6868_v51 = vpack.c.bf16 %v4121_v30, %v4120_v35  ;;  %v6710_v3 = vpack.c.bf16 %v3557_v39, %v3556_v58  ;;  %v3582_v35 = vld [vmem:[#allocation8 + $0x1cf0] sm:$0xff]  ;;  %v3583_v30 = vld [vmem:[#allocation8 + $0x1cf8] sm:$0xff] }
 0x39f   :  { %v7408_v6 = vadd.f32 %v5108_v5, %v5107_v2  ;;  %6819 = vmatpush3.bf16.msra.mxu0 %v6818_v49  ;;  %6661 = vmatprep.subr.bf16.mxu1 %v6660_v50  ;;  %v6866_v49 = vpack.c.bf16 %v4103_v28, %v4102_v26  ;;  %v6708_v50 = vpack.c.bf16 %v3573_v32, %v3572_v29  ;;  %v4123_v2 = vld [vmem:[#allocation8 + $0x21b8] sm:$0xff]  ;;  %v4112_v28 = vld [vmem:[#allocation8 + $0x2160] sm:$0xff] }
 0x3a0   :  { %v1886_v47 = vadd.f32 %v4934_v31, %v7406_v19  ;;  %6821 = vmatprep.subr.bf16.mxu0 %v6820_v62  ;;  %v3325_v19 = vld [vmem:[#allocation2 + $0x60] sm:$0x30]  ;;  %v4105_v62 = vld [vmem:[#allocation8 + $0x2128] sm:$0xff]  ;;  %v3559_v5 = vld [vmem:[#allocation8 + $0x1c38] sm:$0xff]  ;;  %v6722_v34 = vpack.c.bf16 %v3563_v61, %v3562_v60  ;;  %v6882_v25 = vpack.c.bf16 %v4111_v20, %v4110_v38 }
 0x3a1   :  { %v3362_v22 = vrot.slane %v3325_v19, 4  ;;  %v6870_v42 = vpack.c.bf16 %v4105_v62, %v4104_v45  ;;  %v3558_v31 = vld [vmem:[#allocation8 + $0x1c30] sm:$0xff]  ;;  %v4127_v19 = vld [vmem:[#allocation8 + $0x21d8] sm:$0xff]  ;;  %v6728_v62 = vpack.c.bf16 %v3583_v30, %v3582_v35  ;;  %v3790_v38 = vld [vmem:[#allocation8 + $0x1ea0] sm:$0xff] }
 0x3a2   :  { %6663 = vmatpush3.bf16.msra.mxu1 %v6662_v33  ;;  %v7412_v53 = vadd.f32 %v7396_v17, %v1886_v47  ;;  %v4119_v17 = vld [vmem:[#allocation8 + $0x2198] sm:$0xff]  ;;  %v4106_v33 = vld [vmem:[#allocation8 + $0x2130] sm:$0xff]  ;;  %v4125_v47 = vld [vmem:[#allocation8 + $0x21c8] sm:$0xff] }
 0x3a3   :  { %6823 = vmatpush3.bf16.msra.mxu0 %v6822_v40  ;;  %6665 = vmatprep.subr.bf16.mxu1 %v6664_v41  ;;  %v6864_v37 = vpack.c.bf16 %v4119_v17, %v4118_v23  ;;  %v6872_v40 = vpack.c.bf16 %v4123_v2, %v4122_v57  ;;  %v4107_v41 = vld [vmem:[#allocation8 + $0x2138] sm:$0xff]  ;;  %v3580_v23 = vld [vmem:[#allocation8 + $0x1ce0] sm:$0xff]  ;;  %v3581_v17 = vld [vmem:[#allocation8 + $0x1ce8] sm:$0xff] }
 0x3a4   :  { %6825 = vmatprep.subr.bf16.mxu0 %v6824_v48  ;;  %v6714_v48 = vpack.c.bf16 %v3559_v5, %v3558_v31  ;;  %v6874_v14 = vpack.c.bf16 %v4107_v41, %v4106_v33  ;;  %v6724_v26 = vpack.c.bf16 %v3581_v17, %v3580_v23  ;;  %v4114_v57 = vld [vmem:[#allocation8 + $0x2170] sm:$0xff]  ;;  %v3787_v31 = vld [vmem:[#allocation8 + $0x1e88] sm:$0xff]  ;;  %v4340_v5 = vld [vmem:[#allocation8 + $0x2380] sm:$0xff] }
 0x3a5   :  { %v4341_v33 = vld [vmem:[#allocation8 + $0x2388] sm:$0xff]  ;;  %v4327_v61 = vld [vmem:[#allocation8 + $0x2318] sm:$0xff]  ;;  %v4344_v17 = vld [vmem:[#allocation8 + $0x23a0] sm:$0xff] }
 0x3a6   :  { %6667 = vmatpush3.bf16.msra.mxu1 %v6666_v52  ;;  %v6876_v52 = vpack.c.bf16 %v4125_v47, %v4124_v7  ;;  %v3770_v7 = vld [vmem:[#allocation8 + $0x1e00] sm:$0xff]  ;;  %v3771_v47 = vld [vmem:[#allocation8 + $0x1e08] sm:$0xff]  ;;  %v3793_v35 = vld [vmem:[#allocation8 + $0x1eb8] sm:$0xff] }
 0x3a7   :  { %6827 = vmatpush3.bf16.msra.mxu0 %v6826_v54  ;;  %6701 = vmatprep.subr.bf16.mxu1 %v6700_v15  ;;  %v4109_v54 = vld [vmem:[#allocation8 + $0x2148] sm:$0xff]  ;;  %v3578_v15 = vld [vmem:[#allocation8 + $0x1cd0] sm:$0xff] }
 0x3a8   :  { %6861 = vmatprep.subr.bf16.mxu0 %v6860_v16  ;;  %v6718_v16 = vpack.c.bf16 %v3561_v10, %v3560_v9  ;;  %v6878_v56 = vpack.c.bf16 %v4109_v54, %v4108_v11  ;;  %v6720_v59 = vpack.c.bf16 %v3579_v13, %v3578_v15  ;;  %v3768_v9 = vld [vmem:[#allocation2 + $0x78] sm:$0x30]  ;;  %v3788_v10 = vld [vmem:[#allocation8 + $0x1e90] sm:$0xff]  ;;  %v3789_v11 = vld [vmem:[#allocation8 + $0x1e98] sm:$0xff]  ;;  %v6766_v54 = vpack.c.bf16 %v3771_v47, %v3770_v7 }
 0x3a9   :  { %3431 = vmatmul.mubr.f32.vlgmr.msra.gmra.mrb[28].mxu1 %v3362_v22  ;;  %v4128_v22 = vld [vmem:[#allocation8 + $0x21e0] sm:$0xff]  ;;  %v4322_v15 = vld [vmem:[#allocation2 + $0x88] sm:$0xc0]  ;;  %v6768_v60 = vpack.c.bf16 %v3789_v11, %v3788_v10  ;;  %v3805_v20 = vrot.slane %v3768_v9, 4  ;;  %v4346_v30 = vld [vmem:[#allocation8 + $0x23b0] sm:$0xff] }
 0x3aa   :  { %3985 = vmatmul.mubr.f32.vlgmr.msra.gmra.mrb[46].mxu0 %v3916_v27  ;;  %6703 = vmatpush3.bf16.msra.mxu1 %v6702_v18  ;;  %v6880_v18 = vpack.c.bf16 %v4127_v19, %v4126_v55  ;;  %v3564_v27 = vld [vmem:[#allocation8 + $0x1c60] sm:$0xff]  ;;  %v4343_v13 = vld [vmem:[#allocation8 + $0x2398] sm:$0xff]  ;;  %v3772_v19 = vld [vmem:[#allocation8 + $0x1e10] sm:$0xff] }
 0x3ab   :  { %3648 = vmatprep.mubr.f32.mxu1 %v3550_v36  ;;  %6863 = vmatpush3.bf16.msra.mxu0 %v6862_v24  ;;  %v4129_v24 = vld [vmem:[#allocation8 + $0x21e8] sm:$0xff]  ;;  %v3797_v7 = vld [vmem:[#allocation8 + $0x1ed8] sm:$0xff]  ;;  %v4350_v47 = vld [vmem:[#allocation8 + $0x23d0] sm:$0xff] }
 0x3ac   :  { %4202 = vmatprep.mubr.f32.mxu0 %v4135_v43  ;;  %6705 = vmatprep.subr.bf16.mxu1 %v6704_v21  ;;  %v3565_v21 = vld [vmem:[#allocation8 + $0x1c68] sm:$0xff]  ;;  %v6884_v32 = vpack.c.bf16 %v4129_v24, %v4128_v22  ;;  %v4359_v24 = vrot.slane %v4322_v15, 6  ;;  %v3780_v9 = vld [vmem:[#allocation8 + $0x1e50] sm:$0xff]  ;;  %v3781_v10 = vld [vmem:[#allocation8 + $0x1e58] sm:$0xff] }
 0x3ad   :  { %6865 = vmatprep.subr.bf16.mxu0 %v6864_v37  ;;  %v4113_v37 = vld [vmem:[#allocation8 + $0x2168] sm:$0xff]  ;;  %v6726_v39 = vpack.c.bf16 %v3565_v21, %v3564_v27  ;;  %v3774_v27 = vld [vmem:[#allocation8 + $0x1e20] sm:$0xff]  ;;  %v4334_v11 = vld [vmem:[#allocation8 + $0x2350] sm:$0xff] }
 0x3ae   :  { %6707 = vmatpush3.bf16.msra.mxu1 %v6706_v63  ;;  %v4130_v63 = vld [vmem:[#allocation8 + $0x21f0] sm:$0xff]  ;;  %v4345_v22 = vld [vmem:[#allocation8 + $0x23a8] sm:$0xff]  ;;  %v3798_v15 = vld [vmem:[#allocation8 + $0x1ee0] sm:$0xff] }
 0x3af   :  { %6867 = vmatpush3.bf16.msra.mxu0 %v6866_v49  ;;  %6709 = vmatprep.subr.bf16.mxu1 %v6708_v50  ;;  %v4131_v49 = vld [vmem:[#allocation8 + $0x21f8] sm:$0xff]  ;;  %v3775_v21 = vld [vmem:[#allocation8 + $0x1e28] sm:$0xff] }
 0x3b0   :  { %6869 = vmatprep.subr.bf16.mxu0 %v6868_v51  ;;  %v6886_v51 = vpack.c.bf16 %v4113_v37, %v4112_v28  ;;  %v4328_v28 = vld [vmem:[#allocation8 + $0x2320] sm:$0xff]  ;;  %v3792_v37 = vld [vmem:[#allocation8 + $0x1eb0] sm:$0xff] }
 0x3b2   :  { %6711 = vmatpush3.bf16.msra.mxu1 %v6710_v3  ;;  %v6888_v3 = vpack.c.bf16 %v4131_v49, %v4130_v63  ;;  %v6776_v49 = vpack.c.bf16 %v3793_v35, %v3792_v37  ;;  %v3784_v37 = vld [vmem:[#allocation8 + $0x1e70] sm:$0xff]  ;;  %v3785_v35 = vld [vmem:[#allocation8 + $0x1e78] sm:$0xff] }
 0x3b3   :  { %6871 = vmatpush3.bf16.msra.mxu0 %v6870_v42  ;;  %6713 = vmatprep.subr.bf16.mxu1 %v6712_v4  ;;  %v4115_v42 = vld [vmem:[#allocation8 + $0x2178] sm:$0xff]  ;;  %v3786_v4 = vld [vmem:[#allocation8 + $0x1e80] sm:$0xff] }
 0x3b4   :  { %6873 = vmatprep.subr.bf16.mxu0 %v6872_v40  ;;  %v6730_v40 = vpack.c.bf16 %v3567_v1, %v3566_v0  ;;  %v6890_v44 = vpack.c.bf16 %v4115_v42, %v4114_v57  ;;  %v6764_v46 = vpack.c.bf16 %v3787_v31, %v3786_v4  ;;  %v3794_v0 = vld [vmem:[#allocation8 + $0x1ec0] sm:$0xff]  ;;  %v3795_v1 = vld [vmem:[#allocation8 + $0x1ec8] sm:$0xff] }
 0x3b5   :  { %v4348_v57 = vld [vmem:[#allocation8 + $0x23c0] sm:$0xff]  ;;  %v6780_v4 = vpack.c.bf16 %v3795_v1, %v3794_v0  ;;  %v3995_v1 = vld [vmem:[#allocation8 + $0x2008] sm:$0xff] }
 0x3b6   :  { %6715 = vmatpush3.bf16.msra.mxu1 %v6714_v48  ;;  %v6924_v48 = vpack.c.bf16 %v4341_v33, %v4340_v5  ;;  %v3778_v31 = vld [vmem:[#allocation8 + $0x1e40] sm:$0xff]  ;;  %v3779_v5 = vld [vmem:[#allocation8 + $0x1e48] sm:$0xff] }
 0x3b7   :  { %6875 = vmatpush3.bf16.msra.mxu0 %v6874_v14  ;;  %6717 = vmatprep.subr.bf16.mxu1 %v6716_v8  ;;  %v4324_v14 = vld [vmem:[#allocation8 + $0x2300] sm:$0xff]  ;;  %v4325_v8 = vld [vmem:[#allocation8 + $0x2308] sm:$0xff] }
 0x3b8   :  { %6877 = vmatprep.subr.bf16.mxu0 %v6876_v52  ;;  %v3549_v52 = vld [vmem:[#allocation2 + $0x70] sm:$0x3]  ;;  %v6926_v55 = vpack.c.bf16 %v4325_v8, %v4324_v14  ;;  %v4332_v33 = vld [vmem:[#allocation8 + $0x2340] sm:$0xff] }
 0x3b9   :  { %v3994_v0 = vld [vmem:[#allocation8 + $0x2000] sm:$0xff] }
 0x3ba   :  { %6719 = vmatpush3.bf16.msra.mxu1 %v6718_v16  ;;  %v3773_v16 = vld [vmem:[#allocation8 + $0x1e18] sm:$0xff] }
 0x3bb   :  { %6879 = vmatpush3.bf16.msra.mxu0 %v6878_v56  ;;  %6721 = vmatprep.subr.bf16.mxu1 %v6720_v59  ;;  %v4326_v56 = vld [vmem:[#allocation8 + $0x2310] sm:$0xff] }
 0x3bc   :  { %v5002_v29 = vpop.f32.mrb[16].mxu1  ;;  %6881 = vmatprep.subr.bf16.mxu0 %v6880_v18  ;;  %v3791_v18 = vld [vmem:[#allocation8 + $0x1ea8] sm:$0xff] }
 0x3bd   :  { %v5177_v36 = vpop.f32.mrb[34].mxu0  ;;  %v5003_v43 = vpop.f32.mrb[17].mxu1 }
 0x3be   :  { %v5004_v50 = vadd.f32 %v5003_v43, %v5002_v29  ;;  %v5178_v58 = vpop.f32.mrb[35].mxu0  ;;  %6723 = vmatpush3.bf16.msra.mxu1 %v6722_v34  ;;  %v6770_v34 = vpack.c.bf16 %v3773_v16, %v3772_v19  ;;  %v6932_v29 = vpack.c.bf16 %v4345_v22, %v4344_v17  ;;  %v6774_v43 = vpack.c.bf16 %v3775_v21, %v3774_v27  ;;  %v3801_v17 = vld [vmem:[#allocation8 + $0x1ef8] sm:$0xff] }
 0x3bf   :  { %v7414_v45 = vadd.f32 %v5178_v58, %v5177_v36  ;;  %6883 = vmatpush3.bf16.msra.mxu0 %v6882_v25  ;;  %6725 = vmatprep.subr.bf16.mxu1 %v6724_v26  ;;  %v6930_v25 = vpack.c.bf16 %v4327_v61, %v4326_v56  ;;  %v6772_v26 = vpack.c.bf16 %v3791_v18, %v3790_v38  ;;  %v4347_v36 = vld [vmem:[#allocation8 + $0x23b8] sm:$0xff]  ;;  %v4336_v61 = vld [vmem:[#allocation8 + $0x2360] sm:$0xff] }
 0x3c0   :  { %v2110_v2 = vadd.f32 %v5004_v50, %v7412_v53  ;;  %6885 = vmatprep.subr.bf16.mxu0 %v6884_v32  ;;  %v4097_v53 = vld [vmem:[#allocation2 + $0x80] sm:$0xc]  ;;  %v3777_v58 = vld [vmem:[#allocation8 + $0x1e38] sm:$0xff]  ;;  %v6786_v19 = vpack.c.bf16 %v3781_v10, %v3780_v9 }
 0x3c1   :  { %v4134_v59 = vrot.slane %v4097_v53, 2  ;;  %v4329_v32 = vld [vmem:[#allocation8 + $0x2328] sm:$0xff]  ;;  %v3776_v50 = vld [vmem:[#allocation8 + $0x1e30] sm:$0xff]  ;;  %v4351_v53 = vld [vmem:[#allocation8 + $0x23d8] sm:$0xff] }
 0x3c2   :  { %6727 = vmatpush3.bf16.msra.mxu1 %v6726_v39  ;;  %v7418_v41 = vadd.f32 %v7402_v12, %v2110_v2  ;;  %v4342_v12 = vld [vmem:[#allocation8 + $0x2390] sm:$0xff]  ;;  %v6934_v63 = vpack.c.bf16 %v4329_v32, %v4328_v28  ;;  %v4349_v2 = vld [vmem:[#allocation8 + $0x23c8] sm:$0xff] }
 0x3c3   :  { %6887 = vmatpush3.bf16.msra.mxu0 %v6886_v51  ;;  %6729 = vmatprep.subr.bf16.mxu1 %v6728_v62  ;;  %v6928_v23 = vpack.c.bf16 %v4343_v13, %v4342_v12  ;;  %v4330_v39 = vld [vmem:[#allocation8 + $0x2330] sm:$0xff]  ;;  %v6936_v51 = vpack.c.bf16 %v4347_v36, %v4346_v30  ;;  %v4331_v62 = vld [vmem:[#allocation8 + $0x2338] sm:$0xff]  ;;  %v3799_v12 = vld [vmem:[#allocation8 + $0x1ee8] sm:$0xff] }
 0x3c4   :  { %6889 = vmatprep.subr.bf16.mxu0 %v6888_v3  ;;  %v6778_v3 = vpack.c.bf16 %v3777_v58, %v3776_v50  ;;  %v6938_v42 = vpack.c.bf16 %v4331_v62, %v4330_v39  ;;  %v4352_v13 = vld [vmem:[#allocation8 + $0x23e0] sm:$0xff]  ;;  %v6788_v56 = vpack.c.bf16 %v3799_v12, %v3798_v15  ;;  %v4338_v30 = vld [vmem:[#allocation8 + $0x2370] sm:$0xff]  ;;  %v4011_v50 = vld [vmem:[#allocation8 + $0x2088] sm:$0xff]  ;;  %v6794_v58 = vpack.c.bf16 %v3785_v35, %v3784_v37 }
 0x3c5   :  { %v4019_v15 = vld [vmem:[#allocation8 + $0x20c8] sm:$0xff] }
 0x3c6   :  { %6731 = vmatpush3.bf16.msra.mxu1 %v6730_v40  ;;  %v6940_v40 = vpack.c.bf16 %v4349_v2, %v4348_v57  ;;  %v3767_v57 = vld [vmem:[#allocation2 + $0x70] sm:$0x30]  ;;  %v4012_v2 = vld [vmem:[#allocation8 + $0x2090] sm:$0xff] }
 0x3c7   :  { %6891 = vmatpush3.bf16.msra.mxu0 %v6890_v44  ;;  %6765 = vmatprep.subr.bf16.mxu1 %v6764_v46  ;;  %v4333_v44 = vld [vmem:[#allocation8 + $0x2348] sm:$0xff]  ;;  %v3796_v46 = vld [vmem:[#allocation8 + $0x1ed0] sm:$0xff] }
 0x3c8   :  { %6925 = vmatprep.subr.bf16.mxu0 %v6924_v48  ;;  %v6782_v48 = vpack.c.bf16 %v3779_v5, %v3778_v31  ;;  %v6942_v14 = vpack.c.bf16 %v4333_v44, %v4332_v33  ;;  %v6784_v8 = vpack.c.bf16 %v3797_v7, %v3796_v46  ;;  %v3996_v5 = vld [vmem:[#allocation8 + $0x2010] sm:$0xff]  ;;  %v4015_v44 = vld [vmem:[#allocation8 + $0x20a8] sm:$0xff] }
 0x3c9   :  { %3649 = vmatmul.mubr.f32.vlgmr.msra.gmra.mrb[30].mxu1 %v3549_v52  ;;  %v6944_v52 = vpack.c.bf16 %v4351_v53, %v4350_v47  ;;  %v3992_v46 = vld [vmem:[#allocation2 + $0x88] sm:$0x3]  ;;  %v3998_v53 = vld [vmem:[#allocation8 + $0x2020] sm:$0xff] }
 0x3ca   :  { %4203 = vmatmul.mubr.f32.vlgmr.msra.gmra.mrb[48].mxu0 %v4134_v59  ;;  %6767 = vmatpush3.bf16.msra.mxu1 %v6766_v54  ;;  %v4335_v54 = vld [vmem:[#allocation8 + $0x2358] sm:$0xff]  ;;  %v3782_v59 = vld [vmem:[#allocation8 + $0x1e60] sm:$0xff] }
 0x3cb   :  { %3872 = vmatprep.mubr.f32.mxu1 %v3805_v20  ;;  %6927 = vmatpush3.bf16.msra.mxu0 %v6926_v55  ;;  %v4353_v55 = vld [vmem:[#allocation8 + $0x23e8] sm:$0xff]  ;;  %v6946_v16 = vpack.c.bf16 %v4335_v54, %v4334_v11  ;;  %v4000_v11 = vld [vmem:[#allocation8 + $0x2030] sm:$0xff]  ;;  %v4018_v54 = vld [vmem:[#allocation8 + $0x20c0] sm:$0xff] }
 0x3cc   :  { %4426 = vmatprep.mubr.f32.mxu0 %v4359_v24  ;;  %6769 = vmatprep.subr.bf16.mxu1 %v6768_v60  ;;  %v3783_v60 = vld [vmem:[#allocation8 + $0x1e68] sm:$0xff]  ;;  %v6948_v18 = vpack.c.bf16 %v4353_v55, %v4352_v13  ;;  %v6844_v13 = vpack.c.bf16 %v4019_v15, %v4018_v54  ;;  %v4002_v55 = vld [vmem:[#allocation8 + $0x2040] sm:$0xff] }
 0x3cd   :  { %6929 = vmatprep.subr.bf16.mxu0 %v6928_v23  ;;  %v4337_v20 = vld [vmem:[#allocation8 + $0x2368] sm:$0xff]  ;;  %v3800_v23 = vld [vmem:[#allocation8 + $0x1ef0] sm:$0xff]  ;;  %v6790_v21 = vpack.c.bf16 %v3783_v60, %v3782_v59  ;;  %v4220_v54 = vld [vmem:[#allocation8 + $0x2240] sm:$0xff] }
 0x3ce   :  { %6771 = vmatpush3.bf16.msra.mxu1 %v6770_v34  ;;  %v4354_v34 = vld [vmem:[#allocation8 + $0x23f0] sm:$0xff]  ;;  %v6792_v32 = vpack.c.bf16 %v3801_v17, %v3800_v23  ;;  %v4221_v15 = vld [vmem:[#allocation8 + $0x2248] sm:$0xff] }
 0x3cf   :  { %6931 = vmatpush3.bf16.msra.mxu0 %v6930_v25  ;;  %6773 = vmatprep.subr.bf16.mxu1 %v6772_v26  ;;  %v4355_v25 = vld [vmem:[#allocation8 + $0x23f8] sm:$0xff] }
 0x3d0   :  { %6933 = vmatprep.subr.bf16.mxu0 %v6932_v29  ;;  %v6950_v29 = vpack.c.bf16 %v4337_v20, %v4336_v61  ;;  %v4004_v61 = vld [vmem:[#allocation8 + $0x2050] sm:$0xff]  ;;  %v4023_v20 = vld [vmem:[#allocation8 + $0x20e8] sm:$0xff] }
 0x3d2   :  { %6775 = vmatpush3.bf16.msra.mxu1 %v6774_v43  ;;  %v6952_v43 = vpack.c.bf16 %v4355_v25, %v4354_v34  ;;  %v4024_v25 = vld [vmem:[#allocation8 + $0x20f0] sm:$0xff] }
 0x3d3   :  { %6935 = vmatpush3.bf16.msra.mxu0 %v6934_v63  ;;  %6777 = vmatprep.subr.bf16.mxu1 %v6776_v49  ;;  %v4339_v63 = vld [vmem:[#allocation8 + $0x2378] sm:$0xff]  ;;  %v4010_v49 = vld [vmem:[#allocation8 + $0x2080] sm:$0xff] }
 0x3d4   :  { %6937 = vmatprep.subr.bf16.mxu0 %v6936_v51  ;;  %v6954_v51 = vpack.c.bf16 %v4339_v63, %v4338_v30  ;;  %v6828_v62 = vpack.c.bf16 %v4011_v50, %v4010_v49  ;;  %v4228_v49 = vld [vmem:[#allocation8 + $0x2280] sm:$0xff]  ;;  %v4229_v50 = vld [vmem:[#allocation8 + $0x2288] sm:$0xff] }
 0x3d6   :  { %6779 = vmatpush3.bf16.msra.mxu1 %v6778_v3  ;;  %v4321_v3 = vld [vmem:[#allocation2 + $0x80] sm:$0xc0] }
 0x3d7   :  { %6939 = vmatpush3.bf16.msra.mxu0 %v6938_v42  ;;  %6781 = vmatprep.subr.bf16.mxu1 %v6780_v4  ;;  %v6830_v42 = vpack.c.bf16 %v3995_v1, %v3994_v0  ;;  %v3804_v4 = vrot.slane %v3767_v57, 4  ;;  %v4358_v33 = vrot.slane %v4321_v3, 6  ;;  %v4212_v0 = vld [vmem:[#allocation8 + $0x2200] sm:$0xff]  ;;  %v4213_v1 = vld [vmem:[#allocation8 + $0x2208] sm:$0xff]  ;;  %v4230_v57 = vld [vmem:[#allocation8 + $0x2290] sm:$0xff] }
 0x3d8   :  { %6941 = vmatprep.subr.bf16.mxu0 %v6940_v40  ;;  %v4014_v40 = vld [vmem:[#allocation8 + $0x20a0] sm:$0xff]  ;;  %v6894_v3 = vpack.c.bf16 %v4213_v1, %v4212_v0 }
 0x3d9   :  { %v6836_v47 = vpack.c.bf16 %v4015_v44, %v4014_v40  ;;  %v4216_v44 = vld [vmem:[#allocation8 + $0x2220] sm:$0xff] }
 0x3da   :  { %6783 = vmatpush3.bf16.msra.mxu1 %v6782_v48  ;;  %v3999_v48 = vld [vmem:[#allocation8 + $0x2028] sm:$0xff] }
 0x3db   :  { %6943 = vmatpush3.bf16.msra.mxu0 %v6942_v14  ;;  %6785 = vmatprep.subr.bf16.mxu1 %v6784_v8  ;;  %v4016_v14 = vld [vmem:[#allocation8 + $0x20b0] sm:$0xff]  ;;  %v4017_v8 = vld [vmem:[#allocation8 + $0x20b8] sm:$0xff]  ;;  %v6838_v9 = vpack.c.bf16 %v3999_v48, %v3998_v53 }
 0x3dc   :  { %v5072_v38 = vpop.f32.mrb[18].mxu1  ;;  %6945 = vmatprep.subr.bf16.mxu0 %v6944_v52  ;;  %v6840_v10 = vpack.c.bf16 %v4017_v8, %v4016_v14  ;;  %v4001_v52 = vld [vmem:[#allocation8 + $0x2038] sm:$0xff]  ;;  %v4218_v14 = vld [vmem:[#allocation8 + $0x2230] sm:$0xff] }
 0x3dd   :  { %v5247_v22 = vpop.f32.mrb[36].mxu0  ;;  %v5073_v24 = vpop.f32.mrb[19].mxu1  ;;  %v6842_v12 = vpack.c.bf16 %v4001_v52, %v4000_v11  ;;  %v4219_v8 = vld [vmem:[#allocation8 + $0x2238] sm:$0xff] }
 0x3de   :  { %v5074_v26 = vadd.f32 %v5073_v24, %v5072_v38  ;;  %v5248_v27 = vpop.f32.mrb[37].mxu0  ;;  %6787 = vmatpush3.bf16.msra.mxu1 %v6786_v19  ;;  %v4003_v19 = vld [vmem:[#allocation8 + $0x2048] sm:$0xff]  ;;  %v4005_v38 = vld [vmem:[#allocation8 + $0x2058] sm:$0xff]  ;;  %v6906_v11 = vpack.c.bf16 %v4219_v8, %v4218_v14 }
 0x3df   :  { %v7420_v28 = vadd.f32 %v5248_v27, %v5247_v22  ;;  %6947 = vmatpush3.bf16.msra.mxu0 %v6946_v16  ;;  %6789 = vmatprep.subr.bf16.mxu1 %v6788_v56  ;;  %v4020_v16 = vld [vmem:[#allocation8 + $0x20d0] sm:$0xff]  ;;  %v4021_v56 = vld [vmem:[#allocation8 + $0x20d8] sm:$0xff]  ;;  %v6846_v59 = vpack.c.bf16 %v4003_v19, %v4002_v55  ;;  %v6850_v23 = vpack.c.bf16 %v4005_v38, %v4004_v61  ;;  %v4006_v22 = vld [vmem:[#allocation8 + $0x2060] sm:$0xff] }
 0x3e0   :  { %v2328_v36 = vadd.f32 %v5074_v26, %v7418_v41  ;;  %6949 = vmatprep.subr.bf16.mxu0 %v6948_v18  ;;  %v4013_v41 = vld [vmem:[#allocation8 + $0x2098] sm:$0xff]  ;;  %v6848_v60 = vpack.c.bf16 %v4021_v56, %v4020_v16  ;;  %v4022_v18 = vld [vmem:[#allocation8 + $0x20e0] sm:$0xff]  ;;  %v4007_v24 = vld [vmem:[#allocation8 + $0x2068] sm:$0xff]  ;;  %v6910_v55 = vpack.c.bf16 %v4221_v15, %v4220_v54 }
 0x3e1   :  { %v6832_v31 = vpack.c.bf16 %v4013_v41, %v4012_v2  ;;  %v6852_v17 = vpack.c.bf16 %v4023_v20, %v4022_v18  ;;  %v4025_v26 = vld [vmem:[#allocation8 + $0x20f8] sm:$0xff]  ;;  %v6854_v37 = vpack.c.bf16 %v4007_v24, %v4006_v22  ;;  %v4222_v16 = vld [vmem:[#allocation8 + $0x2250] sm:$0xff]  ;;  %v4224_v18 = vld [vmem:[#allocation8 + $0x2260] sm:$0xff] }
 0x3e2   :  { %6791 = vmatpush3.bf16.msra.mxu1 %v6790_v21  ;;  %v7424_v39 = vadd.f32 %v7408_v6, %v2328_v36  ;;  %v3997_v6 = vld [vmem:[#allocation8 + $0x2018] sm:$0xff]  ;;  %v6856_v30 = vpack.c.bf16 %v4025_v26, %v4024_v25  ;;  %v4008_v36 = vld [vmem:[#allocation8 + $0x2070] sm:$0xff]  ;;  %v4225_v20 = vld [vmem:[#allocation8 + $0x2268] sm:$0xff] }
 0x3e3   :  { %6951 = vmatpush3.bf16.msra.mxu0 %v6950_v29  ;;  %6793 = vmatprep.subr.bf16.mxu1 %v6792_v32  ;;  %v6834_v7 = vpack.c.bf16 %v3997_v6, %v3996_v5  ;;  %v4231_v2 = vld [vmem:[#allocation8 + $0x2298] sm:$0xff]  ;;  %v4232_v6 = vld [vmem:[#allocation8 + $0x22a0] sm:$0xff] }
 0x3e4   :  { %6953 = vmatprep.subr.bf16.mxu0 %v6952_v43  ;;  %v4009_v43 = vld [vmem:[#allocation8 + $0x2078] sm:$0xff] }
 0x3e5   :  { %v4210_v41 = vld [vmem:[#allocation2 + $0x88] sm:$0x30] }
 0x3e6   :  { %6795 = vmatpush3.bf16.msra.mxu1 %v6794_v58  ;;  %v6858_v58 = vpack.c.bf16 %v4009_v43, %v4008_v36  ;;  %v4247_v5 = vrot.slane %v4210_v41, 4  ;;  %v4223_v56 = vld [vmem:[#allocation8 + $0x2258] sm:$0xff] }
 0x3e7   :  { %6955 = vmatpush3.bf16.msra.mxu0 %v6954_v51  ;;  %6829 = vmatprep.subr.bf16.mxu1 %v6828_v62  ;;  %v6892_v62 = vpack.c.bf16 %v4229_v50, %v4228_v49  ;;  %v6914_v61 = vpack.c.bf16 %v4223_v56, %v4222_v16  ;;  %v4243_v22 = vld [vmem:[#allocation8 + $0x22f8] sm:$0xff] }
 0x3e9   :  { %3873 = vmatmul.mubr.f32.vlgmr.msra.gmra.mrb[32].mxu1 %v3804_v4  ;;  %v4214_v4 = vld [vmem:[#allocation8 + $0x2210] sm:$0xff] }
 0x3ea   :  { %4427 = vmatmul.mubr.f32.vlgmr.msra.gmra.mrb[50].mxu0 %v4358_v33  ;;  %6831 = vmatpush3.bf16.msra.mxu1 %v6830_v42  ;;  %v6896_v42 = vpack.c.bf16 %v4231_v2, %v4230_v57  ;;  %v4233_v33 = vld [vmem:[#allocation8 + $0x22a8] sm:$0xff] }
 0x3eb   :  { %4090 = vmatprep.mubr.f32.mxu1 %v3992_v46  ;;  %6833 = vmatprep.subr.bf16.mxu1 %v6832_v31  ;;  %v3991_v31 = vld [vmem:[#allocation2 + $0x80] sm:$0x3]  ;;  %v6900_v40 = vpack.c.bf16 %v4233_v33, %v4232_v6 }
 0x3ec   :  { %v4217_v46 = vld [vmem:[#allocation8 + $0x2228] sm:$0xff] }
 0x3ed   :  { %v6902_v53 = vpack.c.bf16 %v4217_v46, %v4216_v44 }
 0x3ee   :  { %6835 = vmatpush3.bf16.msra.mxu1 %v6834_v7  ;;  %v4234_v7 = vld [vmem:[#allocation8 + $0x22b0] sm:$0xff] }
 0x3ef   :  { %6837 = vmatprep.subr.bf16.mxu1 %v6836_v47  ;;  %v4235_v47 = vld [vmem:[#allocation8 + $0x22b8] sm:$0xff] }
 0x3f0   :  { %v6904_v48 = vpack.c.bf16 %v4235_v47, %v4234_v7 }
 0x3f2   :  { %6839 = vmatpush3.bf16.msra.mxu1 %v6838_v9  ;;  %v4236_v9 = vld [vmem:[#allocation8 + $0x22c0] sm:$0xff] }
 0x3f3   :  { %6841 = vmatprep.subr.bf16.mxu1 %v6840_v10  ;;  %v4237_v10 = vld [vmem:[#allocation8 + $0x22c8] sm:$0xff] }
 0x3f4   :  { %v6908_v52 = vpack.c.bf16 %v4237_v10, %v4236_v9 }
 0x3f6   :  { %6843 = vmatpush3.bf16.msra.mxu1 %v6842_v12  ;;  %v4238_v12 = vld [vmem:[#allocation8 + $0x22d0] sm:$0xff] }
 0x3f7   :  { %6845 = vmatprep.subr.bf16.mxu1 %v6844_v13  ;;  %v4239_v13 = vld [vmem:[#allocation8 + $0x22d8] sm:$0xff] }
 0x3f8   :  { %v6912_v19 = vpack.c.bf16 %v4239_v13, %v4238_v12 }
 0x3fa   :  { %6847 = vmatpush3.bf16.msra.mxu1 %v6846_v59  ;;  %v4240_v59 = vld [vmem:[#allocation8 + $0x22e0] sm:$0xff] }
 0x3fb   :  { %6849 = vmatprep.subr.bf16.mxu1 %v6848_v60  ;;  %v4241_v60 = vld [vmem:[#allocation8 + $0x22e8] sm:$0xff] }
 0x3fc   :  { %v5142_v34 = vpop.f32.mrb[20].mxu1  ;;  %v6916_v38 = vpack.c.bf16 %v4241_v60, %v4240_v59 }
 0x3fd   :  { %v5317_v27 = vpop.f32.mrb[38].mxu0  ;;  %v5143_v21 = vpop.f32.mrb[21].mxu1 }
 0x3fe   :  { %v5144_v29 = vadd.f32 %v5143_v21, %v5142_v34  ;;  %v5318_v32 = vpop.f32.mrb[39].mxu0  ;;  %6851 = vmatpush3.bf16.msra.mxu1 %v6850_v23 }
 0x3ff   :  { %v7426_v35 = vadd.f32 %v5318_v32, %v5317_v27  ;;  %6853 = vmatprep.subr.bf16.mxu1 %v6852_v17  ;;  %v4242_v17 = vld [vmem:[#allocation8 + $0x22f0] sm:$0xff]  ;;  %v6918_v27 = vpack.c.bf16 %v4225_v20, %v4224_v18 }
 0x400   :  { %v2552_v63 = vadd.f32 %v5144_v29, %v7424_v39  ;;  %v4215_v39 = vld [vmem:[#allocation8 + $0x2218] sm:$0xff]  ;;  %v6920_v29 = vpack.c.bf16 %v4243_v22, %v4242_v17  ;;  %v4226_v32 = vld [vmem:[#allocation8 + $0x2270] sm:$0xff]  ;;  %v4477_v22 = vld [vmem:[#allocation9] ss:$0 sm:$0xff] }
 0x402   :  { %6855 = vmatpush3.bf16.msra.mxu1 %v6854_v37  ;;  %v7430_v51 = vadd.f32 %v7414_v45, %v2552_v63  ;;  %v6898_v45 = vpack.c.bf16 %v4215_v39, %v4214_v4  ;;  %v4227_v37 = vld [vmem:[#allocation8 + $0x2278] sm:$0xff]  ;;  %v4209_v63 = vld [vmem:[#allocation2 + $0x80] sm:$0x30] }
 0x403   :  { %6857 = vmatprep.subr.bf16.mxu1 %v6856_v30  ;;  %v6922_v36 = vpack.c.bf16 %v4227_v37, %v4226_v32  ;;  %v4246_v49 = vrot.slane %v4209_v63, 4 }
 0x406   :  { %6859 = vmatpush3.bf16.msra.mxu1 %v6858_v58 }
 0x407   :  { %6893 = vmatprep.subr.bf16.mxu1 %v6892_v62 }
 0x409   :  { %4091 = vmatmul.mubr.f32.vlgmr.msra.gmra.mrb[34].mxu1 %v3991_v31 }
 0x40a   :  { %6895 = vmatpush3.bf16.msra.mxu1 %v6894_v3  ;;  %4314 = vmatprep.mubr.f32.mxu1 %v4247_v5 }
 0x40b   :  { %6897 = vmatprep.subr.bf16.mxu1 %v6896_v42 }
 0x40e   :  { %6899 = vmatpush3.bf16.msra.mxu1 %v6898_v45 }
 0x40f   :  { %6901 = vmatprep.subr.bf16.mxu1 %v6900_v40 }
 0x412   :  { %6903 = vmatpush3.bf16.msra.mxu1 %v6902_v53 }
 0x413   :  { %6905 = vmatprep.subr.bf16.mxu1 %v6904_v48 }
 0x416   :  { %6907 = vmatpush3.bf16.msra.mxu1 %v6906_v11 }
 0x417   :  { %6909 = vmatprep.subr.bf16.mxu1 %v6908_v52 }
 0x41a   :  { %6911 = vmatpush3.bf16.msra.mxu1 %v6910_v55 }
 0x41b   :  { %6913 = vmatprep.subr.bf16.mxu1 %v6912_v19 }
 0x41c   :  { %v5212_v23 = vpop.f32.mrb[22].mxu1 }
 0x41d   :  { %v5387_v24 = vpop.f32.mrb[40].mxu0  ;;  %v5213_v34 = vpop.f32.mrb[23].mxu1 }
 0x41e   :  { %v5214_v25 = vadd.f32 %v5213_v34, %v5212_v23  ;;  %v5388_v26 = vpop.f32.mrb[41].mxu0  ;;  %6915 = vmatpush3.bf16.msra.mxu1 %v6914_v61 }
 0x41f   :  { %v5389_v21 = vadd.f32 %v5388_v26, %v5387_v24  ;;  %6917 = vmatprep.subr.bf16.mxu1 %v6916_v38 }
 0x420   :  { %v2770_v30 = vadd.f32 %v5214_v25, %v7430_v51  ;;  %v4478_v25 = vld [vmem:[#allocation11] ss:$0 sm:$0xff] }
 0x422   :  { %6919 = vmatpush3.bf16.msra.mxu1 %v6918_v27  ;;  %v2882_v43 = vadd.f32 %v7420_v28, %v2770_v30 }
 0x423   :  { %6921 = vmatprep.subr.bf16.mxu1 %v6920_v29  ;;  %v4479_v29 = vld [vmem:[#allocation3] ss:$0 sm:$0xff] }
 0x426   :  { %6923 = vmatpush3.bf16.msra.mxu1 %v6922_v36 }
 0x429   :  { %4315 = vmatmul.mubr.f32.vlgmr.msra.gmra.mrb[36].mxu1 %v4246_v49 }
 0x43c   :  { %v5282_v50 = vpop.f32.mrb[24].mxu1 }
 0x43d   :  { %v5457_v58 = vpop.f32.mrb[42].mxu0  ;;  %v5283_v62 = vpop.f32.mrb[25].mxu1 }
 0x43e   :  { %v5284_v0 = vadd.f32 %v5283_v62, %v5282_v50  ;;  %v5458_v1 = vpop.f32.mrb[43].mxu0 }
 0x43f   :  { %v5459_v57 = vadd.f32 %v5458_v1, %v5457_v58 }
 0x440   :  { %v2994_v2 = vadd.f32 %v5284_v0, %v2882_v43 }
 0x442   :  { %v3106_v41 = vadd.f32 %v7426_v35, %v2994_v2 }
 0x45c   :  { %v5352_v3 = vpop.f32.mrb[26].mxu1 }
 0x45d   :  { %v5527_v51 = vpop.f32.mrb[44].mxu0  ;;  %v5353_v42 = vpop.f32.mrb[27].mxu1 }
 0x45e   :  { %v5354_v4 = vadd.f32 %v5353_v42, %v5352_v3  ;;  %v5528_v39 = vpop.f32.mrb[45].mxu0 }
 0x45f   :  { %v5529_v28 = vadd.f32 %v5528_v39, %v5527_v51 }
 0x460   :  { %v3212_v31 = vadd.f32 %v5354_v4, %v3106_v41 }
 0x462   :  { %v3324_v5 = vadd.f32 %v5389_v21, %v3212_v31 }
 0x47c   :  { %v5422_v6 = vpop.f32.mrb[28].mxu1 }
 0x47d   :  { %v5597_v33 = vpop.f32.mrb[46].mxu0  ;;  %v5423_v45 = vpop.f32.mrb[29].mxu1 }
 0x47e   :  { %v5424_v40 = vadd.f32 %v5423_v45, %v5422_v6  ;;  %v5598_v44 = vpop.f32.mrb[47].mxu0 }
 0x47f   :  { %v5599_v46 = vadd.f32 %v5598_v44, %v5597_v33 }
 0x480   :  { %v3436_v7 = vadd.f32 %v5424_v40, %v3324_v5 }
 0x482   :  { %v3548_v47 = vadd.f32 %v5459_v57, %v3436_v7 }
 0x49c   :  { %v5492_v53 = vpop.f32.mrb[30].mxu1 }
 0x49d   :  { %v5667_v48 = vpop.f32.mrb[48].mxu0  ;;  %v5493_v14 = vpop.f32.mrb[31].mxu1 }
 0x49e   :  { %v5494_v35 = vadd.f32 %v5493_v14, %v5492_v53  ;;  %v5668_v8 = vpop.f32.mrb[49].mxu0 }
 0x49f   :  { %v5669_v9 = vadd.f32 %v5668_v8, %v5667_v48 }
 0x4a0   :  { %v3654_v10 = vadd.f32 %v5494_v35, %v3548_v47 }
 0x4a2   :  { %v3766_v11 = vadd.f32 %v5529_v28, %v3654_v10 }
 0x4bc   :  { %v5562_v52 = vpop.f32.mrb[32].mxu1 }
 0x4bd   :  { %v5737_v54 = vpop.f32.mrb[50].mxu0  ;;  %v5563_v15 = vpop.f32.mrb[33].mxu1 }
 0x4be   :  { %v5564_v12 = vadd.f32 %v5563_v15, %v5562_v52  ;;  %v5738_v13 = vpop.f32.mrb[51].mxu0 }
 0x4bf   :  { %v5739_v55 = vadd.f32 %v5738_v13, %v5737_v54 }
 0x4c0   :  { %v3878_v19 = vadd.f32 %v5564_v12, %v3766_v11 }
 0x4c2   :  { %v3990_v16 = vadd.f32 %v5599_v46, %v3878_v19 }
 0x4dc   :  { %v5632_v56 = vpop.f32.mrb[34].mxu1 }
 0x4dd   :  { %v5633_v59 = vpop.f32.mrb[35].mxu1 }
 0x4de   :  { %v5634_v60 = vadd.f32 %v5633_v59, %v5632_v56 }
 0x4e0   :  { %v4096_v61 = vadd.f32 %v5634_v60, %v3990_v16 }
 0x4e2   :  { %v4208_v38 = vadd.f32 %v5669_v9, %v4096_v61 }
 0x4fc   :  { %v5702_v18 = vpop.f32.mrb[36].mxu1 }
 0x4fd   :  { %v5703_v20 = vpop.f32.mrb[37].mxu1 }
 0x4fe   :  { %v5704_v23 = vadd.f32 %v5703_v20, %v5702_v18 }
 0x500   :  { %v4320_v17 = vadd.f32 %v5704_v23, %v4208_v38 }
 0x502   :  { %v4432_v24 = vadd.f32 %v5739_v55, %v4320_v17 }
 0x504   :  { %v4440_v34 = vadd.f32 %v4477_v22, %v4432_v24 }
 0x506   :  { %v4441_v26 = vmax.f32 %v4440_v34, 0.0 }
 0x508   :  { %v4449_v27 = vmul.f32 %v4478_v25, %v4441_v26 }
 0x50a   :  { %v4451_v21 = vsel %vm4450_vm0, %v4449_v27, 0.0 }
 0x50b   :  { %4452 = vadd.xlane.f32.xlu0 %v4451_v21 }
 0x598   :  { %v4453_v32 = vpop.xlane.xlu0 %4452 }
 0x599   :  { %v4461_v37 = vadd.f32 %v4479_v29, %v4453_v32 }
 0x59b   :  { %v4462_v30 = vsub.f32 0.0, %v4461_v37 }
 0x59d   :  { %v4463_v36 = vmul.f32 1.442695, %v4462_v30 }
 0x59f   :  { %6969 = vpow2.f32 %v4463_v36 }
 0x5a9   :  { %v6970_v43 = vpop.eup %6969 }
 0x5aa   :  { %v4465_v63 = vadd.f32 1.0, %v6970_v43 }
 0x5ac   :  { %6971 = vrcp.f32 %v4465_v63 }
 0x5b6   :  { %v6972_v49 = vpop.eup %6971 }
 0x5b7   :  { %v4467_v50 = vmul.f32 -1.0, %v6972_v49 }
 0x5b9   :  { %4469 = vst.msk [vmem:[%s7445_s7] sm:$0x3] %vm4468_vm1, %v4467_v50 }
 0x5ba   :  { %4474 = vsyncpa [#allocation5], 1 }
 0x5bb   :  { %4475 = vsyncpa [#allocation7], 1 }
 0x5bc   :  { %4476 = vsyncpa [#allocation10], 1 }

</bundles_post_ra>
